<compile_context>
chip_gen: v5e
topology: v5e:2x2
jax: 0.10.0
libtpu: 0.0.40
codegen_flags: <defaults>
</compile_context>

<pallas_src>
import functools

import jax
import jax.numpy as jnp
from jax import lax
from jax.experimental import pallas as pl
from jax.experimental.pallas import tpu as pltpu

F32 = jnp.float32
BF16 = jnp.bfloat16
HIGH = lax.Precision.HIGHEST


# ----------------------------------------------------------------------------
# Pallas kernel
# ----------------------------------------------------------------------------
def _decode_step_kernel(
    # inputs
    word_ref,         # (B, Dw)        f32
    h_prev_ref,       # (2, B, H)      f32
    c_prev_ref,       # (2, B, H)      f32
    enc_ref,          # (B, T_in, H)   f32
    trans_ref,        # (B, T_tr, H)   f32
    inmask_ref,       # (B, T_in)      f32
    trmask_ref,       # (B, T_tr)      f32
    att_w_ref,        # (H, H)         bf16
    att_parse_w_ref,  # (H, H)         bf16
    w0w_ref,          # (4, Dw, H)     bf16  word      -> layer0 gates
    w0c_ref,          # (4, H, H)      bf16  trans_ctx -> layer0 gates
    u0_ref,           # (4, H, H)      bf16  h0        -> layer0 gates
    b0_ref,           # (4, 1, H)      f32
    w1x_ref,          # (4, H, H)      bf16  h0n       -> layer1 gates
    u1_ref,           # (4, H, H)      bf16  h1        -> layer1 gates
    b1_ref,           # (4, 1, H)      f32
    cp_word_ref,      # (1, Dw)        f32
    cp_ctx_ref,       # (1, H)         f32
    cp_att_ref,       # (1, H)         f32
    cp_hid_ref,       # (1, H)         f32
    # outputs
    hn_ref,           # (2, B, H)      f32
    cn_ref,           # (2, B, H)      f32
    attw_ref,         # (B, T_in)      f32
    attctx_ref,       # (B, H)         f32
    pcopy_ref,        # (B, 128)       f32  (value broadcast along lanes)
):
    word = word_ref[...]
    h0, h1 = h_prev_ref[0], h_prev_ref[1]
    c0, c1 = c_prev_ref[0], c_prev_ref[1]
    enc_bf = enc_ref[...].astype(BF16)
    trans_bf = trans_ref[...].astype(BF16)

    def masked_softmax(scores, mask):
        # scores: (B, 1, T) f32 ; mask: (B, T) f32 in {0,1}
        m = jnp.max(scores, axis=-1, keepdims=True)
        num = jnp.exp(scores - m) * mask[:, None, :]
        denom = jnp.sum(num, axis=-1, keepdims=True) + 1e-13
        return num * pl.reciprocal(denom, approx=True)

    def attend(query_f32, w_ref, keys_bf, mask):
        # query (B, H) f32 ; keys (B, T, H) bf16 ; mask (B, T) f32
        q = jnp.dot(query_f32.astype(BF16), w_ref[...],
                    preferred_element_type=F32)                        # (B, H)
        scores = jnp.einsum('bqh,bth->bqt', q[:, None, :].astype(BF16),
                            keys_bf, preferred_element_type=F32)        # (B,1,T)
        w = masked_softmax(scores, mask)                                # (B,1,T)
        ctx = jnp.einsum('bqt,bth->bqh', w.astype(BF16), keys_bf,
                         preferred_element_type=F32)                    # (B,1,H)
        return w[:, 0, :], ctx[:, 0, :]

    # --- transformation attention (uses previous top-layer hidden) -----------
    _, trans_ctx = attend(h1, att_parse_w_ref, trans_bf, trmask_ref[...])

    # --- 2-layer LSTM step, per-gate slabs, PyTorch gate order i, f, g, o ----
    word_bf, ctx_bf = word.astype(BF16), trans_ctx.astype(BF16)
    h0_bf, h1_bf = h0.astype(BF16), h1.astype(BF16)

    def gates0(k):
        return (jnp.dot(word_bf, w0w_ref[k], preferred_element_type=F32)
                + jnp.dot(ctx_bf, w0c_ref[k], preferred_element_type=F32)
                + jnp.dot(h0_bf, u0_ref[k], preferred_element_type=F32)
                + b0_ref[k])

    i0 = jax.nn.sigmoid(gates0(0))
    f0 = jax.nn.sigmoid(gates0(1))
    g0 = jnp.tanh(gates0(2))
    o0 = jax.nn.sigmoid(gates0(3))
    c0n = f0 * c0 + i0 * g0
    h0n = o0 * jnp.tanh(c0n)

    h0n_bf = h0n.astype(BF16)

    def gates1(k):
        return (jnp.dot(h0n_bf, w1x_ref[k], preferred_element_type=F32)
                + jnp.dot(h1_bf, u1_ref[k], preferred_element_type=F32)
                + b1_ref[k])

    i1 = jax.nn.sigmoid(gates1(0))
    f1 = jax.nn.sigmoid(gates1(1))
    g1 = jnp.tanh(gates1(2))
    o1 = jax.nn.sigmoid(gates1(3))
    c1n = f1 * c1 + i1 * g1
    h1n = o1 * jnp.tanh(c1n)

    # --- decoder attention over encoder hiddens (uses new top-layer hidden) --
    a_w, attn_ctx = attend(h1n, att_w_ref, enc_bf, inmask_ref[...])

    # --- copy gate: VPU multiply-reduce (keeps the MXU on the big dots) -------
    p = (jnp.sum(word * cp_word_ref[...], axis=1, keepdims=True)
         + jnp.sum(trans_ctx * cp_ctx_ref[...], axis=1, keepdims=True)
         + jnp.sum(attn_ctx * cp_att_ref[...], axis=1, keepdims=True)
         + jnp.sum(h1n * cp_hid_ref[...], axis=1, keepdims=True))
    p_copy = jax.nn.sigmoid(p)                                          # (B, 1)

    # --- outputs --------------------------------------------------------------
    hn_ref[0] = h0n
    hn_ref[1] = h1n
    cn_ref[0] = c0n
    cn_ref[1] = c1n
    attw_ref[...] = a_w
    attctx_ref[...] = attn_ctx
    pcopy_ref[...] = jnp.broadcast_to(p_copy, pcopy_ref.shape)


# ----------------------------------------------------------------------------
# Wrapper: mirrors SCPN.decode_step (idx > 0 path)
# ----------------------------------------------------------------------------
def _round_up(x, m):
    return (x + m - 1) // m * m


def compute_mask(lengths, max_len):
    rng = jnp.arange(max_len, dtype=lengths.dtype)[None, :]
    return (rng < lengths[:, None]).astype(F32)


@functools.partial(jax.jit, static_argnames=("idx",))
def scpn_decode_step(params, idx, prev_words, prev_hid, prev_cell,
                     enc_hids, trans_hids, in_sent_lens, trans_lens):
    B, H = prev_hid.shape[1], prev_hid.shape[2]
    d_word = params["word_embs"].shape[1]
    T_in, T_tr = enc_hids.shape[1], trans_hids.shape[1]

    if idx == 0:
        word_input = jnp.zeros((B, d_word), F32)
    else:
        word_input = params["word_embs"][prev_words].reshape(B, d_word)

    # batch tile: multiple of 8 sublanes; 128-row blocks for large batch*beam
    if B <= 128:
        BB = _round_up(B, 8)
        Bp = BB
    else:
        BB = 128
        Bp = _round_up(B, 128)
    # pad attention time axes to 128 lanes -> lane-dense masks / attw output
    T_inp = _round_up(T_in, 128)
    T_trp = _round_up(T_tr, 128)

    def pad_to(x, shape):
        pads = [(0, s - d) for s, d in zip(shape, x.shape)]
        return x if all(p == (0, 0) for p in pads) else jnp.pad(x, pads)

    word_p = pad_to(word_input, (Bp, d_word))
    hid_p = pad_to(prev_hid, (2, Bp, H))
    cell_p = pad_to(prev_cell, (2, Bp, H))
    enc_p = pad_to(enc_hids, (Bp, T_inp, H))
    trans_p = pad_to(trans_hids, (Bp, T_trp, H))
    in_mask = pad_to(compute_mask(in_sent_lens, T_inp), (Bp, T_inp))
    tr_mask = pad_to(compute_mask(trans_lens, T_trp), (Bp, T_trp))

    # per-gate weight slabs (PyTorch gate order i,f,g,o), pre-transposed, bf16
    def gate_slabs(w, in_dim):          # (4H, in_dim) -> (4, in_dim, H)
        return jnp.transpose(w.reshape(4, H, in_dim), (0, 2, 1)).astype(BF16)

    w_ih0 = params["dec_w_ih0"]                       # (4H, Dw + H)
    w0w = gate_slabs(w_ih0[:, :d_word], d_word)       # (4, Dw, H)
    w0c = gate_slabs(w_ih0[:, d_word:], H)            # (4, H, H)
    u0 = gate_slabs(params["dec_w_hh0"], H)
    b0 = (params["dec_b_ih0"] + params["dec_b_hh0"]).reshape(4, 1, H)
    w1x = gate_slabs(params["dec_w_ih1"], H)
    u1 = gate_slabs(params["dec_w_hh1"], H)
    b1 = (params["dec_b_ih1"] + params["dec_b_hh1"]).reshape(4, 1, H)

    att_w = params["att_W"].astype(BF16)
    att_parse_w = params["att_parse_W"].astype(BF16)

    cp_word = params["copy_inp_v"][:d_word, 0].reshape(1, d_word)
    cp_ctx = params["copy_inp_v"][d_word:, 0].reshape(1, H)
    cp_att = params["copy_att_v"][:, 0].reshape(1, H)
    cp_hid = params["copy_hid_v"][:, 0].reshape(1, H)

    def full_spec(arr):
        n = arr.ndim
        return pl.BlockSpec(arr.shape, lambda i, _n=n: (0,) * _n)

    in_specs = [
        pl.BlockSpec((BB, d_word), lambda i: (i, 0)),
        pl.BlockSpec((2, BB, H), lambda i: (0, i, 0)),
        pl.BlockSpec((2, BB, H), lambda i: (0, i, 0)),
        pl.BlockSpec((BB, T_inp, H), lambda i: (i, 0, 0)),
        pl.BlockSpec((BB, T_trp, H), lambda i: (i, 0, 0)),
        pl.BlockSpec((BB, T_inp), lambda i: (i, 0)),
        pl.BlockSpec((BB, T_trp), lambda i: (i, 0)),
        full_spec(att_w), full_spec(att_parse_w),
        full_spec(w0w), full_spec(w0c), full_spec(u0), full_spec(b0),
        full_spec(w1x), full_spec(u1), full_spec(b1),
        full_spec(cp_word), full_spec(cp_ctx), full_spec(cp_att),
        full_spec(cp_hid),
    ]
    out_specs = (
        pl.BlockSpec((2, BB, H), lambda i: (0, i, 0)),
        pl.BlockSpec((2, BB, H), lambda i: (0, i, 0)),
        pl.BlockSpec((BB, T_inp), lambda i: (i, 0)),
        pl.BlockSpec((BB, H), lambda i: (i, 0)),
        pl.BlockSpec((BB, 128), lambda i: (i, 0)),
    )
    out_shape = (
        jax.ShapeDtypeStruct((2, Bp, H), F32),     # hn
        jax.ShapeDtypeStruct((2, Bp, H), F32),     # cn
        jax.ShapeDtypeStruct((Bp, T_inp), F32),    # attn_weights (lane dense)
        jax.ShapeDtypeStruct((Bp, H), F32),        # attn_ctx
        jax.ShapeDtypeStruct((Bp, 128), F32),      # p_copy (lane dense)
    )

    hn, cn, attw, attctx, pcopy = pl.pallas_call(
        _decode_step_kernel,
        out_shape=out_shape,
        grid=(Bp // BB,),
        in_specs=in_specs,
        out_specs=out_specs,
        input_output_aliases={1: 0, 2: 1},     # prev_hid -> hn, prev_cell -> cn
        compiler_params=pltpu.CompilerParams(
            dimension_semantics=("parallel",),
            vmem_limit_bytes=64 * 1024 * 1024),
    )(word_p, hid_p, cell_p, enc_p, trans_p, in_mask, tr_mask,
      att_w, att_parse_w, w0w, w0c, u0, b0, w1x, u1, b1,
      cp_word, cp_ctx, cp_att, cp_hid)

    return (hn[:, :B, :], cn[:, :B, :], attw[:B, :T_in],
            attctx[:B, :], pcopy[:B, 0])


# ----------------------------------------------------------------------------
# Pure-JAX reference (mirrors the PyTorch decode_step) for a sanity check
# ----------------------------------------------------------------------------
def reference_decode_step(params, idx, prev_words, prev_hid, prev_cell,
                          enc_hids, trans_hids, in_sent_lens, trans_lens):
    B, H = prev_hid.shape[1], prev_hid.shape[2]
    d_word = params["word_embs"].shape[1]

    def masked_softmax(v, m):
        r = jax.nn.softmax(v, axis=1) * m
        return r / (jnp.sum(r, axis=1, keepdims=True) + 1e-13)

    if idx == 0:
        word_input = jnp.zeros((B, d_word), F32)
    else:
        word_input = params["word_embs"][prev_words].reshape(B, d_word)

    tr_mask = compute_mask(trans_lens, trans_hids.shape[1])
    in_mask = compute_mask(in_sent_lens, enc_hids.shape[1])

    b_hn = jnp.dot(prev_hid[1], params["att_parse_W"], precision=HIGH)
    t_scores = jnp.sum(b_hn[:, None, :] * trans_hids, axis=2)
    t_w = masked_softmax(t_scores, tr_mask)
    trans_ctx = jnp.sum(t_w[:, :, None] * trans_hids, axis=1)
    dec_in = jnp.concatenate([word_input, trans_ctx], axis=1)

    def cell(x, h, c, w_ih, w_hh, b_ih, b_hh):
        g = (jnp.dot(x, w_ih.T, precision=HIGH)
             + jnp.dot(h, w_hh.T, precision=HIGH) + b_ih + b_hh)
        i, f, gg, o = jnp.split(g, 4, axis=1)
        c_new = jax.nn.sigmoid(f) * c + jax.nn.sigmoid(i) * jnp.tanh(gg)
        return jax.nn.sigmoid(o) * jnp.tanh(c_new), c_new

    h0n, c0n = cell(dec_in, prev_hid[0], prev_cell[0], params["dec_w_ih0"],
                    params["dec_w_hh0"], params["dec_b_ih0"], params["dec_b_hh0"])
    h1n, c1n = cell(h0n, prev_hid[1], prev_cell[1], params["dec_w_ih1"],
                    params["dec_w_hh1"], params["dec_b_ih1"], params["dec_b_hh1"])

    b_hn2 = jnp.dot(h1n, params["att_W"], precision=HIGH)
    e_scores = jnp.sum(b_hn2[:, None, :] * enc_hids, axis=2)
    a_w = masked_softmax(e_scores, in_mask)
    attn_ctx = jnp.sum(a_w[:, :, None] * enc_hids, axis=1)

    p = (jnp.dot(dec_in, params["copy_inp_v"], precision=HIGH)
         + jnp.dot(attn_ctx, params["copy_att_v"], precision=HIGH)
         + jnp.dot(h1n, params["copy_hid_v"], precision=HIGH))
    p_copy = jax.nn.sigmoid(p)[:, 0]

    hn = jnp.stack([h0n, h1n])
    cn = jnp.stack([c0n, c1n])
    return hn, cn, a_w, attn_ctx, p_copy


# ----------------------------------------------------------------------------
# Deterministic parameter / input construction
# ----------------------------------------------------------------------------
def make_params(key, d_word, d_hid, len_voc):
    ks = jax.random.split(key, 16)
    s = 0.1
    return {
        "word_embs":   s * jax.random.normal(ks[0], (len_voc, d_word), F32),
        "att_W":       s * jax.random.normal(ks[1], (d_hid, d_hid), F32),
        "att_parse_W": s * jax.random.normal(ks[2], (d_hid, d_hid), F32),
        "copy_hid_v":  s * jax.random.normal(ks[3], (d_hid, 1), F32),
        "copy_att_v":  s * jax.random.normal(ks[4], (d_hid, 1), F32),
        "copy_inp_v":  s * jax.random.normal(ks[5], (d_word + d_hid, 1), F32),
        # decoder LSTM (2 layers), PyTorch shapes, gate order i,f,g,o
        "dec_w_ih0":   s * jax.random.normal(ks[6], (4 * d_hid, d_word + d_hid), F32),
        "dec_w_hh0":   s * jax.random.normal(ks[7], (4 * d_hid, d_hid), F32),
        "dec_b_ih0":   s * jax.random.normal(ks[8], (4 * d_hid,), F32),
        "dec_b_hh0":   s * jax.random.normal(ks[9], (4 * d_hid,), F32),
        "dec_w_ih1":   s * jax.random.normal(ks[10], (4 * d_hid, d_hid), F32),
        "dec_w_hh1":   s * jax.random.normal(ks[11], (4 * d_hid, d_hid), F32),
        "dec_b_ih1":   s * jax.random.normal(ks[12], (4 * d_hid,), F32),
        "dec_b_hh1":   s * jax.random.normal(ks[13], (4 * d_hid,), F32),
    }


if __name__ == "__main__":
    key = jax.random.PRNGKey(0)
    B, T_in, T_tr = 2, 8, 6
    d_word, d_hid, len_voc = 16, 32, 50

    kp, k1, k2, k3, k4, k5 = jax.random.split(key, 6)
    params = make_params(kp, d_word, d_hid, len_voc)

    prev_words = jax.random.randint(k1, (B,), 0, len_voc)
    prev_hid = 0.1 * jax.random.normal(k2, (2, B, d_hid), F32)
    prev_cell = 0.1 * jax.random.normal(k3, (2, B, d_hid), F32)
    enc_hids = 0.1 * jax.random.normal(k4, (B, T_in, d_hid), F32)
    trans_hids = 0.1 * jax.random.normal(k5, (B, T_tr, d_hid), F32)
    in_sent_lens = jnp.array([8, 5], jnp.int32)
    trans_lens = jnp.array([6, 4], jnp.int32)

    outs = scpn_decode_step(params, 1, prev_words, prev_hid, prev_cell,
                            enc_hids, trans_hids, in_sent_lens, trans_lens)
    outs = jax.block_until_ready(outs)

    refs = reference_decode_step(params, 1, prev_words, prev_hid, prev_cell,
                                 enc_hids, trans_hids, in_sent_lens, trans_lens)
    for o, r in zip(outs, refs):
        assert o.shape == r.shape and o.dtype == r.dtype
        assert bool(jnp.all(jnp.isfinite(o)))
        assert bool(jnp.allclose(o, r, atol=2e-3, rtol=2e-3)), (
            float(jnp.max(jnp.abs(o - r))))

    print("KERNEL_OK")
</pallas_src>

<mosaic_0001>
module attributes {stable_mosaic.version = 11 : i64} {
  func.func @_decode_step_kernel(%arg0: i32, %arg1: memref<8x16xf32, #tpu.memory_space<vmem>>, %arg2: memref<2x8x32xf32, #tpu.memory_space<vmem>>, %arg3: memref<2x8x32xf32, #tpu.memory_space<vmem>>, %arg4: memref<8x128x32xf32, #tpu.memory_space<vmem>>, %arg5: memref<8x128x32xf32, #tpu.memory_space<vmem>>, %arg6: memref<8x128xf32, #tpu.memory_space<vmem>>, %arg7: memref<8x128xf32, #tpu.memory_space<vmem>>, %arg8: memref<32x32xbf16, #tpu.memory_space<vmem>>, %arg9: memref<32x32xbf16, #tpu.memory_space<vmem>>, %arg10: memref<4x16x32xbf16, #tpu.memory_space<vmem>>, %arg11: memref<4x32x32xbf16, #tpu.memory_space<vmem>>, %arg12: memref<4x32x32xbf16, #tpu.memory_space<vmem>>, %arg13: memref<4x1x32xf32, #tpu.memory_space<vmem>>, %arg14: memref<4x32x32xbf16, #tpu.memory_space<vmem>>, %arg15: memref<4x32x32xbf16, #tpu.memory_space<vmem>>, %arg16: memref<4x1x32xf32, #tpu.memory_space<vmem>>, %arg17: memref<1x16xf32, #tpu.memory_space<vmem>>, %arg18: memref<1x32xf32, #tpu.memory_space<vmem>>, %arg19: memref<1x32xf32, #tpu.memory_space<vmem>>, %arg20: memref<1x32xf32, #tpu.memory_space<vmem>>, %arg21: memref<2x8x32xf32, #tpu.memory_space<vmem>>, %arg22: memref<2x8x32xf32, #tpu.memory_space<vmem>>, %arg23: memref<8x128xf32, #tpu.memory_space<vmem>>, %arg24: memref<8x32xf32, #tpu.memory_space<vmem>>, %arg25: memref<8x128xf32, #tpu.memory_space<vmem>>) attributes {dimension_semantics = [#tpu.dimension_semantics<parallel>], iteration_bounds = array<i64: 1>, scalar_prefetch = 0 : i64, scratch_operands = 0 : i64, tpu.core_type = #tpu.core_type<tc>, window_params = [{transform_indices = @transform_0, window_bounds = array<i64: 8, 16>}, {transform_indices = @transform_1, window_bounds = array<i64: 2, 8, 32>}, {transform_indices = @transform_2, window_bounds = array<i64: 2, 8, 32>}, {transform_indices = @transform_3, window_bounds = array<i64: 8, 128, 32>}, {transform_indices = @transform_4, window_bounds = array<i64: 8, 128, 32>}, {transform_indices = @transform_5, window_bounds = array<i64: 8, 128>}, {transform_indices = @transform_6, window_bounds = array<i64: 8, 128>}, {pipeline_mode = #tpu.pipeline_mode<synchronous>, transform_indices = @transform_7, window_bounds = array<i64: 32, 32>}, {pipeline_mode = #tpu.pipeline_mode<synchronous>, transform_indices = @transform_8, window_bounds = array<i64: 32, 32>}, {pipeline_mode = #tpu.pipeline_mode<synchronous>, transform_indices = @transform_9, window_bounds = array<i64: 4, 16, 32>}, {pipeline_mode = #tpu.pipeline_mode<synchronous>, transform_indices = @transform_10, window_bounds = array<i64: 4, 32, 32>}, {pipeline_mode = #tpu.pipeline_mode<synchronous>, transform_indices = @transform_11, window_bounds = array<i64: 4, 32, 32>}, {pipeline_mode = #tpu.pipeline_mode<synchronous>, transform_indices = @transform_12, window_bounds = array<i64: 4, 1, 32>}, {pipeline_mode = #tpu.pipeline_mode<synchronous>, transform_indices = @transform_13, window_bounds = array<i64: 4, 32, 32>}, {pipeline_mode = #tpu.pipeline_mode<synchronous>, transform_indices = @transform_14, window_bounds = array<i64: 4, 32, 32>}, {pipeline_mode = #tpu.pipeline_mode<synchronous>, transform_indices = @transform_15, window_bounds = array<i64: 4, 1, 32>}, {pipeline_mode = #tpu.pipeline_mode<synchronous>, transform_indices = @transform_16, window_bounds = array<i64: 1, 16>}, {pipeline_mode = #tpu.pipeline_mode<synchronous>, transform_indices = @transform_17, window_bounds = array<i64: 1, 32>}, {pipeline_mode = #tpu.pipeline_mode<synchronous>, transform_indices = @transform_18, window_bounds = array<i64: 1, 32>}, {pipeline_mode = #tpu.pipeline_mode<synchronous>, transform_indices = @transform_19, window_bounds = array<i64: 1, 32>}, {transform_indices = @transform_20, window_bounds = array<i64: 2, 8, 32>}, {transform_indices = @transform_21, window_bounds = array<i64: 2, 8, 32>}, {transform_indices = @transform_22, window_bounds = array<i64: 8, 128>}, {transform_indices = @transform_23, window_bounds = array<i64: 8, 32>}, {transform_indices = @transform_24, window_bounds = array<i64: 8, 128>}]} {
    %c0 = arith.constant 0 : index
    %c0_0 = arith.constant 0 : index
    %0 = vector.load %arg1[%c0, %c0_0] : memref<8x16xf32, #tpu.memory_space<vmem>>, vector<8x16xf32>
    %c0_1 = arith.constant 0 : index
    %c0_2 = arith.constant 0 : index
    %c0_3 = arith.constant 0 : index
    %1 = vector.load %arg2[%c0_1, %c0_2, %c0_3] : memref<2x8x32xf32, #tpu.memory_space<vmem>>, vector<1x8x32xf32>
    %2 = vector.shape_cast %1 : vector<1x8x32xf32> to vector<8x32xf32>
    %c1 = arith.constant 1 : index
    %c0_4 = arith.constant 0 : index
    %c0_5 = arith.constant 0 : index
    %3 = vector.load %arg2[%c1, %c0_4, %c0_5] : memref<2x8x32xf32, #tpu.memory_space<vmem>>, vector<1x8x32xf32>
    %4 = vector.shape_cast %3 : vector<1x8x32xf32> to vector<8x32xf32>
    %c0_6 = arith.constant 0 : index
    %c0_7 = arith.constant 0 : index
    %c0_8 = arith.constant 0 : index
    %5 = vector.load %arg3[%c0_6, %c0_7, %c0_8] : memref<2x8x32xf32, #tpu.memory_space<vmem>>, vector<1x8x32xf32>
    %6 = vector.shape_cast %5 : vector<1x8x32xf32> to vector<8x32xf32>
    %c1_9 = arith.constant 1 : index
    %c0_10 = arith.constant 0 : index
    %c0_11 = arith.constant 0 : index
    %7 = vector.load %arg3[%c1_9, %c0_10, %c0_11] : memref<2x8x32xf32, #tpu.memory_space<vmem>>, vector<1x8x32xf32>
    %8 = vector.shape_cast %7 : vector<1x8x32xf32> to vector<8x32xf32>
    %c0_12 = arith.constant 0 : index
    %c0_13 = arith.constant 0 : index
    %c0_14 = arith.constant 0 : index
    %9 = vector.load %arg4[%c0_12, %c0_13, %c0_14] : memref<8x128x32xf32, #tpu.memory_space<vmem>>, vector<8x128x32xf32>
    %10 = arith.truncf %9 : vector<8x128x32xf32> to vector<8x128x32xbf16>
    %c0_15 = arith.constant 0 : index
    %c0_16 = arith.constant 0 : index
    %c0_17 = arith.constant 0 : index
    %11 = vector.load %arg5[%c0_15, %c0_16, %c0_17] : memref<8x128x32xf32, #tpu.memory_space<vmem>>, vector<8x128x32xf32>
    %12 = arith.truncf %11 : vector<8x128x32xf32> to vector<8x128x32xbf16>
    %c0_18 = arith.constant 0 : index
    %c0_19 = arith.constant 0 : index
    %13 = vector.load %arg7[%c0_18, %c0_19] : memref<8x128xf32, #tpu.memory_space<vmem>>, vector<8x128xf32>
    %14 = arith.truncf %4 : vector<8x32xf32> to vector<8x32xbf16>
    %c0_20 = arith.constant 0 : index
    %c0_21 = arith.constant 0 : index
    %15 = vector.load %arg9[%c0_20, %c0_21] : memref<32x32xbf16, #tpu.memory_space<vmem>>, vector<32x32xbf16>
    %cst = arith.constant dense<0.000000e+00> : vector<8x32xf32>
    %16 = tpu.matmul %14, %15, %cst {dimension_numbers = #tpu.dot_dimension_numbers<[1], [0], [0], [1], [0, 0, 1, 1], [], []>} : vector<8x32xbf16>, vector<32x32xbf16>, vector<8x32xf32> -> vector<8x32xf32>
    %17 = vector.shape_cast %16 : vector<8x32xf32> to vector<8x1x32xf32>
    %18 = arith.truncf %17 : vector<8x1x32xf32> to vector<8x1x32xbf16>
    "tpu.trace_start"() <{level = 10 : i32, message = "bqh,bth->bqt"}> : () -> ()
    %cst_22 = arith.constant dense<0.000000e+00> : vector<8x1x128xf32>
    %19 = tpu.matmul %18, %12, %cst_22 {dimension_numbers = #tpu.dot_dimension_numbers<[2], [2], [1], [1], [0, 0, 0, 1, 1, 1], [0], [0]>} : vector<8x1x32xbf16>, vector<8x128x32xbf16>, vector<8x1x128xf32> -> vector<8x1x128xf32>
    "tpu.trace_stop"() : () -> ()
    %cst_23 = arith.constant dense<0xFF800000> : vector<8x1xf32>
    %20 = vector.multi_reduction <maximumf>, %19, %cst_23 [2] : vector<8x1x128xf32> to vector<8x1xf32>
    %21 = vector.shape_cast %20 : vector<8x1xf32> to vector<8x1x1xf32>
    %22 = vector.broadcast %21 : vector<8x1x1xf32> to vector<8x1x128xf32>
    %23 = arith.subf %19, %22 : vector<8x1x128xf32>
    %24 = math.exp %23 : vector<8x1x128xf32>
    %25 = vector.shape_cast %13 : vector<8x128xf32> to vector<8x1x128xf32>
    %26 = arith.mulf %24, %25 : vector<8x1x128xf32>
    %cst_24 = arith.constant dense<0.000000e+00> : vector<8x1xf32>
    %27 = vector.multi_reduction <add>, %26, %cst_24 [2] : vector<8x1x128xf32> to vector<8x1xf32>
    %28 = vector.shape_cast %27 : vector<8x1xf32> to vector<8x1x1xf32>
    %cst_25 = arith.constant 9.99999982E-14 : f32
    %29 = vector.broadcast %cst_25 : f32 to vector<8x1x1xf32>
    %30 = arith.addf %28, %29 : vector<8x1x1xf32>
    %31 = tpu.reciprocal %30 {approx = true} : vector<8x1x1xf32> -> vector<8x1x1xf32>
    %32 = vector.broadcast %31 : vector<8x1x1xf32> to vector<8x1x128xf32>
    %33 = arith.mulf %26, %32 : vector<8x1x128xf32>
    %34 = arith.truncf %33 : vector<8x1x128xf32> to vector<8x1x128xbf16>
    "tpu.trace_start"() <{level = 10 : i32, message = "bqt,bth->bqh"}> : () -> ()
    %cst_26 = arith.constant dense<0.000000e+00> : vector<8x1x32xf32>
    %35 = tpu.matmul %34, %12, %cst_26 {dimension_numbers = #tpu.dot_dimension_numbers<[2], [1], [1], [2], [0, 0, 0, 1, 1, 2], [0], [0]>} : vector<8x1x128xbf16>, vector<8x128x32xbf16>, vector<8x1x32xf32> -> vector<8x1x32xf32>
    "tpu.trace_stop"() : () -> ()
    %36 = vector.shape_cast %35 : vector<8x1x32xf32> to vector<8x32xf32>
    %37 = arith.truncf %0 : vector<8x16xf32> to vector<8x16xbf16>
    %38 = arith.truncf %36 : vector<8x32xf32> to vector<8x32xbf16>
    %39 = arith.truncf %2 : vector<8x32xf32> to vector<8x32xbf16>
    %40 = arith.truncf %4 : vector<8x32xf32> to vector<8x32xbf16>
    %c0_27 = arith.constant 0 : index
    %c0_28 = arith.constant 0 : index
    %c0_29 = arith.constant 0 : index
    %41 = vector.load %arg10[%c0_27, %c0_28, %c0_29] : memref<4x16x32xbf16, #tpu.memory_space<vmem>>, vector<1x16x32xbf16>
    %42 = vector.shape_cast %41 : vector<1x16x32xbf16> to vector<16x32xbf16>
    %cst_30 = arith.constant dense<0.000000e+00> : vector<8x32xf32>
    %43 = tpu.matmul %37, %42, %cst_30 {dimension_numbers = #tpu.dot_dimension_numbers<[1], [0], [0], [1], [0, 0, 1, 1], [], []>} : vector<8x16xbf16>, vector<16x32xbf16>, vector<8x32xf32> -> vector<8x32xf32>
    %c0_31 = arith.constant 0 : index
    %c0_32 = arith.constant 0 : index
    %c0_33 = arith.constant 0 : index
    %44 = vector.load %arg11[%c0_31, %c0_32, %c0_33] : memref<4x32x32xbf16, #tpu.memory_space<vmem>>, vector<1x32x32xbf16>
    %45 = vector.shape_cast %44 : vector<1x32x32xbf16> to vector<32x32xbf16>
    %cst_34 = arith.constant dense<0.000000e+00> : vector<8x32xf32>
    %46 = tpu.matmul %38, %45, %cst_34 {dimension_numbers = #tpu.dot_dimension_numbers<[1], [0], [0], [1], [0, 0, 1, 1], [], []>} : vector<8x32xbf16>, vector<32x32xbf16>, vector<8x32xf32> -> vector<8x32xf32>
    %47 = arith.addf %43, %46 : vector<8x32xf32>
    %c0_35 = arith.constant 0 : index
    %c0_36 = arith.constant 0 : index
    %c0_37 = arith.constant 0 : index
    %48 = vector.load %arg12[%c0_35, %c0_36, %c0_37] : memref<4x32x32xbf16, #tpu.memory_space<vmem>>, vector<1x32x32xbf16>
    %49 = vector.shape_cast %48 : vector<1x32x32xbf16> to vector<32x32xbf16>
    %cst_38 = arith.constant dense<0.000000e+00> : vector<8x32xf32>
    %50 = tpu.matmul %39, %49, %cst_38 {dimension_numbers = #tpu.dot_dimension_numbers<[1], [0], [0], [1], [0, 0, 1, 1], [], []>} : vector<8x32xbf16>, vector<32x32xbf16>, vector<8x32xf32> -> vector<8x32xf32>
    %51 = arith.addf %47, %50 : vector<8x32xf32>
    %c0_39 = arith.constant 0 : index
    %c0_40 = arith.constant 0 : index
    %c0_41 = arith.constant 0 : index
    %52 = vector.load %arg13[%c0_39, %c0_40, %c0_41] : memref<4x1x32xf32, #tpu.memory_space<vmem>>, vector<1x1x32xf32>
    %53 = vector.shape_cast %52 : vector<1x1x32xf32> to vector<1x32xf32>
    %54 = vector.broadcast %53 : vector<1x32xf32> to vector<8x32xf32>
    %55 = arith.addf %51, %54 : vector<8x32xf32>
    %56 = arith.negf %55 : vector<8x32xf32>
    %57 = math.exp %56 : vector<8x32xf32>
    %cst_42 = arith.constant 1.000000e+00 : f32
    %58 = vector.broadcast %cst_42 : f32 to vector<8x32xf32>
    %59 = arith.addf %58, %57 : vector<8x32xf32>
    %60 = arith.divf %58, %59 : vector<8x32xf32>
    %c1_43 = arith.constant 1 : index
    %c0_44 = arith.constant 0 : index
    %c0_45 = arith.constant 0 : index
    %61 = vector.load %arg10[%c1_43, %c0_44, %c0_45] : memref<4x16x32xbf16, #tpu.memory_space<vmem>>, vector<1x16x32xbf16>
    %62 = vector.shape_cast %61 : vector<1x16x32xbf16> to vector<16x32xbf16>
    %cst_46 = arith.constant dense<0.000000e+00> : vector<8x32xf32>
    %63 = tpu.matmul %37, %62, %cst_46 {dimension_numbers = #tpu.dot_dimension_numbers<[1], [0], [0], [1], [0, 0, 1, 1], [], []>} : vector<8x16xbf16>, vector<16x32xbf16>, vector<8x32xf32> -> vector<8x32xf32>
    %c1_47 = arith.constant 1 : index
    %c0_48 = arith.constant 0 : index
    %c0_49 = arith.constant 0 : index
    %64 = vector.load %arg11[%c1_47, %c0_48, %c0_49] : memref<4x32x32xbf16, #tpu.memory_space<vmem>>, vector<1x32x32xbf16>
    %65 = vector.shape_cast %64 : vector<1x32x32xbf16> to vector<32x32xbf16>
    %cst_50 = arith.constant dense<0.000000e+00> : vector<8x32xf32>
    %66 = tpu.matmul %38, %65, %cst_50 {dimension_numbers = #tpu.dot_dimension_numbers<[1], [0], [0], [1], [0, 0, 1, 1], [], []>} : vector<8x32xbf16>, vector<32x32xbf16>, vector<8x32xf32> -> vector<8x32xf32>
    %67 = arith.addf %63, %66 : vector<8x32xf32>
    %c1_51 = arith.constant 1 : index
    %c0_52 = arith.constant 0 : index
    %c0_53 = arith.constant 0 : index
    %68 = vector.load %arg12[%c1_51, %c0_52, %c0_53] : memref<4x32x32xbf16, #tpu.memory_space<vmem>>, vector<1x32x32xbf16>
    %69 = vector.shape_cast %68 : vector<1x32x32xbf16> to vector<32x32xbf16>
    %cst_54 = arith.constant dense<0.000000e+00> : vector<8x32xf32>
    %70 = tpu.matmul %39, %69, %cst_54 {dimension_numbers = #tpu.dot_dimension_numbers<[1], [0], [0], [1], [0, 0, 1, 1], [], []>} : vector<8x32xbf16>, vector<32x32xbf16>, vector<8x32xf32> -> vector<8x32xf32>
    %71 = arith.addf %67, %70 : vector<8x32xf32>
    %c1_55 = arith.constant 1 : index
    %c0_56 = arith.constant 0 : index
    %c0_57 = arith.constant 0 : index
    %72 = vector.load %arg13[%c1_55, %c0_56, %c0_57] : memref<4x1x32xf32, #tpu.memory_space<vmem>>, vector<1x1x32xf32>
    %73 = vector.shape_cast %72 : vector<1x1x32xf32> to vector<1x32xf32>
    %74 = vector.broadcast %73 : vector<1x32xf32> to vector<8x32xf32>
    %75 = arith.addf %71, %74 : vector<8x32xf32>
    %76 = arith.negf %75 : vector<8x32xf32>
    %77 = math.exp %76 : vector<8x32xf32>
    %cst_58 = arith.constant 1.000000e+00 : f32
    %78 = vector.broadcast %cst_58 : f32 to vector<8x32xf32>
    %79 = arith.addf %78, %77 : vector<8x32xf32>
    %80 = arith.divf %78, %79 : vector<8x32xf32>
    %c2 = arith.constant 2 : index
    %c0_59 = arith.constant 0 : index
    %c0_60 = arith.constant 0 : index
    %81 = vector.load %arg10[%c2, %c0_59, %c0_60] : memref<4x16x32xbf16, #tpu.memory_space<vmem>>, vector<1x16x32xbf16>
    %82 = vector.shape_cast %81 : vector<1x16x32xbf16> to vector<16x32xbf16>
    %cst_61 = arith.constant dense<0.000000e+00> : vector<8x32xf32>
    %83 = tpu.matmul %37, %82, %cst_61 {dimension_numbers = #tpu.dot_dimension_numbers<[1], [0], [0], [1], [0, 0, 1, 1], [], []>} : vector<8x16xbf16>, vector<16x32xbf16>, vector<8x32xf32> -> vector<8x32xf32>
    %c2_62 = arith.constant 2 : index
    %c0_63 = arith.constant 0 : index
    %c0_64 = arith.constant 0 : index
    %84 = vector.load %arg11[%c2_62, %c0_63, %c0_64] : memref<4x32x32xbf16, #tpu.memory_space<vmem>>, vector<1x32x32xbf16>
    %85 = vector.shape_cast %84 : vector<1x32x32xbf16> to vector<32x32xbf16>
    %cst_65 = arith.constant dense<0.000000e+00> : vector<8x32xf32>
    %86 = tpu.matmul %38, %85, %cst_65 {dimension_numbers = #tpu.dot_dimension_numbers<[1], [0], [0], [1], [0, 0, 1, 1], [], []>} : vector<8x32xbf16>, vector<32x32xbf16>, vector<8x32xf32> -> vector<8x32xf32>
    %87 = arith.addf %83, %86 : vector<8x32xf32>
    %c2_66 = arith.constant 2 : index
    %c0_67 = arith.constant 0 : index
    %c0_68 = arith.constant 0 : index
    %88 = vector.load %arg12[%c2_66, %c0_67, %c0_68] : memref<4x32x32xbf16, #tpu.memory_space<vmem>>, vector<1x32x32xbf16>
    %89 = vector.shape_cast %88 : vector<1x32x32xbf16> to vector<32x32xbf16>
    %cst_69 = arith.constant dense<0.000000e+00> : vector<8x32xf32>
    %90 = tpu.matmul %39, %89, %cst_69 {dimension_numbers = #tpu.dot_dimension_numbers<[1], [0], [0], [1], [0, 0, 1, 1], [], []>} : vector<8x32xbf16>, vector<32x32xbf16>, vector<8x32xf32> -> vector<8x32xf32>
    %91 = arith.addf %87, %90 : vector<8x32xf32>
    %c2_70 = arith.constant 2 : index
    %c0_71 = arith.constant 0 : index
    %c0_72 = arith.constant 0 : index
    %92 = vector.load %arg13[%c2_70, %c0_71, %c0_72] : memref<4x1x32xf32, #tpu.memory_space<vmem>>, vector<1x1x32xf32>
    %93 = vector.shape_cast %92 : vector<1x1x32xf32> to vector<1x32xf32>
    %94 = vector.broadcast %93 : vector<1x32xf32> to vector<8x32xf32>
    %95 = arith.addf %91, %94 : vector<8x32xf32>
    %96 = math.tanh %95 : vector<8x32xf32>
    %c3 = arith.constant 3 : index
    %c0_73 = arith.constant 0 : index
    %c0_74 = arith.constant 0 : index
    %97 = vector.load %arg10[%c3, %c0_73, %c0_74] : memref<4x16x32xbf16, #tpu.memory_space<vmem>>, vector<1x16x32xbf16>
    %98 = vector.shape_cast %97 : vector<1x16x32xbf16> to vector<16x32xbf16>
    %cst_75 = arith.constant dense<0.000000e+00> : vector<8x32xf32>
    %99 = tpu.matmul %37, %98, %cst_75 {dimension_numbers = #tpu.dot_dimension_numbers<[1], [0], [0], [1], [0, 0, 1, 1], [], []>} : vector<8x16xbf16>, vector<16x32xbf16>, vector<8x32xf32> -> vector<8x32xf32>
    %c3_76 = arith.constant 3 : index
    %c0_77 = arith.constant 0 : index
    %c0_78 = arith.constant 0 : index
    %100 = vector.load %arg11[%c3_76, %c0_77, %c0_78] : memref<4x32x32xbf16, #tpu.memory_space<vmem>>, vector<1x32x32xbf16>
    %101 = vector.shape_cast %100 : vector<1x32x32xbf16> to vector<32x32xbf16>
    %cst_79 = arith.constant dense<0.000000e+00> : vector<8x32xf32>
    %102 = tpu.matmul %38, %101, %cst_79 {dimension_numbers = #tpu.dot_dimension_numbers<[1], [0], [0], [1], [0, 0, 1, 1], [], []>} : vector<8x32xbf16>, vector<32x32xbf16>, vector<8x32xf32> -> vector<8x32xf32>
    %103 = arith.addf %99, %102 : vector<8x32xf32>
    %c3_80 = arith.constant 3 : index
    %c0_81 = arith.constant 0 : index
    %c0_82 = arith.constant 0 : index
    %104 = vector.load %arg12[%c3_80, %c0_81, %c0_82] : memref<4x32x32xbf16, #tpu.memory_space<vmem>>, vector<1x32x32xbf16>
    %105 = vector.shape_cast %104 : vector<1x32x32xbf16> to vector<32x32xbf16>
    %cst_83 = arith.constant dense<0.000000e+00> : vector<8x32xf32>
    %106 = tpu.matmul %39, %105, %cst_83 {dimension_numbers = #tpu.dot_dimension_numbers<[1], [0], [0], [1], [0, 0, 1, 1], [], []>} : vector<8x32xbf16>, vector<32x32xbf16>, vector<8x32xf32> -> vector<8x32xf32>
    %107 = arith.addf %103, %106 : vector<8x32xf32>
    %c3_84 = arith.constant 3 : index
    %c0_85 = arith.constant 0 : index
    %c0_86 = arith.constant 0 : index
    %108 = vector.load %arg13[%c3_84, %c0_85, %c0_86] : memref<4x1x32xf32, #tpu.memory_space<vmem>>, vector<1x1x32xf32>
    %109 = vector.shape_cast %108 : vector<1x1x32xf32> to vector<1x32xf32>
    %110 = vector.broadcast %109 : vector<1x32xf32> to vector<8x32xf32>
    %111 = arith.addf %107, %110 : vector<8x32xf32>
    %112 = arith.negf %111 : vector<8x32xf32>
    %113 = math.exp %112 : vector<8x32xf32>
    %cst_87 = arith.constant 1.000000e+00 : f32
    %114 = vector.broadcast %cst_87 : f32 to vector<8x32xf32>
    %115 = arith.addf %114, %113 : vector<8x32xf32>
    %116 = arith.divf %114, %115 : vector<8x32xf32>
    %117 = arith.mulf %80, %6 : vector<8x32xf32>
    %118 = arith.mulf %60, %96 : vector<8x32xf32>
    %119 = arith.addf %117, %118 : vector<8x32xf32>
    %120 = math.tanh %119 : vector<8x32xf32>
    %121 = arith.mulf %116, %120 : vector<8x32xf32>
    %122 = arith.truncf %121 : vector<8x32xf32> to vector<8x32xbf16>
    %c0_88 = arith.constant 0 : index
    %c0_89 = arith.constant 0 : index
    %c0_90 = arith.constant 0 : index
    %123 = vector.load %arg14[%c0_88, %c0_89, %c0_90] : memref<4x32x32xbf16, #tpu.memory_space<vmem>>, vector<1x32x32xbf16>
    %124 = vector.shape_cast %123 : vector<1x32x32xbf16> to vector<32x32xbf16>
    %cst_91 = arith.constant dense<0.000000e+00> : vector<8x32xf32>
    %125 = tpu.matmul %122, %124, %cst_91 {dimension_numbers = #tpu.dot_dimension_numbers<[1], [0], [0], [1], [0, 0, 1, 1], [], []>} : vector<8x32xbf16>, vector<32x32xbf16>, vector<8x32xf32> -> vector<8x32xf32>
    %c0_92 = arith.constant 0 : index
    %c0_93 = arith.constant 0 : index
    %c0_94 = arith.constant 0 : index
    %126 = vector.load %arg15[%c0_92, %c0_93, %c0_94] : memref<4x32x32xbf16, #tpu.memory_space<vmem>>, vector<1x32x32xbf16>
    %127 = vector.shape_cast %126 : vector<1x32x32xbf16> to vector<32x32xbf16>
    %cst_95 = arith.constant dense<0.000000e+00> : vector<8x32xf32>
    %128 = tpu.matmul %40, %127, %cst_95 {dimension_numbers = #tpu.dot_dimension_numbers<[1], [0], [0], [1], [0, 0, 1, 1], [], []>} : vector<8x32xbf16>, vector<32x32xbf16>, vector<8x32xf32> -> vector<8x32xf32>
    %129 = arith.addf %125, %128 : vector<8x32xf32>
    %c0_96 = arith.constant 0 : index
    %c0_97 = arith.constant 0 : index
    %c0_98 = arith.constant 0 : index
    %130 = vector.load %arg16[%c0_96, %c0_97, %c0_98] : memref<4x1x32xf32, #tpu.memory_space<vmem>>, vector<1x1x32xf32>
    %131 = vector.shape_cast %130 : vector<1x1x32xf32> to vector<1x32xf32>
    %132 = vector.broadcast %131 : vector<1x32xf32> to vector<8x32xf32>
    %133 = arith.addf %129, %132 : vector<8x32xf32>
    %134 = arith.negf %133 : vector<8x32xf32>
    %135 = math.exp %134 : vector<8x32xf32>
    %cst_99 = arith.constant 1.000000e+00 : f32
    %136 = vector.broadcast %cst_99 : f32 to vector<8x32xf32>
    %137 = arith.addf %136, %135 : vector<8x32xf32>
    %138 = arith.divf %136, %137 : vector<8x32xf32>
    %c1_100 = arith.constant 1 : index
    %c0_101 = arith.constant 0 : index
    %c0_102 = arith.constant 0 : index
    %139 = vector.load %arg14[%c1_100, %c0_101, %c0_102] : memref<4x32x32xbf16, #tpu.memory_space<vmem>>, vector<1x32x32xbf16>
    %140 = vector.shape_cast %139 : vector<1x32x32xbf16> to vector<32x32xbf16>
    %cst_103 = arith.constant dense<0.000000e+00> : vector<8x32xf32>
    %141 = tpu.matmul %122, %140, %cst_103 {dimension_numbers = #tpu.dot_dimension_numbers<[1], [0], [0], [1], [0, 0, 1, 1], [], []>} : vector<8x32xbf16>, vector<32x32xbf16>, vector<8x32xf32> -> vector<8x32xf32>
    %c1_104 = arith.constant 1 : index
    %c0_105 = arith.constant 0 : index
    %c0_106 = arith.constant 0 : index
    %142 = vector.load %arg15[%c1_104, %c0_105, %c0_106] : memref<4x32x32xbf16, #tpu.memory_space<vmem>>, vector<1x32x32xbf16>
    %143 = vector.shape_cast %142 : vector<1x32x32xbf16> to vector<32x32xbf16>
    %cst_107 = arith.constant dense<0.000000e+00> : vector<8x32xf32>
    %144 = tpu.matmul %40, %143, %cst_107 {dimension_numbers = #tpu.dot_dimension_numbers<[1], [0], [0], [1], [0, 0, 1, 1], [], []>} : vector<8x32xbf16>, vector<32x32xbf16>, vector<8x32xf32> -> vector<8x32xf32>
    %145 = arith.addf %141, %144 : vector<8x32xf32>
    %c1_108 = arith.constant 1 : index
    %c0_109 = arith.constant 0 : index
    %c0_110 = arith.constant 0 : index
    %146 = vector.load %arg16[%c1_108, %c0_109, %c0_110] : memref<4x1x32xf32, #tpu.memory_space<vmem>>, vector<1x1x32xf32>
    %147 = vector.shape_cast %146 : vector<1x1x32xf32> to vector<1x32xf32>
    %148 = vector.broadcast %147 : vector<1x32xf32> to vector<8x32xf32>
    %149 = arith.addf %145, %148 : vector<8x32xf32>
    %150 = arith.negf %149 : vector<8x32xf32>
    %151 = math.exp %150 : vector<8x32xf32>
    %cst_111 = arith.constant 1.000000e+00 : f32
    %152 = vector.broadcast %cst_111 : f32 to vector<8x32xf32>
    %153 = arith.addf %152, %151 : vector<8x32xf32>
    %154 = arith.divf %152, %153 : vector<8x32xf32>
    %c2_112 = arith.constant 2 : index
    %c0_113 = arith.constant 0 : index
    %c0_114 = arith.constant 0 : index
    %155 = vector.load %arg14[%c2_112, %c0_113, %c0_114] : memref<4x32x32xbf16, #tpu.memory_space<vmem>>, vector<1x32x32xbf16>
    %156 = vector.shape_cast %155 : vector<1x32x32xbf16> to vector<32x32xbf16>
    %cst_115 = arith.constant dense<0.000000e+00> : vector<8x32xf32>
    %157 = tpu.matmul %122, %156, %cst_115 {dimension_numbers = #tpu.dot_dimension_numbers<[1], [0], [0], [1], [0, 0, 1, 1], [], []>} : vector<8x32xbf16>, vector<32x32xbf16>, vector<8x32xf32> -> vector<8x32xf32>
    %c2_116 = arith.constant 2 : index
    %c0_117 = arith.constant 0 : index
    %c0_118 = arith.constant 0 : index
    %158 = vector.load %arg15[%c2_116, %c0_117, %c0_118] : memref<4x32x32xbf16, #tpu.memory_space<vmem>>, vector<1x32x32xbf16>
    %159 = vector.shape_cast %158 : vector<1x32x32xbf16> to vector<32x32xbf16>
    %cst_119 = arith.constant dense<0.000000e+00> : vector<8x32xf32>
    %160 = tpu.matmul %40, %159, %cst_119 {dimension_numbers = #tpu.dot_dimension_numbers<[1], [0], [0], [1], [0, 0, 1, 1], [], []>} : vector<8x32xbf16>, vector<32x32xbf16>, vector<8x32xf32> -> vector<8x32xf32>
    %161 = arith.addf %157, %160 : vector<8x32xf32>
    %c2_120 = arith.constant 2 : index
    %c0_121 = arith.constant 0 : index
    %c0_122 = arith.constant 0 : index
    %162 = vector.load %arg16[%c2_120, %c0_121, %c0_122] : memref<4x1x32xf32, #tpu.memory_space<vmem>>, vector<1x1x32xf32>
    %163 = vector.shape_cast %162 : vector<1x1x32xf32> to vector<1x32xf32>
    %164 = vector.broadcast %163 : vector<1x32xf32> to vector<8x32xf32>
    %165 = arith.addf %161, %164 : vector<8x32xf32>
    %166 = math.tanh %165 : vector<8x32xf32>
    %c3_123 = arith.constant 3 : index
    %c0_124 = arith.constant 0 : index
    %c0_125 = arith.constant 0 : index
    %167 = vector.load %arg14[%c3_123, %c0_124, %c0_125] : memref<4x32x32xbf16, #tpu.memory_space<vmem>>, vector<1x32x32xbf16>
    %168 = vector.shape_cast %167 : vector<1x32x32xbf16> to vector<32x32xbf16>
    %cst_126 = arith.constant dense<0.000000e+00> : vector<8x32xf32>
    %169 = tpu.matmul %122, %168, %cst_126 {dimension_numbers = #tpu.dot_dimension_numbers<[1], [0], [0], [1], [0, 0, 1, 1], [], []>} : vector<8x32xbf16>, vector<32x32xbf16>, vector<8x32xf32> -> vector<8x32xf32>
    %c3_127 = arith.constant 3 : index
    %c0_128 = arith.constant 0 : index
    %c0_129 = arith.constant 0 : index
    %170 = vector.load %arg15[%c3_127, %c0_128, %c0_129] : memref<4x32x32xbf16, #tpu.memory_space<vmem>>, vector<1x32x32xbf16>
    %171 = vector.shape_cast %170 : vector<1x32x32xbf16> to vector<32x32xbf16>
    %cst_130 = arith.constant dense<0.000000e+00> : vector<8x32xf32>
    %172 = tpu.matmul %40, %171, %cst_130 {dimension_numbers = #tpu.dot_dimension_numbers<[1], [0], [0], [1], [0, 0, 1, 1], [], []>} : vector<8x32xbf16>, vector<32x32xbf16>, vector<8x32xf32> -> vector<8x32xf32>
    %173 = arith.addf %169, %172 : vector<8x32xf32>
    %c3_131 = arith.constant 3 : index
    %c0_132 = arith.constant 0 : index
    %c0_133 = arith.constant 0 : index
    %174 = vector.load %arg16[%c3_131, %c0_132, %c0_133] : memref<4x1x32xf32, #tpu.memory_space<vmem>>, vector<1x1x32xf32>
    %175 = vector.shape_cast %174 : vector<1x1x32xf32> to vector<1x32xf32>
    %176 = vector.broadcast %175 : vector<1x32xf32> to vector<8x32xf32>
    %177 = arith.addf %173, %176 : vector<8x32xf32>
    %178 = arith.negf %177 : vector<8x32xf32>
    %179 = math.exp %178 : vector<8x32xf32>
    %cst_134 = arith.constant 1.000000e+00 : f32
    %180 = vector.broadcast %cst_134 : f32 to vector<8x32xf32>
    %181 = arith.addf %180, %179 : vector<8x32xf32>
    %182 = arith.divf %180, %181 : vector<8x32xf32>
    %183 = arith.mulf %154, %8 : vector<8x32xf32>
    %184 = arith.mulf %138, %166 : vector<8x32xf32>
    %185 = arith.addf %183, %184 : vector<8x32xf32>
    %186 = math.tanh %185 : vector<8x32xf32>
    %187 = arith.mulf %182, %186 : vector<8x32xf32>
    %c0_135 = arith.constant 0 : index
    %c0_136 = arith.constant 0 : index
    %188 = vector.load %arg6[%c0_135, %c0_136] : memref<8x128xf32, #tpu.memory_space<vmem>>, vector<8x128xf32>
    %189 = arith.truncf %187 : vector<8x32xf32> to vector<8x32xbf16>
    %c0_137 = arith.constant 0 : index
    %c0_138 = arith.constant 0 : index
    %190 = vector.load %arg8[%c0_137, %c0_138] : memref<32x32xbf16, #tpu.memory_space<vmem>>, vector<32x32xbf16>
    %cst_139 = arith.constant dense<0.000000e+00> : vector<8x32xf32>
    %191 = tpu.matmul %189, %190, %cst_139 {dimension_numbers = #tpu.dot_dimension_numbers<[1], [0], [0], [1], [0, 0, 1, 1], [], []>} : vector<8x32xbf16>, vector<32x32xbf16>, vector<8x32xf32> -> vector<8x32xf32>
    %192 = vector.shape_cast %191 : vector<8x32xf32> to vector<8x1x32xf32>
    %193 = arith.truncf %192 : vector<8x1x32xf32> to vector<8x1x32xbf16>
    "tpu.trace_start"() <{level = 10 : i32, message = "bqh,bth->bqt"}> : () -> ()
    %cst_140 = arith.constant dense<0.000000e+00> : vector<8x1x128xf32>
    %194 = tpu.matmul %193, %10, %cst_140 {dimension_numbers = #tpu.dot_dimension_numbers<[2], [2], [1], [1], [0, 0, 0, 1, 1, 1], [0], [0]>} : vector<8x1x32xbf16>, vector<8x128x32xbf16>, vector<8x1x128xf32> -> vector<8x1x128xf32>
    "tpu.trace_stop"() : () -> ()
    %cst_141 = arith.constant dense<0xFF800000> : vector<8x1xf32>
    %195 = vector.multi_reduction <maximumf>, %194, %cst_141 [2] : vector<8x1x128xf32> to vector<8x1xf32>
    %196 = vector.shape_cast %195 : vector<8x1xf32> to vector<8x1x1xf32>
    %197 = vector.broadcast %196 : vector<8x1x1xf32> to vector<8x1x128xf32>
    %198 = arith.subf %194, %197 : vector<8x1x128xf32>
    %199 = math.exp %198 : vector<8x1x128xf32>
    %200 = vector.shape_cast %188 : vector<8x128xf32> to vector<8x1x128xf32>
    %201 = arith.mulf %199, %200 : vector<8x1x128xf32>
    %cst_142 = arith.constant dense<0.000000e+00> : vector<8x1xf32>
    %202 = vector.multi_reduction <add>, %201, %cst_142 [2] : vector<8x1x128xf32> to vector<8x1xf32>
    %203 = vector.shape_cast %202 : vector<8x1xf32> to vector<8x1x1xf32>
    %cst_143 = arith.constant 9.99999982E-14 : f32
    %204 = vector.broadcast %cst_143 : f32 to vector<8x1x1xf32>
    %205 = arith.addf %203, %204 : vector<8x1x1xf32>
    %206 = tpu.reciprocal %205 {approx = true} : vector<8x1x1xf32> -> vector<8x1x1xf32>
    %207 = vector.broadcast %206 : vector<8x1x1xf32> to vector<8x1x128xf32>
    %208 = arith.mulf %201, %207 : vector<8x1x128xf32>
    %209 = arith.truncf %208 : vector<8x1x128xf32> to vector<8x1x128xbf16>
    "tpu.trace_start"() <{level = 10 : i32, message = "bqt,bth->bqh"}> : () -> ()
    %cst_144 = arith.constant dense<0.000000e+00> : vector<8x1x32xf32>
    %210 = tpu.matmul %209, %10, %cst_144 {dimension_numbers = #tpu.dot_dimension_numbers<[2], [1], [1], [2], [0, 0, 0, 1, 1, 2], [0], [0]>} : vector<8x1x128xbf16>, vector<8x128x32xbf16>, vector<8x1x32xf32> -> vector<8x1x32xf32>
    "tpu.trace_stop"() : () -> ()
    %211 = vector.shape_cast %208 : vector<8x1x128xf32> to vector<8x128xf32>
    %212 = vector.shape_cast %210 : vector<8x1x32xf32> to vector<8x32xf32>
    %c0_145 = arith.constant 0 : index
    %c0_146 = arith.constant 0 : index
    %213 = vector.load %arg17[%c0_145, %c0_146] : memref<1x16xf32, #tpu.memory_space<vmem>>, vector<1x16xf32>
    %214 = vector.broadcast %213 : vector<1x16xf32> to vector<8x16xf32>
    %215 = arith.mulf %0, %214 : vector<8x16xf32>
    %cst_147 = arith.constant dense<0.000000e+00> : vector<8xf32>
    %216 = vector.multi_reduction <add>, %215, %cst_147 [1] : vector<8x16xf32> to vector<8xf32>
    %217 = vector.shape_cast %216 : vector<8xf32> to vector<8x1xf32>
    %c0_148 = arith.constant 0 : index
    %c0_149 = arith.constant 0 : index
    %218 = vector.load %arg18[%c0_148, %c0_149] : memref<1x32xf32, #tpu.memory_space<vmem>>, vector<1x32xf32>
    %219 = vector.broadcast %218 : vector<1x32xf32> to vector<8x32xf32>
    %220 = arith.mulf %36, %219 : vector<8x32xf32>
    %cst_150 = arith.constant dense<0.000000e+00> : vector<8xf32>
    %221 = vector.multi_reduction <add>, %220, %cst_150 [1] : vector<8x32xf32> to vector<8xf32>
    %222 = vector.shape_cast %221 : vector<8xf32> to vector<8x1xf32>
    %223 = arith.addf %217, %222 : vector<8x1xf32>
    %c0_151 = arith.constant 0 : index
    %c0_152 = arith.constant 0 : index
    %224 = vector.load %arg19[%c0_151, %c0_152] : memref<1x32xf32, #tpu.memory_space<vmem>>, vector<1x32xf32>
    %225 = vector.broadcast %224 : vector<1x32xf32> to vector<8x32xf32>
    %226 = arith.mulf %212, %225 : vector<8x32xf32>
    %cst_153 = arith.constant dense<0.000000e+00> : vector<8xf32>
    %227 = vector.multi_reduction <add>, %226, %cst_153 [1] : vector<8x32xf32> to vector<8xf32>
    %228 = vector.shape_cast %227 : vector<8xf32> to vector<8x1xf32>
    %229 = arith.addf %223, %228 : vector<8x1xf32>
    %c0_154 = arith.constant 0 : index
    %c0_155 = arith.constant 0 : index
    %230 = vector.load %arg20[%c0_154, %c0_155] : memref<1x32xf32, #tpu.memory_space<vmem>>, vector<1x32xf32>
    %231 = vector.broadcast %230 : vector<1x32xf32> to vector<8x32xf32>
    %232 = arith.mulf %187, %231 : vector<8x32xf32>
    %cst_156 = arith.constant dense<0.000000e+00> : vector<8xf32>
    %233 = vector.multi_reduction <add>, %232, %cst_156 [1] : vector<8x32xf32> to vector<8xf32>
    %234 = vector.shape_cast %233 : vector<8xf32> to vector<8x1xf32>
    %235 = arith.addf %229, %234 : vector<8x1xf32>
    %236 = arith.negf %235 : vector<8x1xf32>
    %237 = math.exp %236 : vector<8x1xf32>
    %cst_157 = arith.constant 1.000000e+00 : f32
    %238 = vector.broadcast %cst_157 : f32 to vector<8x1xf32>
    %239 = arith.addf %238, %237 : vector<8x1xf32>
    %240 = arith.divf %238, %239 : vector<8x1xf32>
    %c0_158 = arith.constant 0 : index
    %c0_159 = arith.constant 0 : index
    %c0_160 = arith.constant 0 : index
    %241 = vector.load %arg21[%c0_158, %c0_159, %c0_160] : memref<2x8x32xf32, #tpu.memory_space<vmem>>, vector<1x8x32xf32>
    %242 = vector.shape_cast %241 : vector<1x8x32xf32> to vector<8x32xf32>
    %243 = vector.shape_cast %121 : vector<8x32xf32> to vector<1x8x32xf32>
    tpu.vector_store %arg21[%c0_158, %c0_159, %c0_160], %243 {strides = array<i32>} : memref<2x8x32xf32, #tpu.memory_space<vmem>>, vector<1x8x32xf32>,
    %c1_161 = arith.constant 1 : index
    %c0_162 = arith.constant 0 : index
    %c0_163 = arith.constant 0 : index
    %244 = vector.load %arg21[%c1_161, %c0_162, %c0_163] : memref<2x8x32xf32, #tpu.memory_space<vmem>>, vector<1x8x32xf32>
    %245 = vector.shape_cast %244 : vector<1x8x32xf32> to vector<8x32xf32>
    %246 = vector.shape_cast %187 : vector<8x32xf32> to vector<1x8x32xf32>
    tpu.vector_store %arg21[%c1_161, %c0_162, %c0_163], %246 {strides = array<i32>} : memref<2x8x32xf32, #tpu.memory_space<vmem>>, vector<1x8x32xf32>,
    %c0_164 = arith.constant 0 : index
    %c0_165 = arith.constant 0 : index
    %c0_166 = arith.constant 0 : index
    %247 = vector.load %arg22[%c0_164, %c0_165, %c0_166] : memref<2x8x32xf32, #tpu.memory_space<vmem>>, vector<1x8x32xf32>
    %248 = vector.shape_cast %247 : vector<1x8x32xf32> to vector<8x32xf32>
    %249 = vector.shape_cast %119 : vector<8x32xf32> to vector<1x8x32xf32>
    tpu.vector_store %arg22[%c0_164, %c0_165, %c0_166], %249 {strides = array<i32>} : memref<2x8x32xf32, #tpu.memory_space<vmem>>, vector<1x8x32xf32>,
    %c1_167 = arith.constant 1 : index
    %c0_168 = arith.constant 0 : index
    %c0_169 = arith.constant 0 : index
    %250 = vector.load %arg22[%c1_167, %c0_168, %c0_169] : memref<2x8x32xf32, #tpu.memory_space<vmem>>, vector<1x8x32xf32>
    %251 = vector.shape_cast %250 : vector<1x8x32xf32> to vector<8x32xf32>
    %252 = vector.shape_cast %185 : vector<8x32xf32> to vector<1x8x32xf32>
    tpu.vector_store %arg22[%c1_167, %c0_168, %c0_169], %252 {strides = array<i32>} : memref<2x8x32xf32, #tpu.memory_space<vmem>>, vector<1x8x32xf32>,
    %c0_170 = arith.constant 0 : index
    %c0_171 = arith.constant 0 : index
    %253 = vector.load %arg23[%c0_170, %c0_171] : memref<8x128xf32, #tpu.memory_space<vmem>>, vector<8x128xf32>
    tpu.vector_store %arg23[%c0_170, %c0_171], %211 {strides = array<i32>} : memref<8x128xf32, #tpu.memory_space<vmem>>, vector<8x128xf32>,
    %c0_172 = arith.constant 0 : index
    %c0_173 = arith.constant 0 : index
    %254 = vector.load %arg24[%c0_172, %c0_173] : memref<8x32xf32, #tpu.memory_space<vmem>>, vector<8x32xf32>
    tpu.vector_store %arg24[%c0_172, %c0_173], %212 {strides = array<i32>} : memref<8x32xf32, #tpu.memory_space<vmem>>, vector<8x32xf32>,
    %255 = vector.shape_cast %240 : vector<8x1xf32> to vector<8x1xf32>
    %256 = vector.broadcast %255 : vector<8x1xf32> to vector<8x128xf32>
    %c0_174 = arith.constant 0 : index
    %c0_175 = arith.constant 0 : index
    %257 = vector.load %arg25[%c0_174, %c0_175] : memref<8x128xf32, #tpu.memory_space<vmem>>, vector<8x128xf32>
    tpu.vector_store %arg25[%c0_174, %c0_175], %256 {strides = array<i32>} : memref<8x128xf32, #tpu.memory_space<vmem>>, vector<8x128xf32>,
    return
  }
  func.func @transform_0(%arg0: i32) -> (i32, i32) {
    %c0_i32 = arith.constant 0 : i32
    %c0_i32_0 = arith.constant 0 : i32
    return %arg0, %c0_i32 : i32, i32
  }
  func.func @transform_1(%arg0: i32) -> (i32, i32, i32) {
    %c0_i32 = arith.constant 0 : i32
    %c0_i32_0 = arith.constant 0 : i32
    %c0_i32_1 = arith.constant 0 : i32
    return %c0_i32, %arg0, %c0_i32_0 : i32, i32, i32
  }
  func.func @transform_2(%arg0: i32) -> (i32, i32, i32) {
    %c0_i32 = arith.constant 0 : i32
    %c0_i32_0 = arith.constant 0 : i32
    %c0_i32_1 = arith.constant 0 : i32
    return %c0_i32, %arg0, %c0_i32_0 : i32, i32, i32
  }
  func.func @transform_3(%arg0: i32) -> (i32, i32, i32) {
    %c0_i32 = arith.constant 0 : i32
    %c0_i32_0 = arith.constant 0 : i32
    %c0_i32_1 = arith.constant 0 : i32
    return %arg0, %c0_i32, %c0_i32_0 : i32, i32, i32
  }
  func.func @transform_4(%arg0: i32) -> (i32, i32, i32) {
    %c0_i32 = arith.constant 0 : i32
    %c0_i32_0 = arith.constant 0 : i32
    %c0_i32_1 = arith.constant 0 : i32
    return %arg0, %c0_i32, %c0_i32_0 : i32, i32, i32
  }
  func.func @transform_5(%arg0: i32) -> (i32, i32) {
    %c0_i32 = arith.constant 0 : i32
    %c0_i32_0 = arith.constant 0 : i32
    return %arg0, %c0_i32 : i32, i32
  }
  func.func @transform_6(%arg0: i32) -> (i32, i32) {
    %c0_i32 = arith.constant 0 : i32
    %c0_i32_0 = arith.constant 0 : i32
    return %arg0, %c0_i32 : i32, i32
  }
  func.func @transform_7(%arg0: i32) -> (i32, i32) {
    %c0_i32 = arith.constant 0 : i32
    %c0_i32_0 = arith.constant 0 : i32
    %c0_i32_1 = arith.constant 0 : i32
    return %c0_i32, %c0_i32_0 : i32, i32
  }
  func.func @transform_8(%arg0: i32) -> (i32, i32) {
    %c0_i32 = arith.constant 0 : i32
    %c0_i32_0 = arith.constant 0 : i32
    %c0_i32_1 = arith.constant 0 : i32
    return %c0_i32, %c0_i32_0 : i32, i32
  }
  func.func @transform_9(%arg0: i32) -> (i32, i32, i32) {
    %c0_i32 = arith.constant 0 : i32
    %c0_i32_0 = arith.constant 0 : i32
    %c0_i32_1 = arith.constant 0 : i32
    %c0_i32_2 = arith.constant 0 : i32
    return %c0_i32, %c0_i32_0, %c0_i32_1 : i32, i32, i32
  }
  func.func @transform_10(%arg0: i32) -> (i32, i32, i32) {
    %c0_i32 = arith.constant 0 : i32
    %c0_i32_0 = arith.constant 0 : i32
    %c0_i32_1 = arith.constant 0 : i32
    %c0_i32_2 = arith.constant 0 : i32
    return %c0_i32, %c0_i32_0, %c0_i32_1 : i32, i32, i32
  }
  func.func @transform_11(%arg0: i32) -> (i32, i32, i32) {
    %c0_i32 = arith.constant 0 : i32
    %c0_i32_0 = arith.constant 0 : i32
    %c0_i32_1 = arith.constant 0 : i32
    %c0_i32_2 = arith.constant 0 : i32
    return %c0_i32, %c0_i32_0, %c0_i32_1 : i32, i32, i32
  }
  func.func @transform_12(%arg0: i32) -> (i32, i32, i32) {
    %c0_i32 = arith.constant 0 : i32
    %c0_i32_0 = arith.constant 0 : i32
    %c0_i32_1 = arith.constant 0 : i32
    %c0_i32_2 = arith.constant 0 : i32
    return %c0_i32, %c0_i32_0, %c0_i32_1 : i32, i32, i32
  }
  func.func @transform_13(%arg0: i32) -> (i32, i32, i32) {
    %c0_i32 = arith.constant 0 : i32
    %c0_i32_0 = arith.constant 0 : i32
    %c0_i32_1 = arith.constant 0 : i32
    %c0_i32_2 = arith.constant 0 : i32
    return %c0_i32, %c0_i32_0, %c0_i32_1 : i32, i32, i32
  }
  func.func @transform_14(%arg0: i32) -> (i32, i32, i32) {
    %c0_i32 = arith.constant 0 : i32
    %c0_i32_0 = arith.constant 0 : i32
    %c0_i32_1 = arith.constant 0 : i32
    %c0_i32_2 = arith.constant 0 : i32
    return %c0_i32, %c0_i32_0, %c0_i32_1 : i32, i32, i32
  }
  func.func @transform_15(%arg0: i32) -> (i32, i32, i32) {
    %c0_i32 = arith.constant 0 : i32
    %c0_i32_0 = arith.constant 0 : i32
    %c0_i32_1 = arith.constant 0 : i32
    %c0_i32_2 = arith.constant 0 : i32
    return %c0_i32, %c0_i32_0, %c0_i32_1 : i32, i32, i32
  }
  func.func @transform_16(%arg0: i32) -> (i32, i32) {
    %c0_i32 = arith.constant 0 : i32
    %c0_i32_0 = arith.constant 0 : i32
    %c0_i32_1 = arith.constant 0 : i32
    return %c0_i32, %c0_i32_0 : i32, i32
  }
  func.func @transform_17(%arg0: i32) -> (i32, i32) {
    %c0_i32 = arith.constant 0 : i32
    %c0_i32_0 = arith.constant 0 : i32
    %c0_i32_1 = arith.constant 0 : i32
    return %c0_i32, %c0_i32_0 : i32, i32
  }
  func.func @transform_18(%arg0: i32) -> (i32, i32) {
    %c0_i32 = arith.constant 0 : i32
    %c0_i32_0 = arith.constant 0 : i32
    %c0_i32_1 = arith.constant 0 : i32
    return %c0_i32, %c0_i32_0 : i32, i32
  }
  func.func @transform_19(%arg0: i32) -> (i32, i32) {
    %c0_i32 = arith.constant 0 : i32
    %c0_i32_0 = arith.constant 0 : i32
    %c0_i32_1 = arith.constant 0 : i32
    return %c0_i32, %c0_i32_0 : i32, i32
  }
  func.func @transform_20(%arg0: i32) -> (i32, i32, i32) {
    %c0_i32 = arith.constant 0 : i32
    %c0_i32_0 = arith.constant 0 : i32
    %c0_i32_1 = arith.constant 0 : i32
    return %c0_i32, %arg0, %c0_i32_0 : i32, i32, i32
  }
  func.func @transform_21(%arg0: i32) -> (i32, i32, i32) {
    %c0_i32 = arith.constant 0 : i32
    %c0_i32_0 = arith.constant 0 : i32
    %c0_i32_1 = arith.constant 0 : i32
    return %c0_i32, %arg0, %c0_i32_0 : i32, i32, i32
  }
  func.func @transform_22(%arg0: i32) -> (i32, i32) {
    %c0_i32 = arith.constant 0 : i32
    %c0_i32_0 = arith.constant 0 : i32
    return %arg0, %c0_i32 : i32, i32
  }
  func.func @transform_23(%arg0: i32) -> (i32, i32) {
    %c0_i32 = arith.constant 0 : i32
    %c0_i32_0 = arith.constant 0 : i32
    return %arg0, %c0_i32 : i32, i32
  }
  func.func @transform_24(%arg0: i32) -> (i32, i32) {
    %c0_i32 = arith.constant 0 : i32
    %c0_i32_0 = arith.constant 0 : i32
    return %arg0, %c0_i32 : i32, i32
  }
}

</mosaic_0001>

<bundles_post_ra>
// kernel: scpn_decode_step.1
= control target key start
LH: loop header
LB: loop body
LE: loop exit
PB: predicated region body
PF: predicated region fallthrough
CT: control target
= control target key end

     0   :  { %vm608_vm0 = vcmask 261120   ;;  %vm1288_vm1 = vcmask 1040384   ;;  %vm1672_vm2 = vcmask 130048   ;;  %vm1617_vm3 = vcmask 1041409   ;;  %s6035_s8 = inlined_call_operand.vmem [shape: bf16[32,32], index: 8, kind: input, shape index: {}]   ;;  %s6036_s1 = inlined_call_operand.vmem [shape: f32[2,8,32], index: 1, kind: input, shape index: {}, may-alias: {1,20}]   ;;  %s6037_s4 = inlined_call_operand.vmem [shape: f32[8,128,32], index: 4, kind: input, shape index: {}]   ;;  %s6038_s6 = inlined_call_operand.vmem [shape: f32[8,128], index: 6, kind: input, shape index: {}]   ;;  %s6039_s17 = inlined_call_operand.vmem [shape: f32[1,32], index: 17, kind: input, shape index: {}]   ;;  %s6040_s9 = inlined_call_operand.vmem [shape: bf16[4,16,32], index: 9, kind: input, shape index: {}]   ;;  %s6041_s0 = inlined_call_operand.vmem [shape: f32[8,16], index: 0, kind: input, shape index: {}]   ;;  %s6042_s11 = inlined_call_operand.vmem [shape: bf16[4,32,32], index: 11, kind: input, shape index: {}]   ;;  %s6043_s10 = inlined_call_operand.vmem [shape: bf16[4,32,32], index: 10, kind: input, shape index: {}]   ;;  %s6044_s12 = inlined_call_operand.vmem [shape: f32[4,1,32], index: 12, kind: input, shape index: {}]   ;;  %s6045_s14 = inlined_call_operand.vmem [shape: bf16[4,32,32], index: 14, kind: input, shape index: {}]   ;;  %s6046_s13 = inlined_call_operand.vmem [shape: bf16[4,32,32], index: 13, kind: input, shape index: {}]   ;;  %s6047_s15 = inlined_call_operand.vmem [shape: f32[4,1,32], index: 15, kind: input, shape index: {}]   ;;  %s6048_s2 = inlined_call_operand.vmem [shape: f32[2,8,32], index: 2, kind: input, shape index: {}, may-alias: {2,21}]   ;;  %s6049_s21 = inlined_call_operand.vmem [shape: f32[2,8,32], index: 21, kind: output, shape index: {1}, may-alias: {2,21}]   ;;  %s6050_s20 = inlined_call_operand.vmem [shape: f32[2,8,32], index: 20, kind: output, shape index: {0}, may-alias: {1,20}]   ;;  %s6051_s19 = inlined_call_operand.vmem [shape: f32[1,32], index: 19, kind: input, shape index: {}]   ;;  %s6052_s7 = inlined_call_operand.vmem [shape: bf16[32,32], index: 7, kind: input, shape index: {}]   ;;  %s6053_s3 = inlined_call_operand.vmem [shape: f32[8,128,32], index: 3, kind: input, shape index: {}]   ;;  %s6054_s16 = inlined_call_operand.vmem [shape: f32[1,16], index: 16, kind: input, shape index: {}]   ;;  %s6055_s5 = inlined_call_operand.vmem [shape: f32[8,128], index: 5, kind: input, shape index: {}]   ;;  %s6056_s18 = inlined_call_operand.vmem [shape: f32[1,32], index: 18, kind: input, shape index: {}]   ;;  %s6057_s22 = inlined_call_operand.vmem [shape: f32[8,128], index: 22, kind: output, shape index: {2}]   ;;  %s6058_s23 = inlined_call_operand.vmem [shape: f32[8,32], index: 23, kind: output, shape index: {3}]   ;;  %s6059_s24 = inlined_call_operand.vmem [shape: f32[8,128], index: 24, kind: output, shape index: {4}]  }
   0x1   :  { %6108 = sst [smem:[#allocation22_spill]] %s6035_s8  ;;  %vm1620_vm4 = vcmask 1042434   ;;  %vm1623_vm5 = vcmask 1043459   ;;  %vm1626_vm6 = vcmask 1044484   ;;  %vm1629_vm7 = vcmask 1045509  }
   0x2   :  { %6109 = sst [smem:[#allocation23_spill]] %s6036_s1  ;;  %vm6088_vm8 = vcmask 1046534   ;;  %vm6087_vm9 = vcmask 1047559  }
   0x3   :  { %6110 = sst [smem:[#allocation24_spill]] %s6037_s4 }
   0x4   :  { %6111 = sst [smem:[#allocation25_spill]] %s6038_s6 }
   0x5   :  { %6112 = sst [smem:[#allocation26_spill]] %s6039_s17 }
   0x6   :  { %6113 = sst [smem:[#allocation27_spill]] %s6040_s9 }
   0x7   :  { %6114 = sst [smem:[#allocation28_spill]] %s6041_s0 }
   0x8   :  { %6115 = sst [smem:[#allocation29_spill]] %s6042_s11 }
   0x9   :  { %6116 = sst [smem:[#allocation30_spill]] %s6043_s10 }
   0xa   :  { %s6117_s27 = sld [smem:[#allocation22_spill]] }
   0xb   :  { %s6118_s6 = sld [smem:[#allocation23_spill]] }
   0xc   :  { %s6119_s8 = sld [smem:[#allocation24_spill]] }
   0xd   :  { %s6157_s0 = sld [smem:[#allocation25_spill]] }
   0xe   :  { %s6158_s11 = sld [smem:[#allocation27_spill]] }
   0xf   :  { %s6159_s10 = sld [smem:[#allocation28_spill]] }
  0x10   :  { %v3836_v0 = vld [vmem:[%s6117_s27 + $0x8] sm:$0xff]  ;;  %v3835_v1 = vld [vmem:[%s6117_s27] sm:$0xff]  ;;  %s6160_s9 = sld [smem:[#allocation29_spill]] }
  0x11   :  { %v3566_v2 = vld [vmem:[%s6118_s6 + $0x8] sm:$0xff]  ;;  %618 = vmatpush.bf16.msra.mxu0 %v3836_v0  ;;  %s6161_s1 = sld [smem:[#allocation30_spill]] }
  0x12   :  { %v348_v3 = vld [vmem:[%s6119_s8 + $0x70] sm:$0xff]  ;;  %v349_v4 = vld [vmem:[%s6119_s8 + $0x78] sm:$0xff]  ;;  %v4140_v12 = vpack.c.bf16 %v3566_v2, %v3566_v2  ;;  %v346_v18 = vld [vmem:[%s6119_s8 + $0x60] sm:$0xff]  ;;  %s6162_s30 = sld [smem:[#allocation26_spill]] }
  0x13   :  { %v364_v5 = vld [vmem:[%s6119_s8 + $0xf0] sm:$0xff]  ;;  %v476_v6 = vpack.c.bf16 %v348_v3, %v348_v3  ;;  %v477_v7 = vpack.c.bf16 %v349_v4, %v349_v4  ;;  %v365_v8 = vld [vmem:[%s6119_s8 + $0xf8] sm:$0xff]  ;;  %v347_v23 = vld [vmem:[%s6119_s8 + $0x68] sm:$0xff]  ;;  %v474_v32 = vpack.c.bf16 %v346_v18, %v346_v18 }
  0x14   :  { %v492_v9 = vpack.c.bf16 %v364_v5, %v364_v5  ;;  %v380_v10 = vld [vmem:[%s6119_s8 + $0x170] sm:$0xff]  ;;  %v381_v11 = vld [vmem:[%s6119_s8 + $0x178] sm:$0xff]  ;;  %6120 = vst [vmem:[#allocation2_spill] sm:$0xff] %v4140_v12  ;;  %v493_v13 = vpack.c.bf16 %v365_v8, %v365_v8  ;;  %v362_v24 = vld [vmem:[%s6119_s8 + $0xe0] sm:$0xff]  ;;  %v475_v33 = vpack.c.bf16 %v347_v23, %v347_v23 }
  0x15   :  { %v508_v14 = vpack.c.bf16 %v380_v10, %v380_v10  ;;  %v509_v15 = vpack.c.bf16 %v381_v11, %v381_v11  ;;  %v396_v16 = vld [vmem:[%s6119_s8 + $0x1f0] sm:$0xff]  ;;  %v397_v17 = vld [vmem:[%s6119_s8 + $0x1f8] sm:$0xff]  ;;  %v678_v19 = vunpack.c.l.b16 %v476_v6  ;;  %v679_v20 = vunpack.c.l.b16 %v477_v7  ;;  %v363_v29 = vld [vmem:[%s6119_s8 + $0xe8] sm:$0xff]  ;;  %619 = vmatpush.bf16.msra.mxu0 %v3835_v1 }
  0x16   :  { %v758_v21 = vunpack.c.l.b16 %v492_v9  ;;  %v524_v22 = vpack.c.bf16 %v396_v16, %v396_v16  ;;  %v759_v25 = vunpack.c.l.b16 %v493_v13  ;;  %v525_v28 = vpack.c.bf16 %v397_v17, %v397_v17  ;;  %v378_v38 = vld [vmem:[%s6119_s8 + $0x160] sm:$0xff]  ;;  %v379_v39 = vld [vmem:[%s6119_s8 + $0x168] sm:$0xff]  ;;  %v344_v46 = vld [vmem:[%s6119_s8 + $0x50] sm:$0xff] }
  0x17   :  { %v838_v26 = vunpack.c.l.b16 %v508_v14  ;;  %v839_v27 = vunpack.c.l.b16 %v509_v15  ;;  %v4160_v30 = vpack.c.b16 %v679_v20, %v678_v19  ;;  %v490_v37 = vpack.c.bf16 %v362_v24, %v362_v24  ;;  %v394_v44 = vld [vmem:[%s6119_s8 + $0x1e0] sm:$0xff]  ;;  %v395_v45 = vld [vmem:[%s6119_s8 + $0x1e8] sm:$0xff]  ;;  %v345_v55 = vld [vmem:[%s6119_s8 + $0x58] sm:$0xff] }
  0x18   :  { %v918_v31 = vunpack.c.l.b16 %v524_v22  ;;  %v4162_v34 = vpack.c.b16 %v759_v25, %v758_v21  ;;  %v919_v36 = vunpack.c.l.b16 %v525_v28  ;;  %v676_v41 = vunpack.c.l.b16 %v474_v32  ;;  %3576 = vmatmul.msk.bf16.vlgmr.msra.gmra.mxu0 %vm608_vm0, %v4140_v12  ;;  %v360_v60 = vld [vmem:[%s6119_s8 + $0xd0] sm:$0xff]  ;;  %v361_v61 = vld [vmem:[%s6119_s8 + $0xd8] sm:$0xff]  ;;  %v342_v19 = vld [vmem:[%s6119_s8 + $0x40] sm:$0xff] }
  0x19   :  { %v4164_v35 = vpack.c.b16 %v839_v27, %v838_v26  ;;  %v713_v40 = vsel %vm608_vm0, %v4160_v30, 0  ;;  %v677_v42 = vunpack.c.l.b16 %v475_v33  ;;  %v491_v43 = vpack.c.bf16 %v363_v29, %v363_v29  ;;  %v376_v2 = vld [vmem:[%s6119_s8 + $0x150] sm:$0xff]  ;;  %v377_v3 = vld [vmem:[%s6119_s8 + $0x158] sm:$0xff]  ;;  %v343_v24 = vld [vmem:[%s6119_s8 + $0x48] sm:$0xff] }
  0x1a   :  { %715 = vmatpush.bf16.xpose.msra.mxu1 %v713_v40  ;;  %v793_v47 = vsel %vm608_vm0, %v4162_v34, 0  ;;  %v4189_v49 = vpack.c.b16 %v919_v36, %v918_v31  ;;  %v756_v50 = vunpack.c.l.b16 %v490_v37  ;;  %v506_v53 = vpack.c.bf16 %v378_v38, %v378_v38  ;;  %v392_v8 = vld [vmem:[%s6119_s8 + $0x1d0] sm:$0xff]  ;;  %v393_v18 = vld [vmem:[%s6119_s8 + $0x1d8] sm:$0xff]  ;;  %v358_v25 = vld [vmem:[%s6119_s8 + $0xc0] sm:$0xff] }
  0x1b   :  { %v873_v48 = vsel %vm608_vm0, %v4164_v35, 0  ;;  %795 = vmatpush.bf16.xpose.msra.mxu2 %v793_v47  ;;  %v4191_v51 = vpack.c.b16 %v677_v42, %v676_v41  ;;  %v757_v52 = vunpack.c.l.b16 %v491_v43  ;;  %v507_v54 = vpack.c.bf16 %v379_v39, %v379_v39  ;;  %v359_v31 = vld [vmem:[%s6119_s8 + $0xc8] sm:$0xff]  ;;  %v374_v38 = vld [vmem:[%s6119_s8 + $0x140] sm:$0xff] }
  0x1c   :  { %875 = vmatpush.bf16.xpose.msra.mxu3 %v873_v48  ;;  %v953_v56 = vsel %vm608_vm0, %v4189_v49, 0  ;;  %v522_v57 = vpack.c.bf16 %v394_v44, %v394_v44  ;;  %v523_v58 = vpack.c.bf16 %v395_v45, %v395_v45  ;;  %v472_v59 = vpack.c.bf16 %v344_v46, %v344_v46  ;;  %v375_v42 = vld [vmem:[%s6119_s8 + $0x148] sm:$0xff]  ;;  %v390_v43 = vld [vmem:[%s6119_s8 + $0x1c0] sm:$0xff] }
  0x1d   :  { %955 = vmatpush.bf16.xpose.msrb.mxu0 %v953_v56  ;;  %v710_v62 = vsel %vm608_vm0, %v4191_v51, 0  ;;  %v4206_v63 = vpack.c.b16 %v757_v52, %v756_v50  ;;  %v836_v0 = vunpack.c.l.b16 %v506_v53  ;;  %v837_v1 = vunpack.c.l.b16 %v507_v54  ;;  %v391_v48 = vld [vmem:[%s6119_s8 + $0x1c8] sm:$0xff]  ;;  %v340_v50 = vld [vmem:[%s6119_s8 + $0x30] sm:$0xff] }
  0x1e   :  { %v916_v4 = vunpack.c.l.b16 %v522_v57  ;;  %v917_v5 = vunpack.c.l.b16 %v523_v58  ;;  %v473_v6 = vpack.c.bf16 %v345_v55, %v345_v55  ;;  %v674_v7 = vunpack.c.l.b16 %v472_v59 }
  0x1f   :  { %v790_v9 = vsel %vm608_vm0, %v4206_v63, 0  ;;  %v4219_v10 = vpack.c.b16 %v837_v1, %v836_v0  ;;  %v488_v11 = vpack.c.bf16 %v360_v60, %v360_v60  ;;  %v489_v13 = vpack.c.bf16 %v361_v61, %v361_v61  ;;  %v341_v60 = vld [vmem:[%s6119_s8 + $0x38] sm:$0xff] }
  0x20   :  { %v4221_v14 = vpack.c.b16 %v917_v5, %v916_v4  ;;  %v675_v15 = vunpack.c.l.b16 %v473_v6  ;;  %v504_v16 = vpack.c.bf16 %v376_v2, %v376_v2  ;;  %v505_v17 = vpack.c.bf16 %v377_v3, %v377_v3  ;;  %v356_v2 = vld [vmem:[%s6119_s8 + $0xb0] sm:$0xff]  ;;  %v357_v3 = vld [vmem:[%s6119_s8 + $0xb8] sm:$0xff] }
  0x21   :  { %v870_v20 = vsel %vm608_vm0, %v4219_v10, 0  ;;  %v754_v21 = vunpack.c.l.b16 %v488_v11  ;;  %v755_v22 = vunpack.c.l.b16 %v489_v13  ;;  %v520_v23 = vpack.c.bf16 %v392_v8, %v392_v8  ;;  %v372_v6 = vld [vmem:[%s6119_s8 + $0x130] sm:$0xff] }
  0x22   :  { %716 = vmatpush.bf16.xpose.msra.mxu1 %v710_v62  ;;  %v950_v26 = vsel %vm608_vm0, %v4221_v14, 0  ;;  %v4239_v27 = vpack.c.b16 %v675_v15, %v674_v7  ;;  %v834_v28 = vunpack.c.l.b16 %v504_v16  ;;  %v835_v29 = vunpack.c.l.b16 %v505_v17  ;;  %v373_v7 = vld [vmem:[%s6119_s8 + $0x138] sm:$0xff] }
  0x23   :  { %796 = vmatpush.bf16.xpose.msra.mxu2 %v790_v9  ;;  %v4244_v32 = vpack.c.b16 %v755_v22, %v754_v21  ;;  %v521_v33 = vpack.c.bf16 %v393_v18, %v393_v18  ;;  %v914_v36 = vunpack.c.l.b16 %v520_v23  ;;  %v470_v37 = vpack.c.bf16 %v342_v19, %v342_v19  ;;  %v388_v19 = vld [vmem:[%s6119_s8 + $0x1b0] sm:$0xff] }
  0x24   :  { %876 = vmatpush.bf16.xpose.msra.mxu3 %v870_v20  ;;  %v4249_v39 = vpack.c.b16 %v835_v29, %v834_v28  ;;  %v471_v40 = vpack.c.bf16 %v343_v24, %v343_v24  ;;  %v486_v41 = vpack.c.bf16 %v358_v25, %v358_v25  ;;  %v707_v44 = vsel %vm608_vm0, %v4239_v27, 0  ;;  %v389_v24 = vld [vmem:[%s6119_s8 + $0x1b8] sm:$0xff] }
  0x25   :  { %956 = vmatpush.bf16.xpose.msrb.mxu0 %v950_v26  ;;  %v787_v45 = vsel %vm608_vm0, %v4244_v32, 0  ;;  %v915_v46 = vunpack.c.l.b16 %v521_v33  ;;  %v487_v47 = vpack.c.bf16 %v359_v31, %v359_v31  ;;  %v672_v52 = vunpack.c.l.b16 %v470_v37 }
  0x26   :  { %v673_v53 = vunpack.c.l.b16 %v471_v40  ;;  %v752_v54 = vunpack.c.l.b16 %v486_v41  ;;  %v502_v55 = vpack.c.bf16 %v374_v38, %v374_v38  ;;  %v503_v58 = vpack.c.bf16 %v375_v42, %v375_v42  ;;  %v339_v40 = vld [vmem:[%s6119_s8 + $0x28] sm:$0xff] }
  0x27   :  { %v4267_v56 = vpack.c.b16 %v915_v46, %v914_v36  ;;  %v753_v57 = vunpack.c.l.b16 %v487_v47  ;;  %v518_v59 = vpack.c.bf16 %v390_v43, %v390_v43  ;;  %v867_v61 = vsel %vm608_vm0, %v4249_v39, 0  ;;  %v338_v36 = vld [vmem:[%s6119_s8 + $0x20] sm:$0xff]  ;;  %v355_v46 = vld [vmem:[%s6119_s8 + $0xa8] sm:$0xff] }
  0x28   :  { %v832_v62 = vunpack.c.l.b16 %v502_v55  ;;  %v519_v0 = vpack.c.bf16 %v391_v48, %v391_v48  ;;  %v468_v1 = vpack.c.bf16 %v340_v50, %v340_v50  ;;  %v833_v4 = vunpack.c.l.b16 %v503_v58  ;;  %v370_v50 = vld [vmem:[%s6119_s8 + $0x120] sm:$0xff] }
  0x29   :  { %v912_v5 = vunpack.c.l.b16 %v518_v59  ;;  %v947_v8 = vsel %vm608_vm0, %v4267_v56, 0  ;;  %v4288_v9 = vpack.c.b16 %v673_v53, %v672_v52  ;;  %v469_v13 = vpack.c.bf16 %v341_v60, %v341_v60  ;;  %v371_v52 = vld [vmem:[%s6119_s8 + $0x128] sm:$0xff]  ;;  %v386_v58 = vld [vmem:[%s6119_s8 + $0x1a0] sm:$0xff]  ;;  %v336_v60 = vld [vmem:[%s6119_s8 + $0x10] sm:$0xff] }
  0x2a   :  { %717 = vmatpush.bf16.xpose.msra.mxu1 %v707_v44  ;;  %v913_v11 = vunpack.c.l.b16 %v519_v0  ;;  %v4290_v15 = vpack.c.b16 %v753_v57, %v752_v54  ;;  %v670_v16 = vunpack.c.l.b16 %v468_v1  ;;  %v484_v17 = vpack.c.bf16 %v356_v2, %v356_v2  ;;  %v387_v59 = vld [vmem:[%s6119_s8 + $0x1a8] sm:$0xff]  ;;  %v337_v0 = vld [vmem:[%s6119_s8 + $0x18] sm:$0xff] }
  0x2b   :  { %797 = vmatpush.bf16.xpose.msra.mxu2 %v787_v45  ;;  %v485_v18 = vpack.c.bf16 %v357_v3, %v357_v3  ;;  %v4295_v20 = vpack.c.b16 %v833_v4, %v832_v62  ;;  %v671_v21 = vunpack.c.l.b16 %v469_v13  ;;  %v500_v22 = vpack.c.bf16 %v372_v6, %v372_v6  ;;  %v354_v45 = vld [vmem:[%s6119_s8 + $0xa0] sm:$0xff]  ;;  %v353_v6 = vld [vmem:[%s6119_s8 + $0x98] sm:$0xff] }
  0x2c   :  { %877 = vmatpush.bf16.xpose.msra.mxu3 %v867_v61  ;;  %v501_v23 = vpack.c.bf16 %v373_v7, %v373_v7  ;;  %v4300_v25 = vpack.c.b16 %v913_v11, %v912_v5  ;;  %v750_v26 = vunpack.c.l.b16 %v484_v17  ;;  %v516_v33 = vpack.c.bf16 %v388_v19, %v388_v19  ;;  %v352_v5 = vld [vmem:[%s6119_s8 + $0x90] sm:$0xff]  ;;  %v369_v17 = vld [vmem:[%s6119_s8 + $0x118] sm:$0xff] }
  0x2d   :  { %957 = vmatpush.bf16.xpose.msrb.mxu0 %v947_v8  ;;  %v751_v28 = vunpack.c.l.b16 %v485_v18  ;;  %v830_v29 = vunpack.c.l.b16 %v500_v22  ;;  %v704_v37 = vsel %vm608_vm0, %v4288_v9, 0  ;;  %v517_v38 = vpack.c.bf16 %v389_v24, %v389_v24 }
  0x2e   :  { %v831_v31 = vunpack.c.l.b16 %v501_v23  ;;  %v784_v41 = vsel %vm608_vm0, %v4290_v15, 0  ;;  %v864_v42 = vsel %vm608_vm0, %v4295_v20, 0  ;;  %v4314_v43 = vpack.c.b16 %v671_v21, %v670_v16  ;;  %v368_v16 = vld [vmem:[%s6119_s8 + $0x110] sm:$0xff] }
  0x2f   :  { %v4316_v44 = vpack.c.b16 %v751_v28, %v750_v26  ;;  %v944_v47 = vsel %vm608_vm0, %v4300_v25, 0  ;;  %v466_v48 = vpack.c.bf16 %v338_v36, %v338_v36  ;;  %v910_v54 = vunpack.c.l.b16 %v516_v33 }
  0x30   :  { %v4332_v53 = vpack.c.b16 %v831_v31, %v830_v29  ;;  %v911_v55 = vunpack.c.l.b16 %v517_v38  ;;  %v467_v57 = vpack.c.bf16 %v339_v40, %v339_v40  ;;  %v482_v61 = vpack.c.bf16 %v354_v45, %v354_v45 }
  0x31   :  { %v483_v62 = vpack.c.bf16 %v355_v46, %v355_v46  ;;  %v701_v1 = vsel %vm608_vm0, %v4314_v43, 0  ;;  %v781_v2 = vsel %vm608_vm0, %v4316_v44, 0  ;;  %v498_v3 = vpack.c.bf16 %v370_v50, %v370_v50 }
  0x32   :  { %718 = vmatpush.bf16.xpose.msra.mxu1 %v704_v37  ;;  %v499_v4 = vpack.c.bf16 %v371_v52, %v371_v52  ;;  %v668_v7 = vunpack.c.l.b16 %v466_v48  ;;  %v514_v8 = vpack.c.bf16 %v386_v58, %v386_v58  ;;  %v515_v11 = vpack.c.bf16 %v387_v59, %v387_v59  ;;  %v334_v58 = vld [vmem:[%s6119_s8] sm:$0xff] }
  0x33   :  { %798 = vmatpush.bf16.xpose.msra.mxu2 %v784_v41  ;;  %v464_v13 = vpack.c.bf16 %v336_v60, %v336_v60  ;;  %v861_v18 = vsel %vm608_vm0, %v4332_v53, 0  ;;  %v4364_v19 = vpack.c.b16 %v911_v55, %v910_v54  ;;  %v669_v21 = vunpack.c.l.b16 %v467_v57  ;;  %v385_v54 = vld [vmem:[%s6119_s8 + $0x198] sm:$0xff] }
  0x34   :  { %878 = vmatpush.bf16.xpose.msra.mxu3 %v864_v42  ;;  %v465_v22 = vpack.c.bf16 %v337_v0, %v337_v0  ;;  %v748_v23 = vunpack.c.l.b16 %v482_v61  ;;  %v749_v24 = vunpack.c.l.b16 %v483_v62  ;;  %v480_v26 = vpack.c.bf16 %v352_v5, %v352_v5  ;;  %v412_v5 = vld [vmem:[%s6119_s8 + $0x270] sm:$0xff] }
  0x35   :  { %958 = vmatpush.bf16.xpose.msrb.mxu0 %v944_v47  ;;  %v481_v28 = vpack.c.bf16 %v353_v6, %v353_v6  ;;  %v828_v29 = vunpack.c.l.b16 %v498_v3  ;;  %v829_v31 = vunpack.c.l.b16 %v499_v4  ;;  %v496_v33 = vpack.c.bf16 %v368_v16, %v368_v16  ;;  %v384_v47 = vld [vmem:[%s6119_s8 + $0x190] sm:$0xff]  ;;  %v413_v6 = vld [vmem:[%s6119_s8 + $0x278] sm:$0xff]  ;;  %v366_v16 = vld [vmem:[%s6119_s8 + $0x100] sm:$0xff] }
  0x36   :  { %v497_v36 = vpack.c.bf16 %v369_v17, %v369_v17  ;;  %v908_v37 = vunpack.c.l.b16 %v514_v8  ;;  %v909_v38 = vunpack.c.l.b16 %v515_v11  ;;  %v666_v40 = vunpack.c.l.b16 %v464_v13  ;;  %v351_v13 = vld [vmem:[%s6119_s8 + $0x88] sm:$0xff] }
  0x37   :  { %v667_v41 = vunpack.c.l.b16 %v465_v22  ;;  %v941_v42 = vsel %vm608_vm0, %v4364_v19, 0  ;;  %v746_v45 = vunpack.c.l.b16 %v480_v26  ;;  %v747_v46 = vunpack.c.l.b16 %v481_v28  ;;  %v367_v17 = vld [vmem:[%s6119_s8 + $0x108] sm:$0xff]  ;;  %v428_v28 = vld [vmem:[%s6119_s8 + $0x2f0] sm:$0xff] }
  0x38   :  { %v4371_v48 = vpack.c.b16 %v669_v21, %v668_v7  ;;  %v826_v50 = vunpack.c.l.b16 %v496_v33  ;;  %v827_v52 = vunpack.c.l.b16 %v497_v36  ;;  %v4376_v55 = vpack.c.b16 %v749_v24, %v748_v23  ;;  %v350_v7 = vld [vmem:[%s6119_s8 + $0x80] sm:$0xff]  ;;  %v383_v26 = vld [vmem:[%s6119_s8 + $0x188] sm:$0xff] }
  0x39   :  { %v4378_v57 = vpack.c.b16 %v829_v31, %v828_v29  ;;  %v4383_v59 = vpack.c.b16 %v909_v38, %v908_v37  ;;  %v4385_v60 = vpack.c.b16 %v667_v41, %v666_v40  ;;  %v512_v61 = vpack.c.bf16 %v384_v47, %v384_v47  ;;  %v382_v24 = vld [vmem:[%s6119_s8 + $0x180] sm:$0xff]  ;;  %v429_v37 = vld [vmem:[%s6119_s8 + $0x2f8] sm:$0xff]  ;;  %v444_v38 = vld [vmem:[%s6119_s8 + $0x370] sm:$0xff] }
  0x3a   :  { %719 = vmatpush.bf16.xpose.msra.mxu1 %v701_v1  ;;  %v4387_v62 = vpack.c.b16 %v747_v46, %v746_v45  ;;  %v513_v0 = vpack.c.bf16 %v385_v54, %v385_v54  ;;  %v335_v1 = vld [vmem:[%s6119_s8 + $0x8] sm:$0xff]  ;;  %v4394_v3 = vpack.c.b16 %v827_v52, %v826_v50  ;;  %v462_v4 = vpack.c.bf16 %v334_v58, %v334_v58  ;;  %v445_v40 = vld [vmem:[%s6119_s8 + $0x378] sm:$0xff]  ;;  %v460_v58 = vld [vmem:[%s6119_s8 + $0x3f0] sm:$0xff] }
  0x3b   :  { %799 = vmatpush.bf16.xpose.msra.mxu2 %v781_v2  ;;  %v698_v2 = vsel %vm608_vm0, %v4371_v48, 0  ;;  %v778_v8 = vsel %vm608_vm0, %v4376_v55, 0  ;;  %v858_v11 = vsel %vm608_vm0, %v4378_v57, 0  ;;  %v695_v21 = vsel %vm608_vm0, %v4385_v60, 0 }
  0x3c   :  { %879 = vmatpush.bf16.xpose.msra.mxu3 %v861_v18  ;;  %v938_v18 = vsel %vm608_vm0, %v4383_v59, 0  ;;  %v906_v22 = vunpack.c.l.b16 %v512_v61  ;;  %v463_v23 = vpack.c.bf16 %v335_v1, %v335_v1  ;;  %v775_v29 = vsel %vm608_vm0, %v4387_v62, 0  ;;  %v461_v61 = vld [vmem:[%s6119_s8 + $0x3f8] sm:$0xff] }
  0x3d   :  { %959 = vmatpush.bf16.xpose.msrb.mxu0 %v941_v42  ;;  %v907_v31 = vunpack.c.l.b16 %v513_v0  ;;  %v540_v33 = vpack.c.bf16 %v412_v5, %v412_v5  ;;  %v541_v36 = vpack.c.bf16 %v413_v6, %v413_v6  ;;  %v855_v41 = vsel %vm608_vm0, %v4394_v3, 0 }
  0x3e   :  { %v664_v42 = vunpack.c.l.b16 %v462_v4  ;;  %v478_v45 = vpack.c.bf16 %v350_v7, %v350_v7  ;;  %v479_v46 = vpack.c.bf16 %v351_v13, %v351_v13  ;;  %v494_v47 = vpack.c.bf16 %v366_v16, %v366_v16 }
  0x3f   :  { %v495_v50 = vpack.c.bf16 %v367_v17, %v367_v17  ;;  %v510_v52 = vpack.c.bf16 %v382_v24, %v382_v24  ;;  %v511_v54 = vpack.c.bf16 %v383_v26, %v383_v26  ;;  %v556_v0 = vpack.c.bf16 %v428_v28, %v428_v28  ;;  %v410_v24 = vld [vmem:[%s6119_s8 + $0x260] sm:$0xff] }
  0x40   :  { %v557_v1 = vpack.c.bf16 %v429_v37, %v429_v37  ;;  %v573_v5 = vpack.c.bf16 %v445_v40, %v445_v40  ;;  %v4450_v4 = vpack.c.b16 %v907_v31, %v906_v22  ;;  %v665_v6 = vunpack.c.l.b16 %v463_v23 }
  0x41   :  { %v998_v7 = vunpack.c.l.b16 %v540_v33  ;;  %v745_v13 = vunpack.c.l.b16 %v479_v46  ;;  %v588_v16 = vpack.c.bf16 %v460_v58, %v460_v58  ;;  %v589_v17 = vpack.c.bf16 %v461_v61, %v461_v61  ;;  %v426_v46 = vld [vmem:[%s6119_s8 + $0x2e0] sm:$0xff]  ;;  %v443_v58 = vld [vmem:[%s6119_s8 + $0x368] sm:$0xff] }
  0x42   :  { %720 = vmatpush.bf16.xpose.msra.mxu1 %v698_v2  ;;  %v572_v2 = vpack.c.bf16 %v444_v38, %v444_v38  ;;  %v824_v26 = vunpack.c.l.b16 %v494_v47  ;;  %v825_v28 = vunpack.c.l.b16 %v495_v50  ;;  %v904_v37 = vunpack.c.l.b16 %v510_v52  ;;  %v427_v47 = vld [vmem:[%s6119_s8 + $0x2e8] sm:$0xff] }
  0x43   :  { %800 = vmatpush.bf16.xpose.msra.mxu2 %v778_v8  ;;  %v999_v8 = vunpack.c.l.b16 %v541_v36  ;;  %v905_v22 = vunpack.c.l.b16 %v511_v54  ;;  %v1078_v31 = vunpack.c.l.b16 %v556_v0  ;;  %v1079_v23 = vunpack.c.l.b16 %v557_v1 }
  0x44   :  { %880 = vmatpush.bf16.xpose.msra.mxu3 %v858_v11  ;;  %v744_v11 = vunpack.c.l.b16 %v478_v45  ;;  %v1158_v33 = vunpack.c.l.b16 %v572_v2  ;;  %v1159_v36 = vunpack.c.l.b16 %v573_v5  ;;  %v935_v38 = vsel %vm608_vm0, %v4450_v4, 0 }
  0x45   :  { %960 = vmatpush.bf16.xpose.msrb.mxu0 %v938_v18  ;;  %v411_v18 = vld [vmem:[%s6119_s8 + $0x268] sm:$0xff]  ;;  %v538_v40 = vpack.c.bf16 %v410_v24, %v410_v24  ;;  %v4466_v50 = vpack.c.b16 %v665_v6, %v664_v42  ;;  %v1238_v52 = vunpack.c.l.b16 %v588_v16  ;;  %v1239_v54 = vunpack.c.l.b16 %v589_v17 }
  0x46   :  { %v539_v45 = vpack.c.bf16 %v411_v18, %v411_v18  ;;  %v4474_v61 = vpack.c.b16 %v999_v8, %v998_v7  ;;  %v4476_v0 = vpack.c.b16 %v745_v13, %v744_v11  ;;  %v4478_v1 = vpack.c.b16 %v825_v28, %v824_v26  ;;  %v459_v42 = vld [vmem:[%s6119_s8 + $0x3e8] sm:$0xff] }
  0x47   :  { %v4488_v2 = vpack.c.b16 %v1079_v23, %v1078_v31  ;;  %v4490_v5 = vpack.c.b16 %v1159_v36, %v1158_v33  ;;  %v554_v6 = vpack.c.bf16 %v426_v46, %v426_v46  ;;  %v555_v7 = vpack.c.bf16 %v427_v47, %v427_v47  ;;  %v408_v31 = vld [vmem:[%s6119_s8 + $0x250] sm:$0xff]  ;;  %v425_v46 = vld [vmem:[%s6119_s8 + $0x2d8] sm:$0xff] }
  0x48   :  { %v996_v8 = vunpack.c.l.b16 %v538_v40  ;;  %v997_v11 = vunpack.c.l.b16 %v539_v45  ;;  %v571_v16 = vpack.c.bf16 %v443_v58, %v443_v58  ;;  %v692_v17 = vsel %vm608_vm0, %v4466_v50, 0  ;;  %v409_v40 = vld [vmem:[%s6119_s8 + $0x258] sm:$0xff]  ;;  %v424_v45 = vld [vmem:[%s6119_s8 + $0x2d0] sm:$0xff] }
  0x49   :  { %6121 = vst [vmem:[#allocation3_spill] sm:$0xff] %v4490_v5  ;;  %v4494_v24 = vpack.c.b16 %v1239_v54, %v1238_v52  ;;  %v587_v26 = vpack.c.bf16 %v459_v42, %v459_v42  ;;  %v1033_v28 = vsel %vm608_vm0, %v4474_v61, 0  ;;  %v1113_v33 = vsel %vm608_vm0, %v4488_v2, 0 }
  0x4a   :  { %721 = vmatpush.bf16.xpose.msra.mxu1 %v695_v21  ;;  %v442_v21 = vld [vmem:[%s6119_s8 + $0x360] sm:$0xff]  ;;  %v1076_v36 = vunpack.c.l.b16 %v554_v6  ;;  %v1193_v47 = vsel %vm608_vm0, %v4490_v5, 0  ;;  %v4520_v52 = vpack.c.b16 %v997_v11, %v996_v8  ;;  %v536_v6 = vpack.c.bf16 %v408_v31, %v408_v31 }
  0x4b   :  { %801 = vmatpush.bf16.xpose.msra.mxu2 %v775_v29  ;;  %v4480_v29 = vpack.c.b16 %v905_v22, %v904_v37  ;;  %v570_v13 = vpack.c.bf16 %v442_v21, %v442_v21  ;;  %6122 = vst [vmem:[#allocation4_spill] sm:$0xff] %v4494_v24  ;;  %v772_v37 = vsel %vm608_vm0, %v4476_v0, 0  ;;  %v852_v22 = vsel %vm608_vm0, %v4478_v1, 0 }
  0x4c   :  { %881 = vmatpush.bf16.xpose.msra.mxu3 %v855_v41  ;;  %v458_v41 = vld [vmem:[%s6119_s8 + $0x3e0] sm:$0xff]  ;;  %v1157_v21 = vunpack.c.l.b16 %v571_v16  ;;  %v1273_v58 = vsel %vm608_vm0, %v4494_v24, 0  ;;  %v1237_v42 = vunpack.c.l.b16 %v587_v26  ;;  %v537_v8 = vpack.c.bf16 %v409_v40, %v409_v40  ;;  %v456_v16 = vld [vmem:[%s6119_s8 + $0x3d0] sm:$0xff] }
  0x4d   :  { %961 = vmatpush.bf16.xpose.msrb.mxu0 %v935_v38  ;;  %v586_v18 = vpack.c.bf16 %v458_v41, %v458_v41  ;;  %v932_v23 = vsel %vm608_vm0, %v4480_v29, 0  ;;  %v1077_v38 = vunpack.c.l.b16 %v555_v7  ;;  %v1156_v54 = vunpack.c.l.b16 %v570_v13  ;;  %v440_v7 = vld [vmem:[%s6119_s8 + $0x350] sm:$0xff] }
  0x4e   :  { %v552_v11 = vpack.c.bf16 %v424_v45, %v424_v45  ;;  %v553_v13 = vpack.c.bf16 %v425_v46, %v425_v46  ;;  %v1030_v31 = vsel %vm608_vm0, %v4520_v52, 0  ;;  %v584_v40 = vpack.c.bf16 %v456_v16, %v456_v16 }
  0x4f   :  { %v1236_v41 = vunpack.c.l.b16 %v586_v18  ;;  %v457_v18 = vld [vmem:[%s6119_s8 + $0x3d8] sm:$0xff]  ;;  %v4536_v26 = vpack.c.b16 %v1077_v38, %v1076_v36  ;;  %v994_v46 = vunpack.c.l.b16 %v536_v6  ;;  %v995_v12 = vunpack.c.l.b16 %v537_v8  ;;  %v406_v36 = vld [vmem:[%s6119_s8 + $0x240] sm:$0xff]  ;;  %v407_v38 = vld [vmem:[%s6119_s8 + $0x248] sm:$0xff] }
  0x50   :  { %v585_v45 = vpack.c.bf16 %v457_v18, %v457_v18  ;;  %v1074_v24 = vunpack.c.l.b16 %v552_v11  ;;  %v1075_v5 = vunpack.c.l.b16 %v553_v13  ;;  %v439_v6 = vld [vmem:[%s6119_s8 + $0x348] sm:$0xff]  ;;  %v534_v16 = vpack.c.bf16 %v406_v36, %v406_v36 }
  0x51   :  { %6123 = vst [vmem:[#allocation5_spill] sm:$0xff] %v4536_v26  ;;  %v4568_v11 = vpack.c.b16 %v995_v12, %v994_v46  ;;  %v535_v18 = vpack.c.bf16 %v407_v38, %v407_v38 }
  0x52   :  { %722 = vmatpush.bf16.xpose.msra.mxu1 %v692_v17  ;;  %v441_v17 = vld [vmem:[%s6119_s8 + $0x358] sm:$0xff]  ;;  %v1235_v8 = vunpack.c.l.b16 %v585_v45  ;;  %v4570_v13 = vpack.c.b16 %v1075_v5, %v1074_v24  ;;  %v567_v45 = vpack.c.bf16 %v439_v6, %v439_v6  ;;  %v992_v38 = vunpack.c.l.b16 %v534_v16 }
  0x53   :  { %802 = vmatpush.bf16.xpose.msra.mxu2 %v772_v37  ;;  %v568_v37 = vpack.c.bf16 %v440_v7, %v440_v7  ;;  %6126 = vst [vmem:[#allocation8_spill] sm:$0xff] %v4568_v11 }
  0x54   :  { %882 = vmatpush.bf16.xpose.msra.mxu3 %v852_v22  ;;  %v569_v22 = vpack.c.bf16 %v441_v17, %v441_v17  ;;  %v1234_v17 = vunpack.c.l.b16 %v584_v40  ;;  %6127 = vst [vmem:[#allocation9_spill] sm:$0xff] %v4570_v13  ;;  %v1107_v36 = vsel %vm608_vm0, %v4570_v13, 0  ;;  %v402_v13 = vld [vmem:[%s6119_s8 + $0x220] sm:$0xff] }
  0x55   :  { %962 = vmatpush.bf16.xpose.msrb.mxu0 %v932_v23  ;;  %v1110_v23 = vsel %vm608_vm0, %v4536_v26, 0 }
  0x56   :  { %v4580_v5 = vpack.c.b16 %v1235_v8, %v1234_v17 }
  0x58   :  { %6129 = vst [vmem:[#allocation11_spill] sm:$0xff] %v4580_v5  ;;  %v1267_v17 = vsel %vm608_vm0, %v4580_v5, 0 }
  0x5a   :  { %1035 = vmatpush.bf16.xpose.msrb.mxu1 %v1033_v28  ;;  %v4538_v28 = vpack.c.b16 %v1157_v21, %v1156_v54  ;;  %v1154_v21 = vunpack.c.l.b16 %v568_v37  ;;  %v454_v37 = vld [vmem:[%s6119_s8 + $0x3c0] sm:$0xff] }
  0x5b   :  { %1115 = vmatpush.bf16.xpose.msrb.mxu2 %v1113_v33  ;;  %v4542_v33 = vpack.c.b16 %v1237_v42, %v1236_v41  ;;  %v423_v41 = vld [vmem:[%s6119_s8 + $0x2c8] sm:$0xff]  ;;  %v438_v42 = vld [vmem:[%s6119_s8 + $0x340] sm:$0xff]  ;;  %v582_v24 = vpack.c.bf16 %v454_v37, %v454_v37  ;;  %v437_v37 = vld [vmem:[%s6119_s8 + $0x338] sm:$0xff] }
  0x5c   :  { %1195 = vmatpush.bf16.xpose.msrb.mxu3 %v1193_v47  ;;  %6124 = vst [vmem:[#allocation6_spill] sm:$0xff] %v4538_v28  ;;  %v422_v47 = vld [vmem:[%s6119_s8 + $0x2c0] sm:$0xff]  ;;  %v1190_v54 = vsel %vm608_vm0, %v4538_v28, 0  ;;  %v566_v40 = vpack.c.bf16 %v438_v42, %v438_v42  ;;  %v993_v28 = vunpack.c.l.b16 %v535_v18  ;;  %v1153_v42 = vunpack.c.l.b16 %v567_v45  ;;  %v436_v18 = vld [vmem:[%s6119_s8 + $0x330] sm:$0xff] }
  0x5d   :  { %1275 = vmatpush.bf16.xpose.msra.mxu0 %v1273_v58  ;;  %6125 = vst [vmem:[#allocation7_spill] sm:$0xff] %v4542_v33  ;;  %v1155_v58 = vunpack.c.l.b16 %v569_v22  ;;  %v1270_v7 = vsel %vm608_vm0, %v4542_v33, 0  ;;  %v455_v22 = vld [vmem:[%s6119_s8 + $0x3c8] sm:$0xff]  ;;  %v551_v33 = vpack.c.bf16 %v423_v41, %v423_v41  ;;  %v1232_v8 = vunpack.c.l.b16 %v582_v24  ;;  %v452_v45 = vld [vmem:[%s6119_s8 + $0x3b0] sm:$0xff]  ;;  %v453_v24 = vld [vmem:[%s6119_s8 + $0x3b8] sm:$0xff] }
  0x5e   :  { %v583_v46 = vpack.c.bf16 %v455_v22, %v455_v22  ;;  %v1152_v41 = vunpack.c.l.b16 %v566_v40  ;;  %v4608_v22 = vpack.c.b16 %v993_v28, %v992_v38  ;;  %v564_v28 = vpack.c.bf16 %v436_v18, %v436_v18 }
  0x5f   :  { %v4578_v12 = vpack.c.b16 %v1155_v58, %v1154_v21  ;;  %v404_v21 = vld [vmem:[%s6119_s8 + $0x230] sm:$0xff]  ;;  %v405_v58 = vld [vmem:[%s6119_s8 + $0x238] sm:$0xff] }
  0x60   :  { %v1233_v16 = vunpack.c.l.b16 %v583_v46  ;;  %6130 = vst [vmem:[#allocation12_spill] sm:$0xff] %v4608_v22  ;;  %v533_v40 = vpack.c.bf16 %v405_v58, %v405_v58  ;;  %v581_v58 = vpack.c.bf16 %v453_v24, %v453_v24  ;;  %v1150_v18 = vunpack.c.l.b16 %v564_v28 }
  0x61   :  { %6128 = vst [vmem:[#allocation10_spill] sm:$0xff] %v4578_v12  ;;  %v1187_v6 = vsel %vm608_vm0, %v4578_v12, 0 }
  0x62   :  { %1036 = vmatpush.bf16.xpose.msrb.mxu1 %v1030_v31  ;;  %v550_v31 = vpack.c.bf16 %v422_v47, %v422_v47  ;;  %v1073_v47 = vunpack.c.l.b16 %v551_v33  ;;  %v421_v33 = vld [vmem:[%s6119_s8 + $0x2b8] sm:$0xff]  ;;  %v4620_v38 = vpack.c.b16 %v1233_v16, %v1232_v8  ;;  %v418_v8 = vld [vmem:[%s6119_s8 + $0x2a0] sm:$0xff]  ;;  %v419_v16 = vld [vmem:[%s6119_s8 + $0x2a8] sm:$0xff] }
  0x63   :  { %1116 = vmatpush.bf16.xpose.msrb.mxu2 %v1110_v23  ;;  %v1027_v23 = vsel %vm608_vm0, %v4568_v11, 0  ;;  %v549_v12 = vpack.c.bf16 %v421_v33, %v421_v33  ;;  %v546_v28 = vpack.c.bf16 %v418_v8, %v418_v8 }
  0x64   :  { %1196 = vmatpush.bf16.xpose.msrb.mxu3 %v1190_v54  ;;  %v1072_v54 = vunpack.c.l.b16 %v550_v31  ;;  %v532_v31 = vpack.c.bf16 %v404_v21, %v404_v21  ;;  %6133 = vst [vmem:[#allocation15_spill] sm:$0xff] %v4620_v38  ;;  %v580_v21 = vpack.c.bf16 %v452_v45, %v452_v45  ;;  %v434_v45 = vld [vmem:[%s6119_s8 + $0x320] sm:$0xff] }
  0x65   :  { %1276 = vmatpush.bf16.xpose.msra.mxu0 %v1270_v7  ;;  %v420_v7 = vld [vmem:[%s6119_s8 + $0x2b0] sm:$0xff]  ;;  %v1068_v11 = vunpack.c.l.b16 %v546_v28 }
  0x66   :  { %v4616_v46 = vpack.c.b16 %v1073_v47, %v1072_v54  ;;  %v548_v5 = vpack.c.bf16 %v420_v7, %v420_v7  ;;  %v403_v54 = vld [vmem:[%s6119_s8 + $0x228] sm:$0xff]  ;;  %v1024_v47 = vsel %vm608_vm0, %v4608_v22, 0  ;;  %v1230_v24 = vunpack.c.l.b16 %v580_v21 }
  0x67   :  { %v562_v22 = vpack.c.bf16 %v434_v45, %v434_v45  ;;  %v400_v45 = vld [vmem:[%s6119_s8 + $0x210] sm:$0xff] }
  0x68   :  { %6131 = vst [vmem:[#allocation13_spill] sm:$0xff] %v4616_v46  ;;  %v1070_v33 = vunpack.c.l.b16 %v548_v5  ;;  %v1264_v5 = vsel %vm608_vm0, %v4620_v38, 0 }
  0x6a   :  { %1037 = vmatpush.bf16.xpose.msrb.mxu1 %v1027_v23  ;;  %v4618_v23 = vpack.c.b16 %v1153_v42, %v1152_v41  ;;  %v990_v41 = vunpack.c.l.b16 %v532_v31  ;;  %v991_v42 = vunpack.c.l.b16 %v533_v40  ;;  %v530_v31 = vpack.c.bf16 %v402_v13, %v402_v13 }
  0x6b   :  { %1117 = vmatpush.bf16.xpose.msrb.mxu2 %v1107_v36  ;;  %v565_v36 = vpack.c.bf16 %v437_v37, %v437_v37  ;;  %v531_v40 = vpack.c.bf16 %v403_v54, %v403_v54  ;;  %v547_v13 = vpack.c.bf16 %v419_v16, %v419_v16  ;;  %v451_v54 = vld [vmem:[%s6119_s8 + $0x3a8] sm:$0xff] }
  0x6c   :  { %1197 = vmatpush.bf16.xpose.msrb.mxu3 %v1187_v6  ;;  %6132 = vst [vmem:[#allocation14_spill] sm:$0xff] %v4618_v23  ;;  %v1104_v6 = vsel %vm608_vm0, %v4616_v46, 0  ;;  %v1184_v7 = vsel %vm608_vm0, %v4618_v23, 0  ;;  %v1231_v23 = vunpack.c.l.b16 %v581_v58  ;;  %v4648_v46 = vpack.c.b16 %v991_v42, %v990_v41 }
  0x6d   :  { %1277 = vmatpush.bf16.xpose.msra.mxu0 %v1267_v17  ;;  %v1071_v17 = vunpack.c.l.b16 %v549_v12  ;;  %v1151_v37 = vunpack.c.l.b16 %v565_v36  ;;  %v435_v12 = vld [vmem:[%s6119_s8 + $0x328] sm:$0xff]  ;;  %v450_v36 = vld [vmem:[%s6119_s8 + $0x3a0] sm:$0xff]  ;;  %v988_v58 = vunpack.c.l.b16 %v530_v31  ;;  %v989_v41 = vunpack.c.l.b16 %v531_v40 }
  0x6e   :  { %v563_v38 = vpack.c.bf16 %v435_v12, %v435_v12  ;;  %v4660_v42 = vpack.c.b16 %v1231_v23, %v1230_v24  ;;  %v579_v8 = vpack.c.bf16 %v451_v54, %v451_v54  ;;  %v1021_v16 = vsel %vm608_vm0, %v4648_v46, 0  ;;  %v416_v54 = vld [vmem:[%s6119_s8 + $0x290] sm:$0xff] }
  0x6f   :  { %v4658_v21 = vpack.c.b16 %v1151_v37, %v1150_v18  ;;  %v1069_v26 = vunpack.c.l.b16 %v547_v13  ;;  %v4668_v37 = vpack.c.b16 %v989_v41, %v988_v58  ;;  %v528_v12 = vpack.c.bf16 %v400_v45, %v400_v45 }
  0x70   :  { %6134 = vst [vmem:[#allocation16_spill] sm:$0xff] %v4660_v42  ;;  %v1261_v23 = vsel %vm608_vm0, %v4660_v42, 0  ;;  %v1229_v40 = vunpack.c.l.b16 %v579_v8  ;;  %v544_v41 = vpack.c.bf16 %v416_v54, %v416_v54  ;;  %v433_v8 = vld [vmem:[%s6119_s8 + $0x318] sm:$0xff] }
  0x71   :  { %v1181_v18 = vsel %vm608_vm0, %v4658_v21, 0  ;;  %v1018_v28 = vsel %vm608_vm0, %v4668_v37, 0  ;;  %v986_v13 = vunpack.c.l.b16 %v528_v12 }
  0x72   :  { %1038 = vmatpush.bf16.xpose.msrb.mxu1 %v1024_v47  ;;  %v4656_v47 = vpack.c.b16 %v1071_v17, %v1070_v33  ;;  %v1148_v33 = vunpack.c.l.b16 %v562_v22  ;;  %v1149_v17 = vunpack.c.l.b16 %v563_v38  ;;  %v401_v22 = vld [vmem:[%s6119_s8 + $0x218] sm:$0xff]  ;;  %v4678_v38 = vpack.c.b16 %v1069_v26, %v1068_v11  ;;  %v432_v11 = vld [vmem:[%s6119_s8 + $0x310] sm:$0xff] }
  0x73   :  { %1118 = vmatpush.bf16.xpose.msrb.mxu2 %v1104_v6  ;;  %v578_v6 = vpack.c.bf16 %v450_v36, %v450_v36  ;;  %v417_v26 = vld [vmem:[%s6119_s8 + $0x298] sm:$0xff] }
  0x74   :  { %1198 = vmatpush.bf16.xpose.msrb.mxu3 %v1184_v7  ;;  %v1101_v7 = vsel %vm608_vm0, %v4656_v47, 0  ;;  %6135 = vst [vmem:[#allocation17_spill] sm:$0xff] %v4678_v38  ;;  %v4680_v24 = vpack.c.b16 %v1149_v17, %v1148_v33  ;;  %v449_v33 = vld [vmem:[%s6119_s8 + $0x398] sm:$0xff]  ;;  %v1098_v17 = vsel %vm608_vm0, %v4678_v38, 0 }
  0x75   :  { %1278 = vmatpush.bf16.xpose.msra.mxu0 %v1264_v5  ;;  %v1228_v31 = vunpack.c.l.b16 %v578_v6  ;;  %v529_v5 = vpack.c.bf16 %v401_v22, %v401_v22  ;;  %v545_v6 = vpack.c.bf16 %v417_v26, %v417_v26  ;;  %v1066_v22 = vunpack.c.l.b16 %v544_v41 }
  0x76   :  { %6136 = vst [vmem:[#allocation18_spill] sm:$0xff] %v4680_v24 }
  0x77   :  { %v987_v36 = vunpack.c.l.b16 %v529_v5  ;;  %v4693_v58 = vpack.c.b16 %v1229_v40, %v1228_v31  ;;  %v577_v31 = vpack.c.bf16 %v449_v33, %v449_v33  ;;  %v1178_v40 = vsel %vm608_vm0, %v4680_v24, 0  ;;  %v414_v33 = vld [vmem:[%s6119_s8 + $0x280] sm:$0xff] }
  0x78   :  { %v1067_v12 = vunpack.c.l.b16 %v545_v6 }
  0x79   :  { %6137 = vst [vmem:[#allocation19_spill] sm:$0xff] %v4693_v58  ;;  %v4708_v45 = vpack.c.b16 %v987_v36, %v986_v13  ;;  %v1258_v42 = vsel %vm608_vm0, %v4693_v58, 0  ;;  %v399_v13 = vld [vmem:[%s6119_s8 + $0x208] sm:$0xff] }
  0x7a   :  { %1039 = vmatpush.bf16.xpose.msrb.mxu1 %v1021_v16  ;;  %v560_v16 = vpack.c.bf16 %v432_v11, %v432_v11  ;;  %v1227_v11 = vunpack.c.l.b16 %v577_v31  ;;  %v4718_v36 = vpack.c.b16 %v1067_v12, %v1066_v22  ;;  %v527_v6 = vpack.c.bf16 %v399_v13, %v399_v13  ;;  %v431_v22 = vld [vmem:[%s6119_s8 + $0x308] sm:$0xff]  ;;  %v446_v12 = vld [vmem:[%s6119_s8 + $0x380] sm:$0xff] }
  0x7b   :  { %1119 = vmatpush.bf16.xpose.msrb.mxu2 %v1101_v7  ;;  %v448_v7 = vld [vmem:[%s6119_s8 + $0x390] sm:$0xff]  ;;  %6138 = vst [vmem:[#allocation20_spill] sm:$0xff] %v4708_v45  ;;  %v542_v31 = vpack.c.bf16 %v414_v33, %v414_v33 }
  0x7c   :  { %1199 = vmatpush.bf16.xpose.msrb.mxu3 %v1181_v18  ;;  %v561_v18 = vpack.c.bf16 %v433_v8, %v433_v8  ;;  %v1146_v5 = vunpack.c.l.b16 %v560_v16  ;;  %v398_v8 = vld [vmem:[%s6119_s8 + $0x200] sm:$0xff]  ;;  %v1095_v13 = vsel %vm608_vm0, %v4718_v36, 0 }
  0x7d   :  { %1279 = vmatpush.bf16.xpose.msra.mxu0 %v1261_v23  ;;  %v576_v23 = vpack.c.bf16 %v448_v7, %v448_v7  ;;  %v526_v41 = vpack.c.bf16 %v398_v8, %v398_v8 }
  0x7e   :  { %v1147_v54 = vunpack.c.l.b16 %v561_v18  ;;  %v430_v18 = vld [vmem:[%s6119_s8 + $0x300] sm:$0xff] }
  0x7f   :  { %v1226_v26 = vunpack.c.l.b16 %v576_v23  ;;  %v985_v23 = vunpack.c.l.b16 %v527_v6 }
  0x80   :  { %v4722_v16 = vpack.c.b16 %v1147_v54, %v1146_v5  ;;  %v447_v5 = vld [vmem:[%s6119_s8 + $0x388] sm:$0xff]  ;;  %v558_v54 = vpack.c.bf16 %v430_v18, %v430_v18 }
  0x81   :  { %v4724_v7 = vpack.c.b16 %v1227_v11, %v1226_v26  ;;  %v559_v26 = vpack.c.bf16 %v431_v22, %v431_v22  ;;  %v574_v11 = vpack.c.bf16 %v446_v12, %v446_v12  ;;  %v575_v8 = vpack.c.bf16 %v447_v5, %v447_v5 }
  0x82   :  { %1040 = vmatpush.bf16.xpose.msrb.mxu1 %v1018_v28  ;;  %v1015_v28 = vsel %vm608_vm0, %v4708_v45, 0  ;;  %v1175_v33 = vsel %vm608_vm0, %v4722_v16, 0 }
  0x83   :  { %1120 = vmatpush.bf16.xpose.msrb.mxu2 %v1098_v17  ;;  %v415_v17 = vld [vmem:[%s6119_s8 + $0x288] sm:$0xff]  ;;  %v1145_v58 = vunpack.c.l.b16 %v559_v26  ;;  %v1255_v45 = vsel %vm608_vm0, %v4724_v7, 0  ;;  %v1224_v24 = vunpack.c.l.b16 %v574_v11  ;;  %v1225_v38 = vunpack.c.l.b16 %v575_v8 }
  0x84   :  { %1200 = vmatpush.bf16.xpose.msrb.mxu3 %v1178_v40  ;;  %v543_v40 = vpack.c.bf16 %v415_v17, %v415_v17  ;;  %v1144_v17 = vunpack.c.l.b16 %v558_v54 }
  0x85   :  { %1280 = vmatpush.bf16.xpose.msra.mxu0 %v1258_v42  ;;  %v984_v42 = vunpack.c.l.b16 %v526_v41  ;;  %v1064_v41 = vunpack.c.l.b16 %v542_v31 }
  0x86   :  { %v1065_v6 = vunpack.c.l.b16 %v543_v40  ;;  %v4754_v31 = vpack.c.b16 %v1145_v58, %v1144_v17  ;;  %v4756_v40 = vpack.c.b16 %v1225_v38, %v1224_v24 }
  0x87   :  { %v4750_v18 = vpack.c.b16 %v985_v23, %v984_v42 }
  0x88   :  { %v4752_v22 = vpack.c.b16 %v1065_v6, %v1064_v41  ;;  %v1172_v5 = vsel %vm608_vm0, %v4754_v31, 0  ;;  %v1252_v42 = vsel %vm608_vm0, %v4756_v40, 0 }
  0x89   :  { %v1012_v12 = vsel %vm608_vm0, %v4750_v18, 0 }
  0x8a   :  { %1041 = vmatpush.bf16.xpose.msrb.mxu1 %v1015_v28  ;;  %v1092_v28 = vsel %vm608_vm0, %v4752_v22, 0 }
  0x8b   :  { %1121 = vmatpush.bf16.xpose.msrb.mxu2 %v1095_v13 }
  0x8c   :  { %1201 = vmatpush.bf16.xpose.msrb.mxu3 %v1175_v33 }
  0x8d   :  { %1281 = vmatpush.bf16.xpose.msra.mxu0 %v1255_v45 }
  0x92   :  { %1042 = vmatpush.bf16.xpose.msrb.mxu1 %v1012_v12 }
  0x93   :  { %1122 = vmatpush.bf16.xpose.msrb.mxu2 %v1092_v28 }
  0x94   :  { %1202 = vmatpush.bf16.xpose.msrb.mxu3 %v1172_v5 }
  0x95   :  { %1282 = vmatpush.bf16.xpose.msra.mxu0 %v1252_v42  ;;  %v621_v58 = vpop.f32.mrf.mxu0 }
  0x96   :  { %v640_v45 = vpack.c.bf16 %v621_v58, %v621_v58  ;;  %v626_v38 = vrot.slane %v621_v58, 1  ;;  %v627_v24 = vrot.slane %v621_v58, 2  ;;  %v628_v23 = vrot.slane %v621_v58, 3 }
  0x97   :  { %v630_v13 = vrot.slane %v621_v58, 5 }
  0x98   :  { %3577 = vmatmul.msk.bf16.vlgmr.msra.gmra.mxu1 %vm608_vm0, %v640_v45  ;;  %v641_v54 = vpack.c.bf16 %v626_v38, %v626_v38  ;;  %v642_v26 = vpack.c.bf16 %v627_v24, %v627_v24  ;;  %v643_v11 = vpack.c.bf16 %v628_v23, %v628_v23  ;;  %v590_v38 = vld [vmem:[%s6157_s0] sm:$0xff] }
  0x9a   :  { %1424 = vmatpush.bf16.msra.mxu1 %v4160_v30  ;;  %3578 = vmatmul.msk.bf16.vlgmr.msra.gmra.mxu2 %vm608_vm0, %v641_v54  ;;  %v629_v30 = vrot.slane %v621_v58, 4 }
  0x9b   :  { %3579 = vmatmul.msk.bf16.vlgmr.msra.gmra.mxu3 %vm608_vm0, %v642_v26  ;;  %3580 = vmatmul.msk.bf16.vlgmr.msrb.gmra.mxu0 %vm608_vm0, %v643_v11 }
  0x9c   :  { %1445 = vmatpush.bf16.msra.mxu2 %v4162_v34  ;;  %1466 = vmatpush.bf16.msra.mxu3 %v4164_v35  ;;  %v631_v34 = vrot.slane %v621_v58, 6  ;;  %v632_v35 = vrot.slane %v621_v58, 7 }
  0x9d   :  { %1487 = vmatpush.bf16.msrb.mxu0 %v4189_v49  ;;  %v623_v8 = vpop.f32.mrf.mxu0  ;;  %v644_v49 = vpack.c.bf16 %v629_v30, %v629_v30  ;;  %v1338_v30 = vrot.slane %v590_v38, 1 }
  0x9e   :  { %1425 = vmatpush.bf16.msra.mxu1 %v4191_v51  ;;  %v645_v51 = vpack.c.bf16 %v630_v13, %v630_v13 }
  0xa0   :  { %1446 = vmatpush.bf16.msra.mxu2 %v4206_v63  ;;  %1467 = vmatpush.bf16.msra.mxu3 %v4219_v10  ;;  %v646_v63 = vpack.c.bf16 %v631_v34, %v631_v34  ;;  %v647_v10 = vpack.c.bf16 %v632_v35, %v632_v35 }
  0xa1   :  { %1488 = vmatpush.bf16.msrb.mxu0 %v4221_v14  ;;  %v6139_v14 = vld [vmem:[#allocation3_spill] sm:$0xff] }
  0xa2   :  { %1426 = vmatpush.bf16.msra.mxu1 %v4239_v27  ;;  %v6140_v27 = vld [vmem:[#allocation4_spill] sm:$0xff] }
  0xa4   :  { %1447 = vmatpush.bf16.msra.mxu2 %v4244_v32  ;;  %1468 = vmatpush.bf16.msra.mxu3 %v4249_v39  ;;  %v6141_v32 = vld [vmem:[#allocation5_spill] sm:$0xff]  ;;  %v6142_v39 = vld [vmem:[#allocation6_spill] sm:$0xff] }
  0xa5   :  { %1489 = vmatpush.bf16.msrb.mxu0 %v4267_v56  ;;  %v6143_v56 = vld [vmem:[#allocation8_spill] sm:$0xff] }
  0xa6   :  { %1427 = vmatpush.bf16.msra.mxu1 %v4288_v9  ;;  %v6144_v9 = vld [vmem:[#allocation7_spill] sm:$0xff] }
  0xa8   :  { %1448 = vmatpush.bf16.msra.mxu2 %v4290_v15  ;;  %3581 = vmatmul.msk.bf16.vlgmr.msrb.gmra.mxu1 %vm608_vm0, %v644_v49  ;;  %v6145_v15 = vld [vmem:[#allocation9_spill] sm:$0xff] }
  0xa9   :  { %1469 = vmatpush.bf16.msra.mxu3 %v4295_v20  ;;  %1490 = vmatpush.bf16.msrb.mxu0 %v4300_v25  ;;  %v6146_v20 = vld [vmem:[#allocation10_spill] sm:$0xff]  ;;  %v6147_v25 = vld [vmem:[#allocation12_spill] sm:$0xff] }
  0xaa   :  { %1428 = vmatpush.bf16.msra.mxu1 %v4314_v43  ;;  %3582 = vmatmul.msk.bf16.vlgmr.msrb.gmra.mxu2 %vm608_vm0, %v645_v51  ;;  %v6148_v43 = vld [vmem:[#allocation11_spill] sm:$0xff] }
  0xab   :  { %3583 = vmatmul.msk.bf16.vlgmr.msrb.gmra.mxu3 %vm608_vm0, %v646_v63  ;;  %3584 = vmatmul.msk.bf16.vlgmr.msra.gmra.mxu0 %vm608_vm0, %v647_v10  ;;  %v1340_v63 = vrot.slane %v590_v38, 3 }
  0xac   :  { %1449 = vmatpush.bf16.msra.mxu2 %v4316_v44  ;;  %v6149_v44 = vld [vmem:[#allocation13_spill] sm:$0xff] }
  0xad   :  { %1470 = vmatpush.bf16.msra.mxu3 %v4332_v53  ;;  %1491 = vmatpush.bf16.msrb.mxu0 %v4364_v19  ;;  %v6150_v53 = vld [vmem:[#allocation14_spill] sm:$0xff]  ;;  %v6151_v19 = vld [vmem:[#allocation15_spill] sm:$0xff] }
  0xae   :  { %1429 = vmatpush.bf16.msra.mxu1 %v4371_v48  ;;  %v6152_v48 = vld [vmem:[#allocation16_spill] sm:$0xff] }
  0xb0   :  { %1450 = vmatpush.bf16.msra.mxu2 %v4376_v55  ;;  %v6153_v55 = vld [vmem:[#allocation17_spill] sm:$0xff] }
  0xb1   :  { %1471 = vmatpush.bf16.msra.mxu3 %v4378_v57  ;;  %1492 = vmatpush.bf16.msrb.mxu0 %v4383_v59  ;;  %v6154_v57 = vld [vmem:[#allocation18_spill] sm:$0xff]  ;;  %v6155_v59 = vld [vmem:[#allocation20_spill] sm:$0xff] }
  0xb2   :  { %1430 = vmatpush.bf16.msra.mxu1 %v4385_v60  ;;  %v6156_v60 = vld [vmem:[#allocation19_spill] sm:$0xff] }
  0xb4   :  { %1451 = vmatpush.bf16.msra.mxu2 %v4387_v62 }
  0xb5   :  { %1472 = vmatpush.bf16.msra.mxu3 %v4394_v3  ;;  %1493 = vmatpush.bf16.msrb.mxu0 %v4450_v4 }
  0xb6   :  { %1431 = vmatpush.bf16.msra.mxu1 %v4466_v50 }
  0xb8   :  { %1452 = vmatpush.bf16.msra.mxu2 %v4476_v0 }
  0xb9   :  { %1473 = vmatpush.bf16.msra.mxu3 %v4478_v1  ;;  %1494 = vmatpush.bf16.msrb.mxu0 %v4480_v29 }
  0xba   :  { %1508 = vmatpush.bf16.msrb.mxu1 %v4474_v61 }
  0xbc   :  { %1529 = vmatpush.bf16.msrb.mxu2 %v4488_v2 }
  0xbd   :  { %1550 = vmatpush.bf16.msrb.mxu3 %v6139_v14  ;;  %1571 = vmatpush.bf16.msra.mxu0 %v6140_v27 }
  0xbe   :  { %1509 = vmatpush.bf16.msrb.mxu1 %v4520_v52 }
  0xc0   :  { %1530 = vmatpush.bf16.msrb.mxu2 %v6141_v32 }
  0xc1   :  { %1551 = vmatpush.bf16.msrb.mxu3 %v6142_v39  ;;  %1572 = vmatpush.bf16.msra.mxu0 %v6144_v9  ;;  %v1339_v39 = vrot.slane %v590_v38, 2 }
  0xc2   :  { %1510 = vmatpush.bf16.msrb.mxu1 %v6143_v56 }
  0xc4   :  { %1531 = vmatpush.bf16.msrb.mxu2 %v6145_v15 }
  0xc5   :  { %1552 = vmatpush.bf16.msrb.mxu3 %v6146_v20  ;;  %1573 = vmatpush.bf16.msra.mxu0 %v6148_v43 }
  0xc6   :  { %1511 = vmatpush.bf16.msrb.mxu1 %v6147_v25 }
  0xc8   :  { %1532 = vmatpush.bf16.msrb.mxu2 %v6149_v44 }
  0xc9   :  { %1553 = vmatpush.bf16.msrb.mxu3 %v6150_v53  ;;  %1574 = vmatpush.bf16.msra.mxu0 %v6151_v19 }
  0xca   :  { %1512 = vmatpush.bf16.msrb.mxu1 %v4648_v46 }
  0xcc   :  { %1533 = vmatpush.bf16.msrb.mxu2 %v4656_v47 }
  0xcd   :  { %1554 = vmatpush.bf16.msrb.mxu3 %v4658_v21  ;;  %1575 = vmatpush.bf16.msra.mxu0 %v6152_v48 }
  0xce   :  { %1513 = vmatpush.bf16.msrb.mxu1 %v4668_v37 }
  0xd0   :  { %1534 = vmatpush.bf16.msrb.mxu2 %v6153_v55 }
  0xd1   :  { %1555 = vmatpush.bf16.msrb.mxu3 %v6154_v57  ;;  %1576 = vmatpush.bf16.msra.mxu0 %v6156_v60 }
  0xd2   :  { %1514 = vmatpush.bf16.msrb.mxu1 %v6155_v59  ;;  %v1341_v59 = vrot.slane %v590_v38, 4 }
  0xd4   :  { %1535 = vmatpush.bf16.msrb.mxu2 %v4718_v36 }
  0xd5   :  { %1556 = vmatpush.bf16.msrb.mxu3 %v4722_v16  ;;  %1577 = vmatpush.bf16.msra.mxu0 %v4724_v7 }
  0xd6   :  { %1515 = vmatpush.bf16.msrb.mxu1 %v4750_v18 }
  0xd8   :  { %1536 = vmatpush.bf16.msrb.mxu2 %v4752_v22 }
  0xd9   :  { %1557 = vmatpush.bf16.msrb.mxu3 %v4754_v31  ;;  %1578 = vmatpush.bf16.msra.mxu0 %v4756_v40 }
 0x115   :  { %v724_v62 = vpop.f32.mrf.mxu1 }
 0x116   :  { %v1289_v3 = vsel %vm1288_vm1, %v724_v62, -inf }
 0x117   :  { %1290 = vmax.xlane.f32.xlu1 %v1289_v3 }
 0x118   :  { %v964_v4 = vpop.f32.mrf.mxu0 }
 0x119   :  { %v1298_v29 = vsel %vm1288_vm1, %v964_v4, -inf }
 0x11d   :  { %v726_v50 = vpop.f32.mrf.mxu1  ;;  %v804_v61 = vpop.f32.mrf.mxu2 }
 0x11e   :  { %v884_v0 = vpop.f32.mrf.mxu3  ;;  %v1292_v1 = vsel %vm1288_vm1, %v804_v61, -inf }
 0x11f   :  { %1293 = vmax.xlane.f32.xlu0 %v1292_v1  ;;  %1299 = vmax.xlane.f32.xlu1 %v1298_v29  ;;  %v1295_v21 = vsel %vm1288_vm1, %v884_v0, -inf }
 0x120   :  { %v966_v2 = vpop.f32.mrf.mxu0 }
 0x121   :  { %v1344_v2 = vrot.slane %v590_v38, 7 }
 0x125   :  { %v806_v52 = vpop.f32.mrf.mxu2  ;;  %v1044_v46 = vpop.f32.mrf.mxu1 }
 0x126   :  { %v886_v47 = vpop.f32.mrf.mxu3  ;;  %v1301_v6 = vsel %vm1288_vm1, %v1044_v46, -inf }
 0x127   :  { %1296 = vmax.xlane.f32.xlu0 %v1295_v21 }
 0x128   :  { %v1284_v37 = vpop.f32.mrf.mxu0 }
 0x129   :  { %v1310_v36 = vsel %vm1288_vm1, %v1284_v37, -inf }
 0x12a   :  { %1311 = vmax.xlane.f32.xlu1 %v1310_v36 }
 0x12d   :  { %v1046_v16 = vpop.f32.mrf.mxu1  ;;  %v1124_v7 = vpop.f32.mrf.mxu2 }
 0x12e   :  { %v4843_v41 = vpop.f32.mrf.mxu3  ;;  %v1304_v33 = vsel %vm1288_vm1, %v1124_v7, -inf }
 0x12f   :  { %1302 = vmax.xlane.f32.xlu0 %v1301_v6  ;;  %1305 = vmax.xlane.f32.xlu2 %v1304_v33  ;;  %v1307_v31 = vsel %vm1288_vm1, %v4843_v41, -inf }
 0x130   :  { %v1286_v17 = vpop.f32.mrf.mxu0 }
 0x135   :  { %v1126_v18 = vpop.f32.mrf.mxu2 }
 0x136   :  { %v1206_v22 = vpop.f32.mrf.mxu3 }
 0x137   :  { %1308 = vmax.xlane.f32.xlu2 %v1307_v31 }
 0x18a   :  { %v1291_v40 = vpop.xlane.xlu1 %1290 }
 0x18b   :  { %v1313_v12 = vsub.f32 %v724_v62, %v1291_v40  ;;  %v1342_v62 = vrot.slane %v590_v38, 5 }
 0x18d   :  { %v1321_v28 = vmul.f32 1.442695, %v1313_v12 }
 0x18f   :  { %3887 = vpow2.f32 %v1321_v28 }
 0x192   :  { %v1294_v5 = vpop.xlane.xlu0 %1293  ;;  %v1300_v42 = vpop.xlane.xlu1 %1299 }
 0x193   :  { %v1314_v58 = vsub.f32 %v804_v61, %v1294_v5  ;;  %v1316_v45 = vsub.f32 %v964_v4, %v1300_v42 }
 0x195   :  { %v3888_v24 = vpop.eup %3887  ;;  %v1323_v23 = vmul.f32 1.442695, %v1314_v58  ;;  %v1327_v26 = vmul.f32 1.442695, %v1316_v45 }
 0x196   :  { %v4852_v54 = vmul.f32 %v3888_v24, %v590_v38 }
 0x197   :  { %3889 = vpow2.f32 %v1323_v23 }
 0x198   :  { %v1360_v11 = vsel %vm1288_vm1, %v4852_v54, 0.0  ;;  %3891 = vpow2.f32 %v1327_v26 }
 0x199   :  { %1361 = vadd.xlane.f32.xlu1 %v1360_v11 }
 0x19a   :  { %v1297_v8 = vpop.xlane.xlu0 %1296 }
 0x19b   :  { %v1315_v13 = vsub.f32 %v884_v0, %v1297_v8 }
 0x19d   :  { %v3890_v34 = vpop.eup %3889  ;;  %v1325_v35 = vmul.f32 1.442695, %v1315_v13  ;;  %v1312_v14 = vpop.xlane.xlu1 %1311 }
 0x19e   :  { %v4856_v49 = vmul.f32 %v3890_v34, %v1338_v30  ;;  %v3892_v10 = vpop.eup %3891  ;;  %v1320_v15 = vsub.f32 %v1284_v37, %v1312_v14 }
 0x19f   :  { %3893 = vpow2.f32 %v1325_v35  ;;  %v4860_v20 = vmul.f32 %v3892_v10, %v1340_v63 }
 0x1a0   :  { %v1363_v51 = vsel %vm1288_vm1, %v4856_v49, 0.0  ;;  %v1335_v19 = vmul.f32 1.442695, %v1320_v15 }
 0x1a1   :  { %1364 = vadd.xlane.f32.xlu2 %v1363_v51  ;;  %v1369_v55 = vsel %vm1288_vm1, %v4860_v20, 0.0 }
 0x1a2   :  { %v1303_v27 = vpop.xlane.xlu0 %1302  ;;  %v1306_v32 = vpop.xlane.xlu2 %1305 }
 0x1a3   :  { %v1317_v56 = vsub.f32 %v1044_v46, %v1303_v27  ;;  %v1318_v9 = vsub.f32 %v1124_v7, %v1306_v32  ;;  %v1343_v46 = vrot.slane %v590_v38, 6 }
 0x1a5   :  { %v3894_v25 = vpop.eup %3893  ;;  %v1329_v43 = vmul.f32 1.442695, %v1317_v56  ;;  %v1331_v44 = vmul.f32 1.442695, %v1318_v9 }
 0x1a6   :  { %v1354_v53 = vmul.f32 %v3894_v25, %v1339_v39 }
 0x1a7   :  { %3895 = vpow2.f32 %v1329_v43 }
 0x1a8   :  { %3897 = vpow2.f32 %v1331_v44  ;;  %v1366_v48 = vsel %vm1288_vm1, %v1354_v53, 0.0  ;;  %v3837_v44 = vld [vmem:[%s6158_s11] sm:$0xff] }
 0x1a9   :  { %1367 = vadd.xlane.f32.xlu0 %v1366_v48  ;;  %1370 = vadd.xlane.f32.xlu2 %v1369_v55  ;;  %3899 = vpow2.f32 %v1335_v19  ;;  %v3841_v48 = vld [vmem:[%s6160_s9 + $0x8] sm:$0xff]  ;;  %v3846_v55 = vld [vmem:[%s6160_s9 + $0x18] sm:$0xff] }
 0x1aa   :  { %v1309_v57 = vpop.xlane.xlu2 %1308 }
 0x1ab   :  { %v1319_v60 = vsub.f32 %v4843_v41, %v1309_v57  ;;  %v3840_v57 = vld [vmem:[%s6160_s9] sm:$0xff] }
 0x1ad   :  { %v3896_v3 = vpop.eup %3895  ;;  %v1333_v4 = vmul.f32 1.442695, %v1319_v60  ;;  %v72_v60 = vld [vmem:[%s6118_s6] sm:$0xff] }
 0x1ae   :  { %v3898_v50 = vpop.eup %3897  ;;  %v1356_v61 = vmul.f32 %v3896_v3, %v1341_v59  ;;  %v3845_v59 = vld [vmem:[%s6160_s9 + $0x10] sm:$0xff]  ;;  %v4900_v3 = vpack.c.bf16 %v72_v60, %v72_v60 }
 0x1af   :  { %3901 = vpow2.f32 %v1333_v4  ;;  %v1357_v0 = vmul.f32 %v3898_v50, %v1342_v62  ;;  %v3900_v52 = vpop.eup %3899  ;;  %v3844_v4 = vld [vmem:[%s6161_s1 + $0x18] sm:$0xff]  ;;  %v3839_v50 = vld [vmem:[%s6161_s1 + $0x8] sm:$0xff] }
 0x1b0   :  { %v1372_v1 = vsel %vm1288_vm1, %v1356_v61, 0.0  ;;  %v1359_v21 = vmul.f32 %v3900_v52, %v1344_v2  ;;  %v3843_v2 = vld [vmem:[%s6161_s1 + $0x10] sm:$0xff]  ;;  %v3838_v52 = vld [vmem:[%s6161_s1] sm:$0xff] }
 0x1b1   :  { %v1375_v29 = vsel %vm1288_vm1, %v1357_v0, 0.0  ;;  %1373 = vadd.xlane.f32.xlu2 %v1372_v1  ;;  %v3854_v1 = vld [vmem:[%s6161_s1 + $0x38] sm:$0xff] }
 0x1b2   :  { %1376 = vadd.xlane.f32.xlu0 %v1375_v29  ;;  %v1381_v16 = vsel %vm1288_vm1, %v1359_v21, 0.0  ;;  %v4921_v29 = vld [vmem:[%s6162_s30] ss:$0 sm:$0xff] }
 0x1b5   :  { %v3902_v47 = vpop.eup %3901 }
 0x1b6   :  { %v1358_v37 = vmul.f32 %v3902_v47, %v1343_v46  ;;  %v3848_v46 = vld [vmem:[%s6161_s1 + $0x20] sm:$0xff] }
 0x1b8   :  { %v1378_v36 = vsel %vm1288_vm1, %v1358_v37, 0.0 }
 0x1b9   :  { %1379 = vadd.xlane.f32.xlu1 %v1378_v36 }
 0x1ba   :  { %1382 = vadd.xlane.f32.xlu0 %v1381_v16 }
 0x20c   :  { %v1362_v7 = vpop.xlane.xlu1 %1361 }
 0x20d   :  { %v1384_v41 = vadd.f32 1e-13, %v1362_v7 }
 0x20f   :  { %3903 = vrcp.f32 %v1384_v41  ;;  %v3847_v41 = vld [vmem:[%s6158_s11 + $0x10] sm:$0xff] }
 0x214   :  { %v1365_v6 = vpop.xlane.xlu2 %1364 }
 0x215   :  { %v3904_v33 = vpop.eup %3903  ;;  %v1385_v17 = vadd.f32 1e-13, %v1365_v6  ;;  %v3842_v6 = vld [vmem:[%s6158_s11 + $0x8] sm:$0xff] }
 0x216   :  { %v1400_v18 = vmul.f32 %v3904_v33, %v4852_v54  ;;  %v3852_v33 = vld [vmem:[%s6158_s11 + $0x18] sm:$0xff] }
 0x217   :  { %3905 = vrcp.f32 %v1385_v17 }
 0x218   :  { %v1408_v22 = vpack.c.bf16 %v1400_v18, %v1400_v18 }
 0x21a   :  { %1432 = vmatmul.bf16.vlgmr.msra.gmra.mxu1 %v1408_v22 }
 0x21b   :  { %1659 = vmatpush.bf16.msra.mxu1 %v3839_v50 }
 0x21c   :  { %v1368_v31 = vpop.xlane.xlu0 %1367  ;;  %v1371_v40 = vpop.xlane.xlu2 %1370 }
 0x21d   :  { %v3906_v12 = vpop.eup %3905  ;;  %v1386_v28 = vadd.f32 1e-13, %v1368_v31  ;;  %v1387_v5 = vadd.f32 1e-13, %v1371_v40 }
 0x21e   :  { %v1401_v42 = vmul.f32 %v3906_v12, %v4856_v49 }
 0x21f   :  { %3907 = vrcp.f32 %v1386_v28  ;;  %1660 = vmatpush.bf16.msra.mxu1 %v3838_v52 }
 0x220   :  { %3909 = vrcp.f32 %v1387_v5  ;;  %v1409_v58 = vpack.c.bf16 %v1401_v42, %v1401_v42 }
 0x222   :  { %1453 = vmatmul.bf16.vlgmr.msra.gmra.mxu2 %v1409_v58 }
 0x223   :  { %1683 = vmatpush.bf16.msra.mxu2 %v3837_v44 }
 0x224   :  { %v1374_v45 = vpop.xlane.xlu2 %1373 }
 0x225   :  { %v3908_v38 = vpop.eup %3907  ;;  %v1377_v24 = vpop.xlane.xlu0 %1376  ;;  %v1388_v23 = vadd.f32 1e-13, %v1374_v45 }
 0x226   :  { %v3910_v26 = vpop.eup %3909  ;;  %v1389_v54 = vadd.f32 1e-13, %v1377_v24  ;;  %v1402_v11 = vmul.f32 %v3908_v38, %v1354_v53  ;;  %v71_v53 = vld [vmem:[%s6159_s10] sm:$0xff] }
 0x227   :  { %3911 = vrcp.f32 %v1388_v23  ;;  %v1403_v8 = vmul.f32 %v3910_v26, %v4860_v20  ;;  %v4879_v19 = vpack.c.bf16 %v71_v53, %v71_v53 }
 0x228   :  { %3913 = vrcp.f32 %v1389_v54  ;;  %v1410_v30 = vpack.c.bf16 %v1402_v11, %v1402_v11 }
 0x229   :  { %v1411_v13 = vpack.c.bf16 %v1403_v8, %v1403_v8 }
 0x22a   :  { %1474 = vmatmul.bf16.vlgmr.msra.gmra.mxu3 %v1410_v30 }
 0x22b   :  { %1495 = vmatmul.bf16.vlgmr.msrb.gmra.mxu0 %v1411_v13  ;;  %1714 = vmatpush.bf16.msra.mxu3 %v3841_v48 }
 0x22c   :  { %v1380_v34 = vpop.xlane.xlu1 %1379  ;;  %1772 = vmatpush.bf16.msrb.mxu0 %v3844_v4 }
 0x22d   :  { %v3912_v35 = vpop.eup %3911  ;;  %v1383_v49 = vpop.xlane.xlu0 %1382  ;;  %v1390_v51 = vadd.f32 1e-13, %v1380_v34 }
 0x22e   :  { %v3914_v63 = vpop.eup %3913  ;;  %v1391_v10 = vadd.f32 1e-13, %v1383_v49  ;;  %v1404_v14 = vmul.f32 %v3912_v35, %v1356_v61 }
 0x22f   :  { %3915 = vrcp.f32 %v1390_v51  ;;  %v1405_v27 = vmul.f32 %v3914_v63, %v1357_v0  ;;  %1715 = vmatpush.bf16.msra.mxu3 %v3840_v57  ;;  %v3849_v0 = vld [vmem:[%s6161_s1 + $0x28] sm:$0xff] }
 0x230   :  { %3917 = vrcp.f32 %v1391_v10  ;;  %v1412_v32 = vpack.c.bf16 %v1404_v14, %v1404_v14  ;;  %1773 = vmatpush.bf16.msrb.mxu0 %v3843_v2 }
 0x231   :  { %v1413_v39 = vpack.c.bf16 %v1405_v27, %v1405_v27 }
 0x232   :  { %1516 = vmatmul.bf16.vlgmr.msrb.gmra.mxu1 %v1412_v32 }
 0x233   :  { %1537 = vmatmul.bf16.vlgmr.msrb.gmra.mxu2 %v1413_v39  ;;  %1792 = vmatpush.bf16.msrb.mxu1 %v3842_v6 }
 0x234   :  { %1821 = vmatpush.bf16.msrb.mxu2 %v3846_v55 }
 0x235   :  { %v3916_v56 = vpop.eup %3915 }
 0x236   :  { %v3918_v9 = vpop.eup %3917  ;;  %v1406_v15 = vmul.f32 %v3916_v56, %v1358_v37 }
 0x237   :  { %v1407_v20 = vmul.f32 %v3918_v9, %v1359_v21  ;;  %v3853_v21 = vld [vmem:[%s6161_s1 + $0x30] sm:$0xff] }
 0x238   :  { %v1414_v25 = vpack.c.bf16 %v1406_v15, %v1406_v15  ;;  %1822 = vmatpush.bf16.msrb.mxu2 %v3845_v59 }
 0x239   :  { %v1415_v43 = vpack.c.bf16 %v1407_v20, %v1407_v20 }
 0x23a   :  { %1558 = vmatmul.bf16.vlgmr.msrb.gmra.mxu3 %v1414_v25 }
 0x23b   :  { %1579 = vmatmul.bf16.vlgmr.msra.gmra.mxu0 %v1415_v43  ;;  %1880 = vmatpush.bf16.msrb.mxu3 %v3849_v0 }
 0x23c   :  { %1900 = vmatpush.bf16.msra.mxu0 %v3847_v41 }
 0x23f   :  { %1881 = vmatpush.bf16.msrb.mxu3 %v3848_v46 }
 0x243   :  { %3598 = vmatmul.msk.bf16.vlgmr.msra.gmra.mxu2 %vm1672_vm2, %v4879_v19 }
 0x244   :  { %1970 = vmatpush.bf16.msra.mxu2 %v3854_v1 }
 0x248   :  { %1971 = vmatpush.bf16.msra.mxu2 %v3853_v21 }
 0x24a   :  { %3607 = vmatmul.msk.bf16.vlgmr.msra.gmra.mxu3 %vm608_vm0, %v4900_v3 }
 0x24b   :  { %1990 = vmatpush.bf16.msra.mxu3 %v3852_v33 }
 0x253   :  { %3641 = vmatmul.msk.bf16.vlgmr.msrb.gmra.mxu2 %vm608_vm0, %v4900_v3 }
 0x297   :  { %v4898_v62 = vpop.f32.mrf.mxu1 }
 0x298   :  { %v3389_v36 = vmul.f32 %v4921_v29, %v4898_v62  ;;  %v1585_v30 = vpack.c.bf16 %v4898_v62, %v4898_v62 }
 0x29a   :  { %v1608_v39 = vunpack.c.l.b16 %v1585_v30 }
 0x29f   :  { %v1435_v61 = vpop.f32.mrf.mxu1 }
 0x2a5   :  { %v1454_v47 = vpop.f32.mrf.mxu2 }
 0x2a6   :  { %v3390_v37 = vmul.f32 %v4921_v29, %v1454_v47  ;;  %v1586_v12 = vpack.c.bf16 %v1454_v47, %v1454_v47 }
 0x2a8   :  { %v3405_v16 = vrot.slane %v3390_v37, 7  ;;  %v1496_v7 = vpop.f32.mrf.mxu0  ;;  %v1609_v26 = vunpack.c.l.b16 %v1586_v12 }
 0x2a9   :  { %v3392_v18 = vmul.f32 %v4921_v29, %v1496_v7  ;;  %v1588_v13 = vpack.c.bf16 %v1496_v7, %v1496_v7 }
 0x2aa   :  { %v3406_v17 = vsel %vm1617_vm3, %v3405_v16, %v3389_v36  ;;  %v1616_v51 = vrot.slane %v1609_v26, 7 }
 0x2ab   :  { %v3409_v38 = vrot.slane %v3392_v18, 5  ;;  %v1611_v56 = vunpack.c.l.b16 %v1588_v13  ;;  %v3851_v18 = vld [vmem:[%s6160_s9 + $0x28] sm:$0xff] }
 0x2ac   :  { %v1618_v20 = vsel %vm1617_vm3, %v1616_v51, %v1608_v39  ;;  %v3863_v39 = vld [vmem:[%s6045_s14 + $0x10] sm:$0xff] }
 0x2ad   :  { %v1456_v22 = vpop.f32.mrf.mxu2  ;;  %v1475_v31 = vpop.f32.mrf.mxu3  ;;  %v1622_v48 = vrot.slane %v1611_v56, 5 }
 0x2ae   :  { %v3391_v40 = vmul.f32 %v4921_v29, %v1475_v31  ;;  %v1587_v5 = vpack.c.bf16 %v1475_v31, %v1475_v31  ;;  %v3855_v22 = vld [vmem:[%s6160_s9 + $0x30] sm:$0xff]  ;;  %v3850_v31 = vld [vmem:[%s6160_s9 + $0x20] sm:$0xff] }
 0x2af   :  { %v1517_v28 = vpop.f32.mrf.mxu1 }
 0x2b0   :  { %v3407_v42 = vrot.slane %v3391_v40, 6  ;;  %v1498_v58 = vpop.f32.mrf.mxu0  ;;  %v3393_v45 = vmul.f32 %v4921_v29, %v1517_v28  ;;  %v1610_v11 = vunpack.c.l.b16 %v1587_v5  ;;  %v1589_v35 = vpack.c.bf16 %v1517_v28, %v1517_v28 }
 0x2b2   :  { %v3408_v24 = vsel %vm1620_vm4, %v3407_v42, %v3406_v17  ;;  %v3411_v23 = vrot.slane %v3393_v45, 4  ;;  %v1619_v27 = vrot.slane %v1610_v11, 6  ;;  %v1612_v15 = vunpack.c.l.b16 %v1589_v35  ;;  %v3856_v17 = vld [vmem:[%s6160_s9 + $0x38] sm:$0xff] }
 0x2b3   :  { %v3410_v54 = vsel %vm1623_vm5, %v3409_v38, %v3408_v24 }
 0x2b4   :  { %v3412_v8 = vsel %vm1626_vm6, %v3411_v23, %v3410_v54  ;;  %v1621_v53 = vsel %vm1620_vm4, %v1619_v27, %v1618_v20  ;;  %v1625_v59 = vrot.slane %v1612_v15, 4  ;;  %v3876_v23 = vld [vmem:[%s6044_s12] ss:$0 sm:$0xff] }
 0x2b5   :  { %v1477_v34 = vpop.f32.mrf.mxu3  ;;  %v1624_v50 = vsel %vm1623_vm5, %v1622_v48, %v1621_v53  ;;  %v3862_v53 = vld [vmem:[%s6046_s13 + $0x18] sm:$0xff]  ;;  %v3860_v48 = vld [vmem:[%s6045_s14 + $0x8] sm:$0xff] }
 0x2b6   :  { %v1538_v49 = vpop.f32.mrf.mxu2  ;;  %v1627_v47 = vsel %vm1626_vm6, %v1625_v59, %v1624_v50  ;;  %v3861_v59 = vld [vmem:[%s6046_s13 + $0x10] sm:$0xff] }
 0x2b7   :  { %v1590_v63 = vpack.c.bf16 %v1538_v49, %v1538_v49  ;;  %v3394_v10 = vmul.f32 %v4921_v29, %v1538_v49  ;;  %v1519_v14 = vpop.f32.mrf.mxu1 }
 0x2b8   :  { %v1580_v32 = vpop.f32.mrf.mxu0  ;;  %v3877_v14 = vld [vmem:[%s6044_s12 + $0x1] ss:$0 sm:$0xff] }
 0x2b9   :  { %v3413_v9 = vrot.slane %v3394_v10, 3  ;;  %v1613_v25 = vunpack.c.l.b16 %v1590_v63  ;;  %v1592_v43 = vpack.c.bf16 %v1580_v32, %v1580_v32  ;;  %v3396_v55 = vmul.f32 %v4921_v29, %v1580_v32  ;;  %v3864_v63 = vld [vmem:[%s6045_s14 + $0x18] sm:$0xff] }
 0x2bb   :  { %v3414_v44 = vsel %vm1629_vm7, %v3413_v9, %v3412_v8  ;;  %v1628_v61 = vrot.slane %v1613_v25, 3  ;;  %v1615_v0 = vunpack.c.l.b16 %v1592_v43  ;;  %v3417_v46 = vrot.slane %v3396_v55, 1  ;;  %v6164_v43 = vld [vmem:[#allocation2_spill] sm:$0xff] }
 0x2bd   :  { %v1559_v57 = vpop.f32.mrf.mxu3  ;;  %v1630_v36 = vsel %vm1629_vm7, %v1628_v61, %v1627_v47  ;;  %v1634_v16 = vrot.slane %v1615_v0, 1 }
 0x2be   :  { %v1540_v60 = vpop.f32.mrf.mxu2  ;;  %v1591_v62 = vpack.c.bf16 %v1559_v57, %v1559_v57  ;;  %v3395_v4 = vmul.f32 %v4921_v29, %v1559_v57  ;;  %v3857_v57 = vld [vmem:[%s6046_s13] sm:$0xff] }
 0x2bf   :  { %v3872_v60 = vld [vmem:[%s6045_s14 + $0x38] sm:$0xff] }
 0x2c0   :  { %v1614_v1 = vunpack.c.l.b16 %v1591_v62  ;;  %v3415_v2 = vrot.slane %v3395_v4, 2  ;;  %v1582_v52 = vpop.f32.mrf.mxu0  ;;  %v3859_v62 = vld [vmem:[%s6045_s14] sm:$0xff] }
 0x2c2   :  { %v1631_v21 = vrot.slane %v1614_v1, 2  ;;  %v3416_v37 = vsel %vm6088_vm8, %v3415_v2, %v3414_v44  ;;  %v3858_v44 = vld [vmem:[%s6046_s13 + $0x8] sm:$0xff]  ;;  %v3879_v1 = vld [vmem:[%s6044_s12 + $0x3] ss:$0 sm:$0xff] }
 0x2c3   :  { %v4967_v29 = vsel %vm6087_vm9, %v3417_v46, %v3416_v37  ;;  %2112 = vmatpush.bf16.msrb.mxu2 %v3858_v44 }
 0x2c4   :  { %6163 = vst [vmem:[#allocation3_spill] sm:$0xff] %v4967_v29  ;;  %v1633_v7 = vsel %vm6088_vm8, %v1631_v21, %v1630_v36  ;;  %v3878_v36 = vld [vmem:[%s6044_s12 + $0x2] ss:$0 sm:$0xff] }
 0x2c5   :  { %v1636_v41 = vsel %vm6087_vm9, %v1634_v16, %v1633_v7  ;;  %v1561_v6 = vpop.f32.mrf.mxu3 }
 0x2c6   :  { %v1637_v33 = vpack.c.b16 %v1636_v41, %v1636_v41  ;;  %v1685_v40 = vpop.f32.mrf.mxu2  ;;  %v3871_v41 = vld [vmem:[%s6045_s14 + $0x30] sm:$0xff] }
 0x2c7   :  { %2113 = vmatpush.bf16.msrb.mxu2 %v3857_v57 }
 0x2c8   :  { %3593 = vmatmul.msk.bf16.vlgmr.msra.gmra.mxu1 %vm608_vm0, %v1637_v33  ;;  %3623 = vmatmul.msk.bf16.vlgmr.msrb.gmra.mxu0 %vm608_vm0, %v1637_v33 }
 0x2c9   :  { %3658 = vmatmul.msk.bf16.vlgmr.msrb.gmra.mxu3 %vm608_vm0, %v1637_v33  ;;  %3692 = vmatmul.msk.bf16.vlgmr.msra.gmra.mxu2 %vm608_vm0, %v1637_v33  ;;  %v3870_v33 = vld [vmem:[%s6046_s13 + $0x38] sm:$0xff] }
 0x2ca   :  { %2019 = vmatpush.bf16.msrb.mxu0 %v3856_v17  ;;  %1929 = vmatpush.bf16.msra.mxu1 %v3851_v18  ;;  %v3866_v17 = vld [vmem:[%s6046_s13 + $0x28] sm:$0xff] }
 0x2cb   :  { %2171 = vmatpush.bf16.msrb.mxu3 %v3864_v63  ;;  %2281 = vmatpush.bf16.msra.mxu2 %v3866_v17 }
 0x2cd   :  { %v1717_v28 = vpop.f32.mrf.mxu3 }
 0x2ce   :  { %2020 = vmatpush.bf16.msrb.mxu0 %v3855_v22  ;;  %1930 = vmatpush.bf16.msra.mxu1 %v3850_v31  ;;  %v1687_v12 = vpop.f32.mrf.mxu2  ;;  %v3868_v22 = vld [vmem:[%s6045_s14 + $0x28] sm:$0xff] }
 0x2cf   :  { %2172 = vmatpush.bf16.msrb.mxu3 %v3863_v39  ;;  %v3865_v12 = vld [vmem:[%s6046_s13 + $0x20] sm:$0xff] }
 0x2d0   :  { %2282 = vmatpush.bf16.msra.mxu2 %v3865_v12  ;;  %v3882_v12 = vld [vmem:[%s6047_s15 + $0x3] ss:$0 sm:$0xff] }
 0x2d5   :  { %v1719_v42 = vpop.f32.mrf.mxu3 }
 0x2d6   :  { %v1824_v5 = vpop.f32.mrf.mxu2 }
 0x2d8   :  { %3628 = vmatmul.msk.bf16.vlgmr.msrb.gmra.mxu1 %vm1672_vm2, %v4879_v19  ;;  %3663 = vmatmul.msk.bf16.vlgmr.msra.gmra.mxu0 %vm1672_vm2, %v4879_v19 }
 0x2d9   :  { %3697 = vmatmul.msk.bf16.vlgmr.msra.gmra.mxu3 %vm1672_vm2, %v4879_v19  ;;  %2196 = vmatpush.bf16.msra.mxu0 %v3862_v53 }
 0x2da   :  { %2084 = vmatpush.bf16.msrb.mxu1 %v3860_v48  ;;  %2323 = vmatpush.bf16.msra.mxu3 %v3872_v60 }
 0x2dd   :  { %2197 = vmatpush.bf16.msra.mxu0 %v3861_v59 }
 0x2de   :  { %v1826_v58 = vpop.f32.mrf.mxu2  ;;  %2085 = vmatpush.bf16.msrb.mxu1 %v3859_v62  ;;  %2324 = vmatpush.bf16.msra.mxu3 %v3871_v41 }
 0x2df   :  { %v3867_v58 = vld [vmem:[%s6045_s14 + $0x20] sm:$0xff] }
 0x2e8   :  { %3676 = vmatmul.msk.bf16.vlgmr.msra.gmra.mxu1 %vm608_vm0, %v4900_v3  ;;  %3710 = vmatmul.msk.bf16.vlgmr.msrb.gmra.mxu0 %vm608_vm0, %v4900_v3 }
 0x2e9   :  { %3748 = vmatmul.msk.bf16.vlgmr.msrb.gmra.mxu3 %vm608_vm0, %v6164_v43  ;;  %2348 = vmatpush.bf16.msrb.mxu0 %v3870_v33 }
 0x2ea   :  { %2256 = vmatpush.bf16.msra.mxu1 %v3868_v22  ;;  %v3874_v22 = vld [vmem:[%s6052_s7 + $0x8] sm:$0xff] }
 0x2ee   :  { %2257 = vmatpush.bf16.msra.mxu1 %v3867_v58 }
 0x2f8   :  { %3721 = vmatmul.msk.bf16.vlgmr.msrb.gmra.mxu1 %vm608_vm0, %v6164_v43 }
 0x2f9   :  { %3803 = vmatmul.msk.bf16.vlgmr.msra.gmra.mxu3 %vm608_vm0, %v6164_v43  ;;  %2412 = vmatpush.bf16.msrb.mxu1 %v3874_v22 }
 0x308   :  { %3776 = vmatmul.msk.bf16.vlgmr.msra.gmra.mxu1 %vm608_vm0, %v6164_v43 }
 0x345   :  { %v1662_v45 = vpop.f32.mrf.mxu1  ;;  %v1775_v38 = vpop.f32.mrf.mxu0 }
 0x346   :  { %v1686_v24 = vadd.f32 %v1685_v40, %v1662_v45  ;;  %v3869_v40 = vld [vmem:[%s6046_s13 + $0x30] sm:$0xff] }
 0x347   :  { %2349 = vmatpush.bf16.msrb.mxu0 %v3869_v40 }
 0x348   :  { %v1721_v19 = vadd.f32 %v1717_v28, %v1686_v24 }
 0x34a   :  { %v1726_v26 = vadd.f32 %v3876_v23, %v1721_v19 }
 0x34c   :  { %v3608_v54 = vmul.f32 -1.442695, %v1726_v26  ;;  %v1883_v11 = vpop.f32.mrf.mxu3  ;;  %v1973_v8 = vpop.f32.mrf.mxu2 }
 0x34d   :  { %v1664_v30 = vpop.f32.mrf.mxu1  ;;  %v1777_v3 = vpop.f32.mrf.mxu0 }
 0x34e   :  { %3919 = vpow2.f32 %v3608_v54 }
 0x354   :  { %v3920_v13 = vpop.eup %3919  ;;  %v1885_v34 = vpop.f32.mrf.mxu3 }
 0x355   :  { %v1975_v35 = vpop.f32.mrf.mxu2  ;;  %v1794_v49 = vpop.f32.mrf.mxu1  ;;  %v5006_v27 = vadd.f32 1.0, %v3920_v13 }
 0x356   :  { %v1902_v51 = vpop.f32.mrf.mxu0  ;;  %v1795_v10 = vadd.f32 %v1794_v49, %v1775_v38  ;;  %v75_v35 = vld [vmem:[%s6048_s2] sm:$0xff] }
 0x357   :  { %3921 = vrcp.f32 %v5006_v27  ;;  %v1903_v52 = vadd.f32 %v1902_v51, %v1883_v11  ;;  %vm1736_vm11 = vweird.f32 %v5006_v27  ;;  %v1742_v19 = vand.u32 2147483648, %v5006_v27 }
 0x358   :  { %v1828_v32 = vadd.f32 %v1824_v5, %v1795_v10  ;;  %v1740_v11 = vand.u32 2147483647, %v5006_v27 }
 0x359   :  { %v1743_v49 = vor.u32 1.1754944e-38, %v1742_v19 }
 0x35a   :  { %v1834_v56 = vadd.f32 %v3877_v14, %v1828_v32  ;;  %vm1741_vm9 = vcmp.eq.f32.partialorder %v1740_v11, 8.507059e+37 }
 0x35c   :  { %v3643_v9 = vmul.f32 -1.442695, %v1834_v56  ;;  %v1992_v15 = vpop.f32.mrf.mxu3 }
 0x35d   :  { %v1796_v20 = vpop.f32.mrf.mxu1  ;;  %v5023_v55 = vpop.eup %3921  ;;  %v1993_v61 = vadd.f32 %v1992_v15, %v1973_v8 }
 0x35e   :  { %v1904_v25 = vpop.f32.mrf.mxu0  ;;  %3923 = vpow2.f32 %v3643_v9  ;;  %v1732_v50 = vmul.f32 %v5023_v55, %v5006_v27  ;;  %vm1737_vm10 = vweird.f32 %v5023_v55 }
 0x35f   :  { %vm1738_vm13 = vmor %vm1736_vm11, %vm1737_vm10 }
 0x360   :  { %v1733_v16 = vsub.f32 1.0, %v1732_v50 }
 0x362   :  { %v1734_v31 = vmul.f32 %v5023_v55, %v1733_v16  ;;  %v3881_v16 = vld [vmem:[%s6047_s15] ss:$0 sm:$0xff] }
 0x364   :  { %v3924_v4 = vpop.eup %3923  ;;  %v1994_v0 = vpop.f32.mrf.mxu3  ;;  %v1735_v24 = vadd.f32 %v5023_v55, %v1734_v31 }
 0x365   :  { %v5042_v2 = vadd.f32 1.0, %v3924_v4  ;;  %v1932_v46 = vpop.f32.mrf.mxu1 }
 0x366   :  { %v2022_v47 = vpop.f32.mrf.mxu0  ;;  %v1936_v37 = vadd.f32 %v1932_v46, %v1903_v52  ;;  %v1739_v3 = vsel %vm1738_vm13, %v5023_v55, %v1735_v24  ;;  %v3880_v46 = vld [vmem:[%s6047_s15 + $0x1] ss:$0 sm:$0xff] }
 0x367   :  { %v2026_v21 = vadd.f32 %v2022_v47, %v1993_v61  ;;  %3925 = vrcp.f32 %v5042_v2  ;;  %v1850_v23 = vand.u32 2147483648, %v5042_v2  ;;  %v1848_v8 = vand.u32 2147483647, %v5042_v2 }
 0x368   :  { %v1942_v18 = vadd.f32 %v3878_v36, %v1936_v37  ;;  %vm1844_vm14 = vweird.f32 %v5042_v2  ;;  %v1744_v10 = vsel %vm1741_vm9, %v1743_v49, %v1739_v3  ;;  %v108_v3 = vld [vmem:[%s6053_s3 + $0xf0] sm:$0xff]  ;;  %v109_v49 = vld [vmem:[%s6053_s3 + $0xf8] sm:$0xff] }
 0x369   :  { %v2032_v7 = vadd.f32 %v3879_v1, %v2026_v21  ;;  %v1851_v51 = vor.u32 1.1754944e-38, %v1850_v23  ;;  %vm1849_vm8 = vcmp.eq.f32.partialorder %v1848_v8, 8.507059e+37  ;;  %v92_v8 = vld [vmem:[%s6053_s3 + $0x70] sm:$0xff] }
 0x36b   :  { %v3712_v6 = vmul.f32 -1.442695, %v2032_v7 }
 0x36c   :  { %v2174_v62 = vpop.f32.mrf.mxu3 }
 0x36d   :  { %3927 = vpow2.f32 %v3712_v6  ;;  %v3926_v28 = vpop.eup %3925  ;;  %v1934_v42 = vpop.f32.mrf.mxu1 }
 0x36e   :  { %v2024_v5 = vpop.f32.mrf.mxu0  ;;  %v1840_v45 = vmul.f32 %v3926_v28, %v5042_v2  ;;  %3929 = vtanh.f32 %v1942_v18  ;;  %vm1845_vm12 = vweird.f32 %v3926_v28 }
 0x36f   :  { %vm1846_vm15 = vmor %vm1844_vm14, %vm1845_vm12 }
 0x370   :  { %v1841_v38 = vsub.f32 1.0, %v1840_v45 }
 0x372   :  { %v1842_v54 = vmul.f32 %v3926_v28, %v1841_v38 }
 0x373   :  { %v3928_v26 = vpop.eup %3927 }
 0x374   :  { %v2036_v30 = vadd.f32 1.0, %v3928_v26  ;;  %v1843_v13 = vadd.f32 %v3926_v28, %v1842_v54  ;;  %v3930_v34 = vpop.eup %3929  ;;  %v2176_v50 = vpop.f32.mrf.mxu3  ;;  %v3883_v26 = vld [vmem:[%s6047_s15 + $0x2] ss:$0 sm:$0xff] }
 0x375   :  { %v2053_v32 = vmul.f32 %v3930_v34, %v1744_v10  ;;  %v2087_v4 = vpop.f32.mrf.mxu1 }
 0x376   :  { %3931 = vrcp.f32 %v2036_v30  ;;  %v1847_v63 = vsel %vm1846_vm15, %v3926_v28, %v1843_v13  ;;  %v2048_v20 = vand.u32 2147483648, %v2036_v30  ;;  %v2046_v44 = vand.u32 2147483647, %v2036_v30  ;;  %v3873_v28 = vld [vmem:[%s6052_s7] sm:$0xff] }
 0x377   :  { %v1852_v14 = vsel %vm1849_vm8, %v1851_v51, %v1847_v63  ;;  %vm2042_vm8 = vweird.f32 %v2036_v30  ;;  %2413 = vmatpush.bf16.msrb.mxu1 %v3873_v28  ;;  %v124_v51 = vld [vmem:[%s6053_s3 + $0x170] sm:$0xff]  ;;  %v125_v63 = vld [vmem:[%s6053_s3 + $0x178] sm:$0xff] }
 0x378   :  { %v2052_v27 = vmul.f32 %v1852_v14, %v75_v35  ;;  %v2049_v48 = vor.u32 1.1754944e-38, %v2048_v20  ;;  %vm2047_vm11 = vcmp.eq.f32.partialorder %v2046_v44, 8.507059e+37  ;;  %v236_v20 = vpack.c.bf16 %v108_v3, %v108_v3  ;;  %v140_v44 = vld [vmem:[%s6053_s3 + $0x1f0] sm:$0xff] }
 0x37a   :  { %v2054_v39 = vadd.f32 %v2053_v32, %v2052_v27 }
 0x37c   :  { %v3932_v56 = vpop.eup %3931  ;;  %3494 = vst.msk [vmem:[%s6049_s21] sm:$0xff] %vm608_vm0, %v2054_v39  ;;  %3933 = vtanh.f32 %v2054_v39  ;;  %v2326_v0 = vpop.f32.mrf.mxu3  ;;  %v220_v39 = vpack.c.bf16 %v92_v8, %v92_v8 }
 0x37d   :  { %v2038_v9 = vmul.f32 %v3932_v56, %v2036_v30  ;;  %vm2043_vm10 = vweird.f32 %v3932_v56  ;;  %v2089_v61 = vpop.f32.mrf.mxu1  ;;  %v93_v30 = vld [vmem:[%s6053_s3 + $0x78] sm:$0xff] }
 0x37e   :  { %vm2044_vm9 = vmor %vm2042_vm8, %vm2043_vm10 }
 0x37f   :  { %v2039_v15 = vsub.f32 1.0, %v2038_v9 }
 0x381   :  { %v2040_v25 = vmul.f32 %v3932_v56, %v2039_v15 }
 0x382   :  { %v3934_v43 = vpop.eup %3933 }
 0x383   :  { %v2041_v53 = vadd.f32 %v3932_v56, %v2040_v25  ;;  %v237_v25 = vpack.c.bf16 %v109_v49, %v109_v49 }
 0x384   :  { %v2328_v1 = vpop.f32.mrf.mxu3 }
 0x385   :  { %v2045_v55 = vsel %vm2044_vm9, %v3932_v56, %v2041_v53  ;;  %v2259_v2 = vpop.f32.mrf.mxu1  ;;  %v221_v56 = vpack.c.bf16 %v93_v30, %v93_v30  ;;  %v2472_v53 = vunpack.c.l.b16 %v220_v39  ;;  %v268_v1 = vpack.c.bf16 %v140_v44, %v140_v44 }
 0x386   :  { %v2050_v57 = vsel %vm2047_vm11, %v2049_v48, %v2045_v55  ;;  %v252_v55 = vpack.c.bf16 %v124_v51, %v124_v51 }
 0x387   :  { %v2056_v59 = vmul.f32 %v3934_v43, %v2050_v57  ;;  %v2473_v48 = vunpack.c.l.b16 %v221_v56  ;;  %v253_v43 = vpack.c.bf16 %v125_v63, %v125_v63 }
 0x388   :  { %v2632_v61 = vunpack.c.l.b16 %v252_v55  ;;  %v88_v55 = vld [vmem:[%s6053_s3 + $0x50] sm:$0xff] }
 0x389   :  { %v2057_v60 = vpack.c.bf16 %v2056_v59, %v2056_v59  ;;  %3491 = vst.msk [vmem:[%s6050_s20] sm:$0xff] %vm608_vm0, %v2056_v59  ;;  %v2552_v59 = vunpack.c.l.b16 %v236_v20  ;;  %v5167_v50 = vpack.c.b16 %v2473_v48, %v2472_v53 }
 0x38b   :  { %3730 = vmatmul.msk.bf16.vlgmr.msrb.gmra.mxu2 %vm608_vm0, %v2057_v60  ;;  %3757 = vmatmul.msk.bf16.vlgmr.msra.gmra.mxu0 %vm608_vm0, %v2057_v60 }
 0x38d   :  { %v2261_v52 = vpop.f32.mrf.mxu1 }
 0x39b   :  { %3785 = vmatmul.msk.bf16.vlgmr.msra.gmra.mxu2 %vm608_vm0, %v2057_v60  ;;  %3812 = vmatmul.msk.bf16.vlgmr.msrb.gmra.mxu0 %vm608_vm0, %v2057_v60  ;;  %v2553_v60 = vunpack.c.l.b16 %v237_v25 }
 0x408   :  { %v2199_v47 = vpop.f32.mrf.mxu0 }
 0x409   :  { %v2200_v21 = vadd.f32 %v2199_v47, %v2174_v62  ;;  %v141_v62 = vld [vmem:[%s6053_s3 + $0x1f8] sm:$0xff] }
 0x40b   :  { %v2208_v37 = vadd.f32 %v3880_v46, %v2200_v21  ;;  %v5176_v21 = vpack.c.b16 %v2553_v60, %v2552_v59 }
 0x40d   :  { %v3759_v36 = vmul.f32 -1.442695, %v2208_v37  ;;  %v2587_v22 = vsel %vm608_vm0, %v5176_v21, 0  ;;  %v104_v37 = vld [vmem:[%s6053_s3 + $0xd0] sm:$0xff] }
 0x40e   :  { %v2115_v7 = vpop.f32.mrf.mxu2  ;;  %2589 = vmatpush.bf16.xpose.msrb.mxu3 %v2587_v22  ;;  %v121_v22 = vld [vmem:[%s6053_s3 + $0x158] sm:$0xff] }
 0x40f   :  { %3935 = vpow2.f32 %v3759_v36  ;;  %v2116_v41 = vadd.f32 %v2115_v7, %v2087_v4  ;;  %v2507_v7 = vsel %vm608_vm0, %v5167_v50, 0 }
 0x410   :  { %v2201_v6 = vpop.f32.mrf.mxu0  ;;  %2509 = vmatpush.bf16.xpose.msrb.mxu2 %v2507_v7  ;;  %v120_v7 = vld [vmem:[%s6053_s3 + $0x150] sm:$0xff] }
 0x411   :  { %v2123_v33 = vadd.f32 %v3881_v16, %v2116_v41  ;;  %v269_v6 = vpack.c.bf16 %v141_v62, %v141_v62 }
 0x413   :  { %v3731_v17 = vmul.f32 -1.442695, %v2123_v33 }
 0x415   :  { %v3936_v18 = vpop.eup %3935  ;;  %3937 = vpow2.f32 %v3731_v17  ;;  %v3567_v17 = vld [vmem:[%s6048_s2 + $0x8] sm:$0xff] }
 0x416   :  { %v5110_v31 = vadd.f32 1.0, %v3936_v18  ;;  %v2117_v40 = vpop.f32.mrf.mxu2 }
 0x417   :  { %v90_v40 = vld [vmem:[%s6053_s3 + $0x60] sm:$0xff] }
 0x418   :  { %3939 = vrcp.f32 %v5110_v31  ;;  %v2351_v5 = vpop.f32.mrf.mxu0  ;;  %v2224_v45 = vand.u32 2147483648, %v5110_v31  ;;  %v2222_v23 = vand.u32 2147483647, %v5110_v31  ;;  %vm2218_vm12 = vweird.f32 %v5110_v31 }
 0x419   :  { %v2352_v42 = vadd.f32 %v2351_v5, %v2326_v0  ;;  %v2633_v0 = vunpack.c.l.b16 %v253_v43  ;;  %v91_v5 = vld [vmem:[%s6053_s3 + $0x68] sm:$0xff]  ;;  %v218_v3 = vpack.c.bf16 %v90_v40, %v90_v40 }
 0x41a   :  { %v2225_v34 = vor.u32 1.1754944e-38, %v2224_v45  ;;  %vm5152_vm13 = vcmp.eq.f32.partialorder %v2222_v23, 8.507059e+37  ;;  %v2713_v23 = vunpack.c.l.b16 %v269_v6  ;;  %v219_v49 = vpack.c.bf16 %v91_v5, %v91_v5 }
 0x41b   :  { %v3938_v58 = vpop.eup %3937  ;;  %v2360_v38 = vadd.f32 %v3882_v12, %v2352_v42  ;;  %v5190_v41 = vpack.c.b16 %v2633_v0, %v2632_v61  ;;  %v106_v42 = vld [vmem:[%s6053_s3 + $0xe0] sm:$0xff]  ;;  %v2470_v63 = vunpack.c.l.b16 %v218_v3 }
 0x41c   :  { %v5120_v24 = vadd.f32 1.0, %v3938_v58  ;;  %v234_v51 = vpack.c.bf16 %v106_v42, %v106_v42  ;;  %v2471_v56 = vunpack.c.l.b16 %v219_v49  ;;  %v232_v42 = vpack.c.bf16 %v104_v37, %v104_v37  ;;  %v87_v49 = vld [vmem:[%s6053_s3 + $0x48] sm:$0xff] }
 0x41d   :  { %v3814_v19 = vmul.f32 -1.442695, %v2360_v38  ;;  %v2667_v38 = vsel %vm608_vm0, %v5190_v41, 0 }
 0x41e   :  { %v5126_v54 = vpop.eup %3939  ;;  %3941 = vrcp.f32 %v5120_v24  ;;  %v2284_v11 = vpop.f32.mrf.mxu2  ;;  %v2137_v10 = vand.u32 2147483647, %v5120_v24  ;;  %v2139_v14 = vand.u32 2147483648, %v5120_v24  ;;  %vm2133_vm15 = vweird.f32 %v5120_v24  ;;  %2669 = vmatpush.bf16.xpose.msra.mxu0 %v2667_v38  ;;  %v137_v38 = vld [vmem:[%s6053_s3 + $0x1d8] sm:$0xff] }
 0x41f   :  { %v2214_v13 = vmul.f32 %v5126_v54, %v5110_v31  ;;  %3943 = vpow2.f32 %v3814_v19  ;;  %v2285_v35 = vadd.f32 %v2284_v11, %v2259_v2  ;;  %vm2219_vm14 = vweird.f32 %v5126_v54  ;;  %v107_v19 = vld [vmem:[%s6053_s3 + $0xe8] sm:$0xff] }
 0x420   :  { %v2353_v32 = vpop.f32.mrf.mxu0  ;;  %vm5171_vm10 = vcmp.eq.f32.partialorder %v2137_v10, 8.507059e+37  ;;  %vm5182_vm8 = vmor %vm2218_vm12, %vm2219_vm14  ;;  %v2712_v31 = vunpack.c.l.b16 %v268_v1  ;;  %v2140_v28 = vor.u32 1.1754944e-38, %v2139_v14  ;;  %v235_v10 = vpack.c.bf16 %v107_v19, %v107_v19  ;;  %v89_v1 = vld [vmem:[%s6053_s3 + $0x58] sm:$0xff] }
 0x421   :  { %v2215_v9 = vsub.f32 1.0, %v2214_v13  ;;  %v2293_v15 = vadd.f32 %v3883_v26, %v2285_v35  ;;  %v122_v26 = vld [vmem:[%s6053_s3 + $0x160] sm:$0xff]  ;;  %v5256_v60 = vpack.c.b16 %v2471_v56, %v2470_v63  ;;  %v2548_v3 = vunpack.c.l.b16 %v232_v42 }
 0x422   :  { %v5230_v35 = vpack.c.b16 %v2713_v23, %v2712_v31  ;;  %v250_v14 = vpack.c.bf16 %v122_v26, %v122_v26  ;;  %v2551_v44 = vunpack.c.l.b16 %v235_v10  ;;  %v136_v31 = vld [vmem:[%s6053_s3 + $0x1d0] sm:$0xff]  ;;  %v249_v26 = vpack.c.bf16 %v121_v22, %v121_v22 }
 0x423   :  { %v2216_v57 = vmul.f32 %v5126_v54, %v2215_v9  ;;  %3945 = vtanh.f32 %v2293_v15  ;;  %v2550_v9 = vunpack.c.l.b16 %v234_v51  ;;  %v138_v15 = vld [vmem:[%s6053_s3 + $0x1e0] sm:$0xff]  ;;  %v2504_v46 = vsel %vm608_vm0, %v5256_v60, 0 }
 0x424   :  { %v5165_v4 = vpop.eup %3941  ;;  %v2747_v39 = vsel %vm608_vm0, %v5230_v35, 0  ;;  %v2630_v53 = vunpack.c.l.b16 %v250_v14  ;;  %v266_v61 = vpack.c.bf16 %v138_v15, %v138_v15  ;;  %2510 = vmatpush.bf16.xpose.msrb.mxu2 %v2504_v46  ;;  %v2629_v10 = vunpack.c.l.b16 %v249_v26  ;;  %v84_v46 = vld [vmem:[%s6053_s3 + $0x30] sm:$0xff] }
 0x425   :  { %v3944_v2 = vpop.eup %3943  ;;  %v2129_v52 = vmul.f32 %v5165_v4, %v5120_v24  ;;  %v2217_v47 = vadd.f32 %v5126_v54, %v2216_v57  ;;  %vm2134_vm9 = vweird.f32 %v5165_v4  ;;  %v139_v24 = vld [vmem:[%s6053_s3 + $0x1e8] sm:$0xff]  ;;  %2749 = vmatpush.bf16.xpose.msra.mxu1 %v2747_v39  ;;  %v5258_v62 = vpack.c.b16 %v2551_v44, %v2550_v9 }
 0x426   :  { %v5186_v36 = vadd.f32 1.0, %v3944_v2  ;;  %v2286_v16 = vpop.f32.mrf.mxu2  ;;  %vm2135_vm11 = vmor %vm2133_vm15, %vm2134_vm9  ;;  %v267_v0 = vpack.c.bf16 %v139_v24, %v139_v24  ;;  %v265_v14 = vpack.c.bf16 %v137_v38, %v137_v38  ;;  %v103_v9 = vld [vmem:[%s6053_s3 + $0xc8] sm:$0xff]  ;;  %v215_v44 = vpack.c.bf16 %v87_v49, %v87_v49 }
 0x427   :  { %v2130_v33 = vsub.f32 1.0, %v2129_v52  ;;  %v2221_v18 = vsel %vm5182_vm8, %v5126_v54, %v2217_v47  ;;  %v123_v54 = vld [vmem:[%s6053_s3 + $0x168] sm:$0xff]  ;;  %v216_v47 = vpack.c.bf16 %v88_v55, %v88_v55  ;;  %v105_v16 = vld [vmem:[%s6053_s3 + $0xd8] sm:$0xff]  ;;  %v2584_v6 = vsel %vm608_vm0, %v5258_v62, 0 }
 0x428   :  { %3947 = vrcp.f32 %v5186_v36  ;;  %v2376_v12 = vand.u32 2147483648, %v5186_v36  ;;  %v2226_v45 = vsel %vm5152_vm13, %v2225_v34, %v2221_v18  ;;  %v2374_v11 = vand.u32 2147483647, %v5186_v36  ;;  %2590 = vmatpush.bf16.xpose.msrb.mxu3 %v2584_v6  ;;  %v85_v6 = vld [vmem:[%s6053_s3 + $0x38] sm:$0xff] }
 0x429   :  { %v2131_v58 = vmul.f32 %v5165_v4, %v2130_v33  ;;  %v2380_v30 = vmul.f32 %v3567_v17, %v2226_v45  ;;  %v3946_v13 = vpop.eup %3945  ;;  %v251_v27 = vpack.c.bf16 %v123_v54, %v123_v54  ;;  %vm2370_vm12 = vweird.f32 %v5186_v36 }
 0x42a   :  { %v5227_v8 = vor.u32 1.1754944e-38, %v2376_v12  ;;  %vm5252_vm14 = vcmp.eq.f32.partialorder %v2374_v11, 8.507059e+37  ;;  %v2710_v17 = vunpack.c.l.b16 %v266_v61  ;;  %v2711_v18 = vunpack.c.l.b16 %v267_v0  ;;  %v86_v11 = vld [vmem:[%s6053_s3 + $0x40] sm:$0xff] }
 0x42b   :  { %v2132_v34 = vadd.f32 %v5165_v4, %v2131_v58  ;;  %v2631_v48 = vunpack.c.l.b16 %v251_v27  ;;  %v217_v12 = vpack.c.bf16 %v89_v1, %v89_v1  ;;  %v233_v58 = vpack.c.bf16 %v105_v16, %v105_v16 }
 0x42c   :  { %v5290_v5 = vpack.c.b16 %v2711_v18, %v2710_v17  ;;  %v248_v45 = vpack.c.bf16 %v120_v7, %v120_v7  ;;  %v264_v54 = vpack.c.bf16 %v136_v31, %v136_v31  ;;  %v214_v56 = vpack.c.bf16 %v86_v11, %v86_v11  ;;  %v100_v31 = vld [vmem:[%s6053_s3 + $0xb0] sm:$0xff] }
 0x42d   :  { %v2136_v32 = vsel %vm2135_vm11, %v5165_v4, %v2132_v34  ;;  %v5260_v4 = vpack.c.b16 %v2631_v48, %v2630_v53  ;;  %v2469_v19 = vunpack.c.l.b16 %v217_v12  ;;  %v119_v53 = vld [vmem:[%s6053_s3 + $0x148] sm:$0xff]  ;;  %v2467_v1 = vunpack.c.l.b16 %v215_v44 }
 0x42e   :  { %v3948_v20 = vpop.eup %3947  ;;  %v2141_v25 = vsel %vm5171_vm10, %v2140_v28, %v2136_v32  ;;  %v2468_v28 = vunpack.c.l.b16 %v216_v47  ;;  %v2628_v34 = vunpack.c.l.b16 %v248_v45  ;;  %v2708_v39 = vunpack.c.l.b16 %v264_v54  ;;  %v116_v45 = vld [vmem:[%s6053_s3 + $0x130] sm:$0xff]  ;;  %v117_v54 = vld [vmem:[%s6053_s3 + $0x138] sm:$0xff] }
 0x42f   :  { %v2366_v43 = vmul.f32 %v3948_v20, %v5186_v36  ;;  %vm2371_vm13 = vweird.f32 %v3948_v20  ;;  %v2381_v59 = vmul.f32 %v3946_v13, %v2141_v25  ;;  %v2664_v33 = vsel %vm608_vm0, %v5260_v4, 0  ;;  %v102_v36 = vld [vmem:[%s6053_s3 + $0xc0] sm:$0xff] }
 0x430   :  { %2670 = vmatpush.bf16.xpose.msra.mxu0 %v2664_v33  ;;  %vm2372_vm15 = vmor %vm2370_vm12, %vm2371_vm13  ;;  %v2549_v13 = vunpack.c.l.b16 %v233_v58  ;;  %v5306_v63 = vpack.c.b16 %v2469_v19, %v2468_v28  ;;  %v2709_v25 = vunpack.c.l.b16 %v265_v14  ;;  %v230_v57 = vpack.c.bf16 %v102_v36, %v102_v36  ;;  %v101_v58 = vld [vmem:[%s6053_s3 + $0xb8] sm:$0xff] }
 0x431   :  { %v2367_v2 = vsub.f32 1.0, %v2366_v43  ;;  %v2382_v52 = vadd.f32 %v2381_v59, %v2380_v30  ;;  %v2744_v30 = vsel %vm608_vm0, %v5290_v5, 0  ;;  %v2466_v43 = vunpack.c.l.b16 %v214_v56  ;;  %v134_v59 = vld [vmem:[%s6053_s3 + $0x1c0] sm:$0xff]  ;;  %v133_v36 = vld [vmem:[%s6053_s3 + $0x1b8] sm:$0xff] }
 0x432   :  { %2750 = vmatpush.bf16.xpose.msra.mxu1 %v2744_v30  ;;  %v5314_v32 = vpack.c.b16 %v2549_v13, %v2548_v3  ;;  %v2501_v24 = vsel %vm608_vm0, %v5306_v63, 0  ;;  %v5338_v0 = vpack.c.b16 %v2709_v25, %v2708_v39  ;;  %v2546_v37 = vunpack.c.l.b16 %v230_v57 }
 0x433   :  { %v2368_v40 = vmul.f32 %v3948_v20, %v2367_v2  ;;  %3949 = vtanh.f32 %v2382_v52  ;;  %3834 = vst.msk [vmem:[%s6049_s21 + $0x8] sm:$0xff] %vm608_vm0, %v2382_v52  ;;  %2511 = vmatpush.bf16.xpose.msrb.mxu2 %v2501_v24  ;;  %v231_v2 = vpack.c.bf16 %v103_v9, %v103_v9  ;;  %v135_v52 = vld [vmem:[%s6053_s3 + $0x1c8] sm:$0xff]  ;;  %v247_v7 = vpack.c.bf16 %v119_v53, %v119_v53 }
 0x434   :  { %v2581_v55 = vsel %vm608_vm0, %v5314_v32, 0  ;;  %v2741_v33 = vsel %vm608_vm0, %v5338_v0, 0  ;;  %v5358_v17 = vpack.c.b16 %v2467_v1, %v2466_v43  ;;  %v262_v22 = vpack.c.bf16 %v134_v59, %v134_v59  ;;  %v83_v24 = vld [vmem:[%s6053_s3 + $0x28] sm:$0xff] }
 0x435   :  { %v2369_v23 = vadd.f32 %v3948_v20, %v2368_v40  ;;  %2591 = vmatpush.bf16.xpose.msrb.mxu3 %v2581_v55  ;;  %v2547_v18 = vunpack.c.l.b16 %v231_v2  ;;  %v2627_v12 = vunpack.c.l.b16 %v247_v7  ;;  %v263_v28 = vpack.c.bf16 %v135_v52, %v135_v52  ;;  %v98_v55 = vld [vmem:[%s6053_s3 + $0xa0] sm:$0xff]  ;;  %v99_v1 = vld [vmem:[%s6053_s3 + $0xa8] sm:$0xff] }
 0x436   :  { %v212_v42 = vpack.c.bf16 %v84_v46, %v84_v46  ;;  %v2498_v38 = vsel %vm608_vm0, %v5358_v17, 0  ;;  %v2706_v19 = vunpack.c.l.b16 %v262_v22  ;;  %v213_v26 = vpack.c.bf16 %v85_v6, %v85_v6  ;;  %v114_v2 = vld [vmem:[%s6053_s3 + $0x120] sm:$0xff] }
 0x437   :  { %v2373_v51 = vsel %vm2372_vm15, %v3948_v20, %v2369_v23  ;;  %v5321_v20 = vpack.c.b16 %v2629_v10, %v2628_v34  ;;  %v5372_v23 = vpack.c.b16 %v2547_v18, %v2546_v37  ;;  %v2707_v30 = vunpack.c.l.b16 %v263_v28  ;;  %v132_v34 = vld [vmem:[%s6053_s3 + $0x1b0] sm:$0xff]  ;;  %v115_v37 = vld [vmem:[%s6053_s3 + $0x128] sm:$0xff]  ;;  %v130_v18 = vld [vmem:[%s6053_s3 + $0x1a0] sm:$0xff] }
 0x438   :  { %v2378_v27 = vsel %vm5252_vm14, %v5227_v8, %v2373_v51  ;;  %v118_v8 = vld [vmem:[%s6053_s3 + $0x140] sm:$0xff]  ;;  %v2464_v3 = vunpack.c.l.b16 %v212_v42  ;;  %v228_v13 = vpack.c.bf16 %v100_v31, %v100_v31  ;;  %v2465_v51 = vunpack.c.l.b16 %v213_v26  ;;  %v131_v28 = vld [vmem:[%s6053_s3 + $0x1a8] sm:$0xff]  ;;  %v80_v42 = vld [vmem:[%s6053_s3 + $0x10] sm:$0xff] }
 0x439   :  { %v3950_v15 = vpop.eup %3949  ;;  %v2661_v61 = vsel %vm608_vm0, %v5321_v20, 0  ;;  %v246_v16 = vpack.c.bf16 %v118_v8, %v118_v8  ;;  %v2578_v49 = vsel %vm608_vm0, %v5372_v23, 0  ;;  %v229_v10 = vpack.c.bf16 %v101_v58, %v101_v58  ;;  %v81_v26 = vld [vmem:[%s6053_s3 + $0x18] sm:$0xff] }
 0x43a   :  { %v5329_v48 = vmul.f32 %v3950_v15, %v2378_v27  ;;  %2671 = vmatpush.bf16.xpose.msra.mxu0 %v2661_v61  ;;  %2751 = vmatpush.bf16.xpose.msra.mxu1 %v2741_v33  ;;  %v244_v14 = vpack.c.bf16 %v116_v45, %v116_v45  ;;  %v82_v27 = vld [vmem:[%s6053_s3 + $0x20] sm:$0xff]  ;;  %v5392_v56 = vpack.c.b16 %v2707_v30, %v2706_v19  ;;  %v2544_v9 = vunpack.c.l.b16 %v228_v13 }
 0x43b   :  { %v2626_v40 = vunpack.c.l.b16 %v246_v16  ;;  %2512 = vmatpush.bf16.xpose.msrb.mxu2 %v2498_v38  ;;  %v245_v15 = vpack.c.bf16 %v117_v54, %v117_v54  ;;  %v5397_v25 = vpack.c.b16 %v2465_v51, %v2464_v3  ;;  %v2545_v44 = vunpack.c.l.b16 %v229_v10 }
 0x43c   :  { %6173 = vst [vmem:[#allocation4_spill] sm:$0xff] %v5329_v48  ;;  %v2386_v47 = vpack.c.bf16 %v5329_v48, %v5329_v48  ;;  %v2624_v8 = vunpack.c.l.b16 %v244_v14  ;;  %v260_v53 = vpack.c.bf16 %v132_v34, %v132_v34  ;;  %v2738_v43 = vsel %vm608_vm0, %v5392_v56, 0  ;;  %v96_v34 = vld [vmem:[%s6053_s3 + $0x90] sm:$0xff] }
 0x43d   :  { %3833 = vst.msk [vmem:[%s6050_s20 + $0x8] sm:$0xff] %vm608_vm0, %v5329_v48  ;;  %v5377_v11 = vpack.c.b16 %v2627_v12, %v2626_v40  ;;  %2592 = vmatpush.bf16.xpose.msrb.mxu3 %v2578_v49  ;;  %v2625_v57 = vunpack.c.l.b16 %v245_v15  ;;  %v261_v59 = vpack.c.bf16 %v133_v36, %v133_v36  ;;  %v210_v61 = vpack.c.bf16 %v82_v27, %v82_v27  ;;  %v97_v36 = vld [vmem:[%s6053_s3 + $0x98] sm:$0xff]  ;;  %v112_v27 = vld [vmem:[%s6053_s3 + $0x110] sm:$0xff]  ;;  %v150_v48 = vld [vmem:[%s6053_s3 + $0x240] sm:$0xff] }
 0x43e   :  { %3823 = vmatmul.msk.bf16.vlgmr.msrb.gmra.mxu1 %vm608_vm0, %v2386_v47  ;;  %v5410_v52 = vpack.c.b16 %v2545_v44, %v2544_v9  ;;  %v2704_v46 = vunpack.c.l.b16 %v260_v53  ;;  %v211_v47 = vpack.c.bf16 %v83_v24, %v83_v24  ;;  %v226_v33 = vpack.c.bf16 %v98_v55, %v98_v55  ;;  %v113_v24 = vld [vmem:[%s6053_s3 + $0x118] sm:$0xff] }
 0x43f   :  { %v2658_v39 = vsel %vm608_vm0, %v5377_v11, 0  ;;  %v5415_v16 = vpack.c.b16 %v2625_v57, %v2624_v8  ;;  %v2705_v7 = vunpack.c.l.b16 %v261_v59  ;;  %v2462_v6 = vunpack.c.l.b16 %v210_v61 }
 0x440   :  { %v2495_v22 = vsel %vm608_vm0, %v5397_v25, 0  ;;  %v2463_v31 = vunpack.c.l.b16 %v211_v47  ;;  %v227_v40 = vpack.c.bf16 %v99_v1, %v99_v1  ;;  %v242_v12 = vpack.c.bf16 %v114_v2, %v114_v2  ;;  %v129_v2 = vld [vmem:[%s6053_s3 + $0x198] sm:$0xff] }
 0x441   :  { %v2575_v58 = vsel %vm608_vm0, %v5410_v52, 0  ;;  %v5430_v45 = vpack.c.b16 %v2705_v7, %v2704_v46  ;;  %v2542_v38 = vunpack.c.l.b16 %v226_v33  ;;  %v243_v19 = vpack.c.bf16 %v115_v37, %v115_v37  ;;  %v78_v46 = vld [vmem:[%s6053_s3] sm:$0xff] }
 0x442   :  { %2672 = vmatpush.bf16.xpose.msra.mxu0 %v2658_v39  ;;  %2752 = vmatpush.bf16.xpose.msra.mxu1 %v2738_v43  ;;  %v2655_v54 = vsel %vm608_vm0, %v5415_v16, 0  ;;  %v2543_v30 = vunpack.c.l.b16 %v227_v40  ;;  %v2622_v3 = vunpack.c.l.b16 %v242_v12  ;;  %v258_v13 = vpack.c.bf16 %v130_v18, %v130_v18  ;;  %v128_v43 = vld [vmem:[%s6053_s3 + $0x190] sm:$0xff] }
 0x443   :  { %2513 = vmatpush.bf16.xpose.msrb.mxu2 %v2495_v22  ;;  %v5440_v49 = vpack.c.b16 %v2463_v31, %v2462_v6  ;;  %v2623_v51 = vunpack.c.l.b16 %v243_v19  ;;  %v259_v10 = vpack.c.bf16 %v131_v28, %v131_v28  ;;  %v208_v14 = vpack.c.bf16 %v80_v42, %v80_v42  ;;  %v79_v6 = vld [vmem:[%s6053_s3 + $0x8] sm:$0xff]  ;;  %v156_v40 = vld [vmem:[%s6053_s3 + $0x270] sm:$0xff]  ;;  %v94_v19 = vld [vmem:[%s6053_s3 + $0x80] sm:$0xff] }
 0x444   :  { %v2735_v39 = vsel %vm608_vm0, %v5430_v45, 0  ;;  %v5450_v9 = vpack.c.b16 %v2543_v30, %v2542_v38  ;;  %v209_v15 = vpack.c.bf16 %v81_v26, %v81_v26  ;;  %v2702_v8 = vunpack.c.l.b16 %v258_v13  ;;  %v157_v38 = vld [vmem:[%s6053_s3 + $0x278] sm:$0xff]  ;;  %v95_v13 = vld [vmem:[%s6053_s3 + $0x88] sm:$0xff] }
 0x445   :  { %2593 = vmatpush.bf16.xpose.msrb.mxu3 %v2575_v58  ;;  %v5455_v44 = vpack.c.b16 %v2623_v51, %v2622_v3  ;;  %v2703_v53 = vunpack.c.l.b16 %v259_v10  ;;  %v224_v55 = vpack.c.bf16 %v96_v34, %v96_v34  ;;  %v2460_v57 = vunpack.c.l.b16 %v208_v14 }
 0x446   :  { %v2461_v59 = vunpack.c.l.b16 %v209_v15  ;;  %v225_v61 = vpack.c.bf16 %v97_v36, %v97_v36  ;;  %v240_v1 = vpack.c.bf16 %v112_v27, %v112_v27  ;;  %v2492_v47 = vsel %vm608_vm0, %v5440_v49, 0  ;;  %v110_v36 = vld [vmem:[%s6053_s3 + $0x100] sm:$0xff] }
 0x447   :  { %v2540_v37 = vunpack.c.l.b16 %v224_v55  ;;  %v241_v7 = vpack.c.bf16 %v113_v24, %v113_v24  ;;  %v2572_v33 = vsel %vm608_vm0, %v5450_v9, 0  ;;  %v256_v31 = vpack.c.bf16 %v128_v43, %v128_v43 }
 0x448   :  { %v2541_v18 = vunpack.c.l.b16 %v225_v61  ;;  %v2620_v22 = vunpack.c.l.b16 %v240_v1  ;;  %v5476_v12 = vpack.c.b16 %v2703_v53, %v2702_v8  ;;  %v257_v42 = vpack.c.bf16 %v129_v2, %v129_v2  ;;  %v111_v8 = vld [vmem:[%s6053_s3 + $0x108] sm:$0xff]  ;;  %v126_v53 = vld [vmem:[%s6053_s3 + $0x180] sm:$0xff] }
 0x449   :  { %v2621_v28 = vunpack.c.l.b16 %v241_v7  ;;  %v206_v58 = vpack.c.bf16 %v78_v46, %v78_v46  ;;  %v2652_v26 = vsel %vm608_vm0, %v5455_v44, 0  ;;  %v2700_v30 = vunpack.c.l.b16 %v256_v31 }
 0x44a   :  { %2673 = vmatpush.bf16.xpose.msra.mxu0 %v2655_v54  ;;  %2753 = vmatpush.bf16.xpose.msra.mxu1 %v2735_v39  ;;  %v5486_v54 = vpack.c.b16 %v2461_v59, %v2460_v57  ;;  %v207_v3 = vpack.c.bf16 %v79_v6, %v79_v6  ;;  %v5491_v34 = vpack.c.b16 %v2541_v18, %v2540_v37  ;;  %v2701_v51 = vunpack.c.l.b16 %v257_v42  ;;  %v127_v59 = vld [vmem:[%s6053_s3 + $0x188] sm:$0xff]  ;;  %v173_v18 = vld [vmem:[%s6053_s3 + $0x2f8] sm:$0xff] }
 0x44b   :  { %2514 = vmatpush.bf16.xpose.msrb.mxu2 %v2492_v47  ;;  %v2458_v10 = vunpack.c.l.b16 %v206_v58  ;;  %v284_v14 = vpack.c.bf16 %v156_v40, %v156_v40  ;;  %v5496_v27 = vpack.c.b16 %v2621_v28, %v2620_v22  ;;  %v285_v15 = vpack.c.bf16 %v157_v38, %v157_v38  ;;  %v172_v47 = vld [vmem:[%s6053_s3 + $0x2f0] sm:$0xff]  ;;  %v189_v58 = vld [vmem:[%s6053_s3 + $0x378] sm:$0xff] }
 0x44c   :  { %v2459_v39 = vunpack.c.l.b16 %v207_v3  ;;  %v222_v24 = vpack.c.bf16 %v94_v19, %v94_v19  ;;  %v2732_v55 = vsel %vm608_vm0, %v5476_v12, 0  ;;  %v5506_v43 = vpack.c.b16 %v2701_v51, %v2700_v30  ;;  %v188_v22 = vld [vmem:[%s6053_s3 + $0x370] sm:$0xff] }
 0x44d   :  { %2594 = vmatpush.bf16.xpose.msrb.mxu3 %v2572_v33  ;;  %v223_v57 = vpack.c.bf16 %v95_v13, %v95_v13  ;;  %v2792_v1 = vunpack.c.l.b16 %v284_v14  ;;  %v2793_v2 = vunpack.c.l.b16 %v285_v15  ;;  %v238_v46 = vpack.c.bf16 %v110_v36, %v110_v36  ;;  %v204_v3 = vld [vmem:[%s6053_s3 + $0x3f0] sm:$0xff]  ;;  %v205_v36 = vld [vmem:[%s6053_s3 + $0x3f8] sm:$0xff] }
 0x44e   :  { %v5511_v61 = vpack.c.b16 %v2459_v39, %v2458_v10  ;;  %v2538_v37 = vunpack.c.l.b16 %v222_v24  ;;  %v239_v6 = vpack.c.bf16 %v111_v8, %v111_v8  ;;  %v254_v33 = vpack.c.bf16 %v126_v53, %v126_v53  ;;  %v154_v39 = vld [vmem:[%s6053_s3 + $0x260] sm:$0xff] }
 0x44f   :  { %v2539_v7 = vunpack.c.l.b16 %v223_v57  ;;  %v2489_v31 = vsel %vm608_vm0, %v5486_v54, 0  ;;  %v2569_v40 = vsel %vm608_vm0, %v5491_v34, 0  ;;  %v2649_v28 = vsel %vm608_vm0, %v5496_v27, 0 }
 0x450   :  { %v255_v42 = vpack.c.bf16 %v127_v59, %v127_v59  ;;  %v2729_v38 = vsel %vm608_vm0, %v5506_v43, 0  ;;  %v2618_v19 = vunpack.c.l.b16 %v238_v46  ;;  %v300_v30 = vpack.c.bf16 %v172_v47, %v172_v47  ;;  %v170_v46 = vld [vmem:[%s6053_s3 + $0x2e0] sm:$0xff] }
 0x451   :  { %v2486_v13 = vsel %vm608_vm0, %v5511_v61, 0  ;;  %v5538_v51 = vpack.c.b16 %v2793_v2, %v2792_v1  ;;  %v301_v10 = vpack.c.bf16 %v173_v18, %v173_v18  ;;  %v316_v14 = vpack.c.bf16 %v188_v22, %v188_v22  ;;  %v186_v18 = vld [vmem:[%s6053_s3 + $0x360] sm:$0xff] }
 0x452   :  { %2674 = vmatpush.bf16.xpose.msra.mxu0 %v2652_v26  ;;  %2754 = vmatpush.bf16.xpose.msra.mxu1 %v2732_v55  ;;  %v2619_v26 = vunpack.c.l.b16 %v239_v6  ;;  %v5546_v15 = vpack.c.b16 %v2539_v7, %v2538_v37  ;;  %v2698_v24 = vunpack.c.l.b16 %v254_v33  ;;  %v2872_v8 = vunpack.c.l.b16 %v300_v30  ;;  %v155_v55 = vld [vmem:[%s6053_s3 + $0x268] sm:$0xff] }
 0x453   :  { %2515 = vmatpush.bf16.xpose.msrb.mxu2 %v2489_v31  ;;  %v317_v53 = vpack.c.bf16 %v189_v58, %v189_v58  ;;  %v2699_v57 = vunpack.c.l.b16 %v255_v42  ;;  %v2873_v59 = vunpack.c.l.b16 %v301_v10  ;;  %v2952_v1 = vunpack.c.l.b16 %v316_v14  ;;  %v171_v33 = vld [vmem:[%s6053_s3 + $0x2e8] sm:$0xff] }
 0x454   :  { %v332_v2 = vpack.c.bf16 %v204_v3, %v204_v3  ;;  %v5554_v47 = vpack.c.b16 %v2619_v26, %v2618_v19  ;;  %v333_v7 = vpack.c.bf16 %v205_v36, %v205_v36  ;;  %v282_v6 = vpack.c.bf16 %v154_v39, %v154_v39  ;;  %v187_v42 = vld [vmem:[%s6053_s3 + $0x368] sm:$0xff]  ;;  %v202_v3 = vld [vmem:[%s6053_s3 + $0x3e0] sm:$0xff] }
 0x455   :  { %2595 = vmatpush.bf16.xpose.msrb.mxu3 %v2569_v40  ;;  %v2953_v37 = vunpack.c.l.b16 %v317_v53  ;;  %v2827_v22 = vsel %vm608_vm0, %v5538_v51, 0  ;;  %v5564_v31 = vpack.c.b16 %v2873_v59, %v2872_v8  ;;  %v2566_v58 = vsel %vm608_vm0, %v5546_v15, 0  ;;  %v203_v8 = vld [vmem:[%s6053_s3 + $0x3e8] sm:$0xff] }
 0x456   :  { %v3032_v40 = vunpack.c.l.b16 %v332_v2  ;;  %v3033_v26 = vunpack.c.l.b16 %v333_v7  ;;  %v298_v30 = vpack.c.bf16 %v170_v46, %v170_v46  ;;  %v2790_v10 = vunpack.c.l.b16 %v282_v6  ;;  %v153_v2 = vld [vmem:[%s6053_s3 + $0x258] sm:$0xff] }
 0x457   :  { %v5571_v19 = vpack.c.b16 %v2953_v37, %v2952_v1  ;;  %v299_v36 = vpack.c.bf16 %v171_v33, %v171_v33  ;;  %v314_v39 = vpack.c.bf16 %v186_v18, %v186_v18  ;;  %v2646_v53 = vsel %vm608_vm0, %v5554_v47, 0 }
 0x458   :  { %v5583_v59 = vpack.c.b16 %v3033_v26, %v3032_v40  ;;  %v315_v1 = vpack.c.bf16 %v187_v42, %v187_v42  ;;  %v2907_v46 = vsel %vm608_vm0, %v5564_v31, 0  ;;  %v2870_v37 = vunpack.c.l.b16 %v298_v30 }
 0x459   :  { %v2871_v7 = vunpack.c.l.b16 %v299_v36  ;;  %v330_v6 = vpack.c.bf16 %v202_v3, %v202_v3  ;;  %v2950_v33 = vunpack.c.l.b16 %v314_v39  ;;  %v331_v40 = vpack.c.bf16 %v203_v8, %v203_v8  ;;  %v185_v3 = vld [vmem:[%s6053_s3 + $0x358] sm:$0xff] }
 0x45a   :  { %2675 = vmatpush.bf16.xpose.msra.mxu0 %v2649_v28  ;;  %v283_v28 = vpack.c.bf16 %v155_v55, %v155_v55  ;;  %2755 = vmatpush.bf16.xpose.msra.mxu1 %v2729_v38  ;;  %v5581_v55 = vpack.c.b16 %v2699_v57, %v2698_v24  ;;  %v152_v38 = vld [vmem:[%s6053_s3 + $0x250] sm:$0xff]  ;;  %v2987_v57 = vsel %vm608_vm0, %v5571_v19, 0  ;;  %v2951_v18 = vunpack.c.l.b16 %v315_v1 }
 0x45b   :  { %v168_v24 = vld [vmem:[%s6053_s3 + $0x2d0] sm:$0xff]  ;;  %2516 = vmatpush.bf16.xpose.msrb.mxu2 %v2486_v13  ;;  %v280_v26 = vpack.c.bf16 %v152_v38, %v152_v38  ;;  %v281_v30 = vpack.c.bf16 %v153_v2, %v153_v2  ;;  %v3031_v39 = vunpack.c.l.b16 %v331_v40 }
 0x45c   :  { %v2791_v14 = vunpack.c.l.b16 %v283_v28  ;;  %v169_v28 = vld [vmem:[%s6053_s3 + $0x2d8] sm:$0xff]  ;;  %v184_v13 = vld [vmem:[%s6053_s3 + $0x350] sm:$0xff]  ;;  %v2726_v36 = vsel %vm608_vm0, %v5581_v55, 0  ;;  %v5621_v38 = vpack.c.b16 %v2951_v18, %v2950_v33  ;;  %v151_v33 = vld [vmem:[%s6053_s3 + $0x248] sm:$0xff] }
 0x45d   :  { %2596 = vmatpush.bf16.xpose.msrb.mxu3 %v2566_v58  ;;  %v296_v58 = vpack.c.bf16 %v168_v24, %v168_v24  ;;  %v297_v8 = vpack.c.bf16 %v169_v28, %v169_v28  ;;  %v200_v1 = vld [vmem:[%s6053_s3 + $0x3d0] sm:$0xff]  ;;  %v312_v2 = vpack.c.bf16 %v184_v13, %v184_v13 }
 0x45e   :  { %v5601_v42 = vpack.c.b16 %v2791_v14, %v2790_v10  ;;  %v5613_v10 = vpack.c.b16 %v2871_v7, %v2870_v37  ;;  %v3030_v14 = vunpack.c.l.b16 %v330_v6  ;;  %6175 = vst [vmem:[#allocation6_spill] sm:$0xff] %v5621_v38  ;;  %v2788_v7 = vunpack.c.l.b16 %v280_v26 }
 0x45f   :  { %v2789_v6 = vunpack.c.l.b16 %v281_v30  ;;  %v2868_v24 = vunpack.c.l.b16 %v296_v58  ;;  %v328_v40 = vpack.c.bf16 %v200_v1, %v200_v1  ;;  %v2984_v26 = vsel %vm608_vm0, %v5621_v38, 0 }
 0x460   :  { %6174 = vst [vmem:[#allocation5_spill] sm:$0xff] %v5613_v10  ;;  %v2824_v37 = vsel %vm608_vm0, %v5601_v42, 0  ;;  %v2904_v18 = vsel %vm608_vm0, %v5613_v10, 0  ;;  %v5633_v13 = vpack.c.b16 %v3031_v39, %v3030_v14  ;;  %v2948_v30 = vunpack.c.l.b16 %v312_v2  ;;  %v182_v14 = vld [vmem:[%s6053_s3 + $0x340] sm:$0xff]  ;;  %v183_v39 = vld [vmem:[%s6053_s3 + $0x348] sm:$0xff] }
 0x461   :  { %v278_v58 = vpack.c.bf16 %v150_v48, %v150_v48  ;;  %v5649_v1 = vpack.c.b16 %v2789_v6, %v2788_v7  ;;  %v3028_v2 = vunpack.c.l.b16 %v328_v40  ;;  %v310_v10 = vpack.c.bf16 %v182_v14, %v182_v14  ;;  %v199_v7 = vld [vmem:[%s6053_s3 + $0x3c8] sm:$0xff]  ;;  %v165_v14 = vld [vmem:[%s6053_s3 + $0x2b8] sm:$0xff] }
 0x462   :  { %2676 = vmatpush.bf16.xpose.msra.mxu0 %v2646_v53  ;;  %v201_v53 = vld [vmem:[%s6053_s3 + $0x3d8] sm:$0xff]  ;;  %2756 = vmatpush.bf16.xpose.msra.mxu1 %v2726_v36  ;;  %6176 = vst [vmem:[#allocation8_spill] sm:$0xff] %v5633_v13  ;;  %v166_v36 = vld [vmem:[%s6053_s3 + $0x2c0] sm:$0xff]  ;;  %v3064_v48 = vsel %vm608_vm0, %v5633_v13, 0  ;;  %v311_v38 = vpack.c.bf16 %v183_v39, %v183_v39  ;;  %v293_v13 = vpack.c.bf16 %v165_v14, %v165_v14 }
 0x463   :  { %2829 = vmatpush.bf16.xpose.msra.mxu2 %v2827_v22  ;;  %v3067_v22 = vsel %vm608_vm0, %v5583_v59, 0  ;;  %v329_v28 = vpack.c.bf16 %v201_v53, %v201_v53  ;;  %6177 = vst [vmem:[#allocation7_spill] sm:$0xff] %v5649_v1  ;;  %v2786_v6 = vunpack.c.l.b16 %v278_v58  ;;  %v327_v58 = vpack.c.bf16 %v199_v7, %v199_v7  ;;  %v181_v7 = vld [vmem:[%s6053_s3 + $0x338] sm:$0xff] }
 0x465   :  { %2909 = vmatpush.bf16.xpose.msra.mxu3 %v2907_v46  ;;  %v313_v46 = vpack.c.bf16 %v185_v3, %v185_v3 }
 0x467   :  { %v2949_v3 = vunpack.c.l.b16 %v313_v46  ;;  %v3029_v46 = vunpack.c.l.b16 %v329_v28 }
 0x469   :  { %v5655_v29 = vpack.c.b16 %v2949_v3, %v2948_v30  ;;  %v5667_v28 = vpack.c.b16 %v3029_v46, %v3028_v2  ;;  %v149_v30 = vld [vmem:[%s6053_s3 + $0x238] sm:$0xff]  ;;  %v2946_v2 = vunpack.c.l.b16 %v310_v10  ;;  %v2947_v46 = vunpack.c.l.b16 %v311_v38 }
 0x46a   :  { %2989 = vmatpush.bf16.xpose.msrb.mxu0 %v2987_v57  ;;  %3069 = vmatpush.bf16.xpose.msrb.mxu1 %v3067_v22  ;;  %v2869_v57 = vunpack.c.l.b16 %v297_v8  ;;  %v167_v22 = vld [vmem:[%s6053_s3 + $0x2c8] sm:$0xff]  ;;  %v279_v8 = vpack.c.bf16 %v151_v33, %v151_v33 }
 0x46b   :  { %2830 = vmatpush.bf16.xpose.msra.mxu2 %v2824_v37  ;;  %v294_v37 = vpack.c.bf16 %v166_v36, %v166_v36  ;;  %v295_v33 = vpack.c.bf16 %v167_v22, %v167_v22  ;;  %6179 = vst [vmem:[#allocation10_spill] sm:$0xff] %v5655_v29  ;;  %v2981_v39 = vsel %vm608_vm0, %v5655_v29, 0  ;;  %v3061_v10 = vsel %vm608_vm0, %v5667_v28, 0  ;;  %v146_v29 = vld [vmem:[%s6053_s3 + $0x220] sm:$0xff] }
 0x46c   :  { %v5651_v53 = vpack.c.b16 %v2869_v57, %v2868_v24  ;;  %v2787_v24 = vunpack.c.l.b16 %v279_v8  ;;  %v2821_v57 = vsel %vm608_vm0, %v5649_v1, 0  ;;  %6180 = vst [vmem:[#allocation12_spill] sm:$0xff] %v5667_v28  ;;  %v164_v8 = vld [vmem:[%s6053_s3 + $0x2b0] sm:$0xff]  ;;  %v194_v1 = vld [vmem:[%s6053_s3 + $0x3a0] sm:$0xff] }
 0x46d   :  { %2910 = vmatpush.bf16.xpose.msra.mxu3 %v2904_v18  ;;  %v198_v18 = vld [vmem:[%s6053_s3 + $0x3c0] sm:$0xff]  ;;  %v2866_v3 = vunpack.c.l.b16 %v294_v37  ;;  %v2867_v36 = vunpack.c.l.b16 %v295_v33  ;;  %v277_v33 = vpack.c.bf16 %v149_v30, %v149_v30  ;;  %v5701_v30 = vpack.c.b16 %v2947_v46, %v2946_v2 }
 0x46e   :  { %6178 = vst [vmem:[#allocation9_spill] sm:$0xff] %v5651_v53  ;;  %v2901_v40 = vsel %vm608_vm0, %v5651_v53, 0  ;;  %v326_v22 = vpack.c.bf16 %v198_v18, %v198_v18  ;;  %v180_v18 = vld [vmem:[%s6053_s3 + $0x330] sm:$0xff]  ;;  %v292_v53 = vpack.c.bf16 %v164_v8, %v164_v8  ;;  %v309_v8 = vpack.c.bf16 %v181_v7, %v181_v7  ;;  %v163_v7 = vld [vmem:[%s6053_s3 + $0x2a8] sm:$0xff] }
 0x46f   :  { %v5693_v38 = vpack.c.b16 %v2867_v36, %v2866_v3  ;;  %6183 = vst [vmem:[#allocation14_spill] sm:$0xff] %v5701_v30  ;;  %v2785_v3 = vunpack.c.l.b16 %v277_v33  ;;  %v162_v33 = vld [vmem:[%s6053_s3 + $0x2a0] sm:$0xff] }
 0x470   :  { %v2864_v36 = vunpack.c.l.b16 %v292_v53 }
 0x471   :  { %6182 = vst [vmem:[#allocation13_spill] sm:$0xff] %v5693_v38  ;;  %v2898_v2 = vsel %vm608_vm0, %v5693_v38, 0 }
 0x472   :  { %2990 = vmatpush.bf16.xpose.msrb.mxu0 %v2984_v26  ;;  %3070 = vmatpush.bf16.xpose.msrb.mxu1 %v3064_v48  ;;  %v148_v26 = vld [vmem:[%s6053_s3 + $0x230] sm:$0xff]  ;;  %v5683_v48 = vpack.c.b16 %v2787_v24, %v2786_v6  ;;  %v3026_v6 = vunpack.c.l.b16 %v326_v22  ;;  %v3027_v24 = vunpack.c.l.b16 %v327_v58  ;;  %v2865_v22 = vunpack.c.l.b16 %v293_v13 }
 0x473   :  { %2831 = vmatpush.bf16.xpose.msra.mxu2 %v2821_v57  ;;  %v276_v37 = vpack.c.bf16 %v148_v26, %v148_v26  ;;  %v196_v57 = vld [vmem:[%s6053_s3 + $0x3b0] sm:$0xff]  ;;  %v197_v26 = vld [vmem:[%s6053_s3 + $0x3b8] sm:$0xff]  ;;  %v2945_v13 = vunpack.c.l.b16 %v309_v8 }
 0x474   :  { %6181 = vst [vmem:[#allocation11_spill] sm:$0xff] %v5683_v48  ;;  %v2818_v14 = vsel %vm608_vm0, %v5683_v48, 0  ;;  %v324_v58 = vpack.c.bf16 %v196_v57, %v196_v57  ;;  %v325_v28 = vpack.c.bf16 %v197_v26, %v197_v26  ;;  %v5710_v46 = vpack.c.b16 %v3027_v24, %v3026_v6  ;;  %v178_v24 = vld [vmem:[%s6053_s3 + $0x320] sm:$0xff]  ;;  %v179_v57 = vld [vmem:[%s6053_s3 + $0x328] sm:$0xff] }
 0x475   :  { %2911 = vmatpush.bf16.xpose.msra.mxu3 %v2901_v40  ;;  %v308_v40 = vpack.c.bf16 %v180_v18, %v180_v18  ;;  %v147_v18 = vld [vmem:[%s6053_s3 + $0x228] sm:$0xff]  ;;  %v274_v6 = vpack.c.bf16 %v146_v29, %v146_v29  ;;  %v5731_v26 = vpack.c.b16 %v2865_v22, %v2864_v36  ;;  %v291_v29 = vpack.c.bf16 %v163_v7, %v163_v7 }
 0x476   :  { %6184 = vst [vmem:[#allocation15_spill] sm:$0xff] %v5710_v46  ;;  %v3025_v8 = vunpack.c.l.b16 %v325_v28  ;;  %v275_v38 = vpack.c.bf16 %v147_v18, %v147_v18  ;;  %v307_v48 = vpack.c.bf16 %v179_v57, %v179_v57  ;;  %v195_v36 = vld [vmem:[%s6053_s3 + $0x3a8] sm:$0xff] }
 0x477   :  { %v2944_v53 = vunpack.c.l.b16 %v308_v40  ;;  %v3024_v40 = vunpack.c.l.b16 %v324_v58  ;;  %v2895_v22 = vsel %vm608_vm0, %v5731_v26, 0 }
 0x478   :  { %v2783_v18 = vunpack.c.l.b16 %v275_v38  ;;  %v2943_v57 = vunpack.c.l.b16 %v307_v48 }
 0x479   :  { %v5747_v58 = vpack.c.b16 %v3025_v8, %v3024_v40 }
 0x47a   :  { %2991 = vmatpush.bf16.xpose.msrb.mxu0 %v2981_v39  ;;  %v2784_v39 = vunpack.c.l.b16 %v276_v37  ;;  %3071 = vmatpush.bf16.xpose.msrb.mxu1 %v3061_v10  ;;  %v2978_v37 = vsel %vm608_vm0, %v5701_v30, 0  ;;  %v306_v30 = vpack.c.bf16 %v178_v24, %v178_v24 }
 0x47b   :  { %2832 = vmatpush.bf16.xpose.msra.mxu2 %v2818_v14  ;;  %v3058_v14 = vsel %vm608_vm0, %v5710_v46, 0  ;;  %v3055_v40 = vsel %vm608_vm0, %v5747_v58, 0 }
 0x47c   :  { %v5723_v10 = vpack.c.b16 %v2785_v3, %v2784_v39  ;;  %v290_v39 = vpack.c.bf16 %v162_v33, %v162_v33  ;;  %v5735_v3 = vpack.c.b16 %v2945_v13, %v2944_v53  ;;  %v2863_v53 = vunpack.c.l.b16 %v291_v29 }
 0x47d   :  { %2912 = vmatpush.bf16.xpose.msra.mxu3 %v2898_v2  ;;  %v2782_v2 = vunpack.c.l.b16 %v274_v6  ;;  %v322_v13 = vpack.c.bf16 %v194_v1, %v194_v1  ;;  %v323_v33 = vpack.c.bf16 %v195_v36, %v195_v36  ;;  %v2942_v24 = vunpack.c.l.b16 %v306_v30  ;;  %v144_v36 = vld [vmem:[%s6053_s3 + $0x210] sm:$0xff] }
 0x47e   :  { %v2815_v28 = vsel %vm608_vm0, %v5723_v10, 0  ;;  %v2975_v7 = vsel %vm608_vm0, %v5735_v3, 0 }
 0x47f   :  { %v5751_v46 = vpack.c.b16 %v2783_v18, %v2782_v2  ;;  %v3022_v38 = vunpack.c.l.b16 %v322_v13  ;;  %v3023_v6 = vunpack.c.l.b16 %v323_v33  ;;  %v160_v18 = vld [vmem:[%s6053_s3 + $0x290] sm:$0xff] }
 0x481   :  { %v2812_v1 = vsel %vm608_vm0, %v5751_v46, 0  ;;  %v5763_v30 = vpack.c.b16 %v3023_v6, %v3022_v38  ;;  %v193_v38 = vld [vmem:[%s6053_s3 + $0x398] sm:$0xff] }
 0x482   :  { %2992 = vmatpush.bf16.xpose.msrb.mxu0 %v2978_v37  ;;  %3072 = vmatpush.bf16.xpose.msrb.mxu1 %v3058_v14  ;;  %v2862_v37 = vunpack.c.l.b16 %v290_v39  ;;  %v5757_v14 = vpack.c.b16 %v2943_v57, %v2942_v24  ;;  %v177_v57 = vld [vmem:[%s6053_s3 + $0x318] sm:$0xff] }
 0x483   :  { %2833 = vmatpush.bf16.xpose.msra.mxu2 %v2815_v28  ;;  %6187 = vst [vmem:[#allocation18_spill] sm:$0xff] %v5763_v30  ;;  %v3052_v29 = vsel %vm608_vm0, %v5763_v30, 0  ;;  %v145_v28 = vld [vmem:[%s6053_s3 + $0x218] sm:$0xff] }
 0x484   :  { %v5755_v8 = vpack.c.b16 %v2863_v53, %v2862_v37  ;;  %6186 = vst [vmem:[#allocation17_spill] sm:$0xff] %v5757_v14  ;;  %v2972_v39 = vsel %vm608_vm0, %v5757_v14, 0  ;;  %v273_v2 = vpack.c.bf16 %v145_v28, %v145_v28  ;;  %v161_v37 = vld [vmem:[%s6053_s3 + $0x298] sm:$0xff]  ;;  %v176_v53 = vld [vmem:[%s6053_s3 + $0x310] sm:$0xff] }
 0x485   :  { %2913 = vmatpush.bf16.xpose.msra.mxu3 %v2895_v22  ;;  %v272_v22 = vpack.c.bf16 %v144_v36, %v144_v36  ;;  %v289_v24 = vpack.c.bf16 %v161_v37, %v161_v37  ;;  %v304_v6 = vpack.c.bf16 %v176_v53, %v176_v53 }
 0x486   :  { %6185 = vst [vmem:[#allocation16_spill] sm:$0xff] %v5755_v8  ;;  %v2892_v48 = vsel %vm608_vm0, %v5755_v8, 0  ;;  %v2781_v33 = vunpack.c.l.b16 %v273_v2 }
 0x487   :  { %v2780_v13 = vunpack.c.l.b16 %v272_v22  ;;  %v2861_v28 = vunpack.c.l.b16 %v289_v24  ;;  %v2940_v22 = vunpack.c.l.b16 %v304_v6  ;;  %v159_v6 = vld [vmem:[%s6053_s3 + $0x288] sm:$0xff] }
 0x48a   :  { %2993 = vmatpush.bf16.xpose.msrb.mxu0 %v2975_v7  ;;  %3073 = vmatpush.bf16.xpose.msrb.mxu1 %v3055_v40  ;;  %v288_v7 = vpack.c.bf16 %v160_v18, %v160_v18  ;;  %v192_v40 = vld [vmem:[%s6053_s3 + $0x390] sm:$0xff] }
 0x48b   :  { %2834 = vmatpush.bf16.xpose.msra.mxu2 %v2812_v1  ;;  %v305_v1 = vpack.c.bf16 %v177_v57, %v177_v57 }
 0x48c   :  { %v2860_v36 = vunpack.c.l.b16 %v288_v7 }
 0x48d   :  { %2914 = vmatpush.bf16.xpose.msra.mxu3 %v2892_v48  ;;  %v320_v48 = vpack.c.bf16 %v192_v40, %v192_v40  ;;  %v2941_v2 = vunpack.c.l.b16 %v305_v1  ;;  %v174_v1 = vld [vmem:[%s6053_s3 + $0x300] sm:$0xff] }
 0x48e   :  { %v5797_v8 = vpack.c.b16 %v2861_v28, %v2860_v36  ;;  %v287_v28 = vpack.c.bf16 %v159_v6, %v159_v6 }
 0x48f   :  { %v3020_v18 = vunpack.c.l.b16 %v320_v48  ;;  %v5799_v14 = vpack.c.b16 %v2941_v2, %v2940_v22  ;;  %v175_v22 = vld [vmem:[%s6053_s3 + $0x308] sm:$0xff]  ;;  %v190_v2 = vld [vmem:[%s6053_s3 + $0x380] sm:$0xff] }
 0x490   :  { %6189 = vst [vmem:[#allocation19_spill] sm:$0xff] %v5797_v8  ;;  %v2889_v7 = vsel %vm608_vm0, %v5797_v8, 0 }
 0x491   :  { %6190 = vst [vmem:[#allocation2_spill] sm:$0xff] %v5799_v14 }
 0x492   :  { %2994 = vmatpush.bf16.xpose.msrb.mxu0 %v2972_v39  ;;  %3074 = vmatpush.bf16.xpose.msrb.mxu1 %v3052_v29  ;;  %v321_v39 = vpack.c.bf16 %v193_v38, %v193_v38  ;;  %v5793_v29 = vpack.c.b16 %v2781_v33, %v2780_v13  ;;  %v142_v13 = vld [vmem:[%s6053_s3 + $0x200] sm:$0xff]  ;;  %v143_v33 = vld [vmem:[%s6053_s3 + $0x208] sm:$0xff] }
 0x493   :  { %v270_v24 = vpack.c.bf16 %v142_v13, %v142_v13  ;;  %v271_v57 = vpack.c.bf16 %v143_v33, %v143_v33  ;;  %v158_v38 = vld [vmem:[%s6053_s3 + $0x280] sm:$0xff]  ;;  %v303_v13 = vpack.c.bf16 %v175_v22, %v175_v22  ;;  %v318_v33 = vpack.c.bf16 %v190_v2, %v190_v2 }
 0x494   :  { %6188 = vst [vmem:[#allocation20_spill] sm:$0xff] %v5793_v29  ;;  %v3021_v37 = vunpack.c.l.b16 %v321_v39  ;;  %v2809_v30 = vsel %vm608_vm0, %v5793_v29, 0  ;;  %v286_v36 = vpack.c.bf16 %v158_v38, %v158_v38 }
 0x495   :  { %2835 = vmatpush.bf16.xpose.msra.mxu2 %v2809_v30  ;;  %2915 = vmatpush.bf16.xpose.msra.mxu3 %v2889_v7  ;;  %v2969_v30 = vsel %vm608_vm0, %v5799_v14, 0  ;;  %v2778_v48 = vunpack.c.l.b16 %v270_v24  ;;  %v2779_v39 = vunpack.c.l.b16 %v271_v57  ;;  %v2939_v38 = vunpack.c.l.b16 %v303_v13 }
 0x496   :  { %v5801_v53 = vpack.c.b16 %v3021_v37, %v3020_v18  ;;  %v191_v18 = vld [vmem:[%s6053_s3 + $0x388] sm:$0xff]  ;;  %v302_v37 = vpack.c.bf16 %v174_v1, %v174_v1  ;;  %v2858_v57 = vunpack.c.l.b16 %v286_v36  ;;  %v3018_v6 = vunpack.c.l.b16 %v318_v33 }
 0x497   :  { %v319_v7 = vpack.c.bf16 %v191_v18, %v191_v18  ;;  %v5833_v24 = vpack.c.b16 %v2779_v39, %v2778_v48 }
 0x498   :  { %6191 = vst [vmem:[#allocation21_spill] sm:$0xff] %v5801_v53  ;;  %v3049_v40 = vsel %vm608_vm0, %v5801_v53, 0 }
 0x499   :  { %v3019_v53 = vunpack.c.l.b16 %v319_v7  ;;  %v2806_v8 = vsel %vm608_vm0, %v5833_v24, 0 }
 0x49a   :  { %2995 = vmatpush.bf16.xpose.msrb.mxu0 %v2969_v30  ;;  %3075 = vmatpush.bf16.xpose.msrb.mxu1 %v3049_v40  ;;  %v2859_v30 = vunpack.c.l.b16 %v287_v28  ;;  %v2938_v40 = vunpack.c.l.b16 %v302_v37 }
 0x49b   :  { %v5841_v1 = vpack.c.b16 %v3019_v53, %v3018_v6 }
 0x49c   :  { %v5837_v14 = vpack.c.b16 %v2859_v30, %v2858_v57  ;;  %v5839_v29 = vpack.c.b16 %v2939_v38, %v2938_v40 }
 0x49d   :  { %2836 = vmatpush.bf16.xpose.msra.mxu2 %v2806_v8  ;;  %v3046_v36 = vsel %vm608_vm0, %v5841_v1, 0 }
 0x49e   :  { %v2886_v48 = vsel %vm608_vm0, %v5837_v14, 0  ;;  %v2966_v39 = vsel %vm608_vm0, %v5839_v29, 0 }
 0x49f   :  { %2916 = vmatpush.bf16.xpose.msra.mxu3 %v2886_v48 }
 0x4a2   :  { %2996 = vmatpush.bf16.xpose.msrb.mxu0 %v2966_v39  ;;  %3076 = vmatpush.bf16.xpose.msrb.mxu1 %v3046_v36 }
 0x4bb   :  { %v2415_v28 = vpop.f32.mrf.mxu1 }
 0x4bc   :  { %v2434_v22 = vpack.c.bf16 %v2415_v28, %v2415_v28  ;;  %v2420_v2 = vrot.slane %v2415_v28, 1  ;;  %v2421_v8 = vrot.slane %v2415_v28, 2  ;;  %v2422_v18 = vrot.slane %v2415_v28, 3 }
 0x4bd   :  { %v2424_v7 = vrot.slane %v2415_v28, 5 }
 0x4be   :  { %3824 = vmatmul.msk.bf16.vlgmr.msrb.gmra.mxu2 %vm608_vm0, %v2434_v22  ;;  %v2435_v53 = vpack.c.bf16 %v2420_v2, %v2420_v2  ;;  %v2436_v37 = vpack.c.bf16 %v2421_v8, %v2421_v8  ;;  %v2437_v13 = vpack.c.bf16 %v2422_v18, %v2422_v18 }
 0x4bf   :  { %3217 = vmatpush.bf16.msrb.mxu2 %v5167_v50  ;;  %v2423_v50 = vrot.slane %v2415_v28, 4 }
 0x4c0   :  { %3825 = vmatmul.msk.bf16.vlgmr.msrb.gmra.mxu3 %vm608_vm0, %v2435_v53  ;;  %3826 = vmatmul.msk.bf16.vlgmr.msra.gmra.mxu0 %vm608_vm0, %v2436_v37 }
 0x4c1   :  { %3827 = vmatmul.msk.bf16.vlgmr.msra.gmra.mxu1 %vm608_vm0, %v2437_v13  ;;  %3259 = vmatpush.bf16.msra.mxu0 %v5190_v41  ;;  %v2425_v41 = vrot.slane %v2415_v28, 6 }
 0x4c2   :  { %3238 = vmatpush.bf16.msrb.mxu3 %v5176_v21  ;;  %3280 = vmatpush.bf16.msra.mxu1 %v5230_v35  ;;  %v2426_v21 = vrot.slane %v2415_v28, 7  ;;  %v2438_v35 = vpack.c.bf16 %v2423_v50, %v2423_v50  ;;  %v5935_v28 = vld [vmem:[%s6055_s5] sm:$0xff] }
 0x4c3   :  { %v2417_v33 = vpop.f32.mrf.mxu1  ;;  %3218 = vmatpush.bf16.msrb.mxu2 %v5256_v60  ;;  %v2439_v60 = vpack.c.bf16 %v2424_v7, %v2424_v7  ;;  %v3132_v18 = vrot.slane %v5935_v28, 2 }
 0x4c5   :  { %3260 = vmatpush.bf16.msra.mxu0 %v5260_v4  ;;  %v2441_v4 = vpack.c.bf16 %v2426_v21, %v2426_v21 }
 0x4c6   :  { %3239 = vmatpush.bf16.msrb.mxu3 %v5258_v62  ;;  %3281 = vmatpush.bf16.msra.mxu1 %v5290_v5  ;;  %v2440_v62 = vpack.c.bf16 %v2425_v41, %v2425_v41  ;;  %v6192_v5 = vld [vmem:[#allocation6_spill] sm:$0xff]  ;;  %v3131_v41 = vrot.slane %v5935_v28, 1 }
 0x4c7   :  { %3219 = vmatpush.bf16.msrb.mxu2 %v5306_v63  ;;  %v6193_v63 = vld [vmem:[#allocation5_spill] sm:$0xff] }
 0x4c9   :  { %3261 = vmatpush.bf16.msra.mxu0 %v5321_v20  ;;  %v6195_v20 = vld [vmem:[#allocation8_spill] sm:$0xff] }
 0x4ca   :  { %3240 = vmatpush.bf16.msrb.mxu3 %v5314_v32  ;;  %3282 = vmatpush.bf16.msra.mxu1 %v5338_v0  ;;  %v6194_v32 = vld [vmem:[#allocation7_spill] sm:$0xff]  ;;  %v6196_v0 = vld [vmem:[#allocation10_spill] sm:$0xff] }
 0x4cb   :  { %3220 = vmatpush.bf16.msrb.mxu2 %v5358_v17  ;;  %v6197_v17 = vld [vmem:[#allocation9_spill] sm:$0xff] }
 0x4cd   :  { %3262 = vmatpush.bf16.msra.mxu0 %v5377_v11  ;;  %v6199_v11 = vld [vmem:[#allocation12_spill] sm:$0xff] }
 0x4ce   :  { %3828 = vmatmul.msk.bf16.vlgmr.msra.gmra.mxu2 %vm608_vm0, %v2438_v35  ;;  %3241 = vmatpush.bf16.msrb.mxu3 %v5372_v23  ;;  %v6198_v23 = vld [vmem:[#allocation11_spill] sm:$0xff] }
 0x4cf   :  { %3221 = vmatpush.bf16.msrb.mxu2 %v5397_v25  ;;  %3283 = vmatpush.bf16.msra.mxu1 %v5392_v56  ;;  %v6200_v56 = vld [vmem:[#allocation14_spill] sm:$0xff]  ;;  %v6201_v25 = vld [vmem:[#allocation13_spill] sm:$0xff] }
 0x4d0   :  { %3829 = vmatmul.msk.bf16.vlgmr.msra.gmra.mxu3 %vm608_vm0, %v2439_v60  ;;  %3830 = vmatmul.msk.bf16.vlgmr.msrb.gmra.mxu0 %vm608_vm0, %v2440_v62 }
 0x4d1   :  { %3831 = vmatmul.msk.bf16.vlgmr.msrb.gmra.mxu1 %vm608_vm0, %v2441_v4  ;;  %3263 = vmatpush.bf16.msra.mxu0 %v5415_v16  ;;  %v6203_v16 = vld [vmem:[#allocation17_spill] sm:$0xff] }
 0x4d2   :  { %3242 = vmatpush.bf16.msrb.mxu3 %v5410_v52  ;;  %v6202_v52 = vld [vmem:[#allocation15_spill] sm:$0xff] }
 0x4d3   :  { %3222 = vmatpush.bf16.msrb.mxu2 %v5440_v49  ;;  %3284 = vmatpush.bf16.msra.mxu1 %v5430_v45  ;;  %v6204_v45 = vld [vmem:[#allocation16_spill] sm:$0xff] }
 0x4d4   :  { %v6205_v49 = vld [vmem:[#allocation20_spill] sm:$0xff] }
 0x4d5   :  { %3264 = vmatpush.bf16.msra.mxu0 %v5455_v44  ;;  %v6207_v44 = vld [vmem:[#allocation2_spill] sm:$0xff] }
 0x4d6   :  { %3243 = vmatpush.bf16.msrb.mxu3 %v5450_v9  ;;  %v6206_v9 = vld [vmem:[#allocation18_spill] sm:$0xff] }
 0x4d7   :  { %3223 = vmatpush.bf16.msrb.mxu2 %v5486_v54  ;;  %3285 = vmatpush.bf16.msra.mxu1 %v5476_v12  ;;  %v6208_v12 = vld [vmem:[#allocation19_spill] sm:$0xff]  ;;  %v6209_v54 = vld [vmem:[#allocation21_spill] sm:$0xff] }
 0x4d9   :  { %3265 = vmatpush.bf16.msra.mxu0 %v5496_v27 }
 0x4da   :  { %3244 = vmatpush.bf16.msrb.mxu3 %v5491_v34 }
 0x4db   :  { %3224 = vmatpush.bf16.msrb.mxu2 %v5511_v61  ;;  %3286 = vmatpush.bf16.msra.mxu1 %v5506_v43 }
 0x4dd   :  { %3266 = vmatpush.bf16.msra.mxu0 %v5554_v47 }
 0x4de   :  { %3245 = vmatpush.bf16.msrb.mxu3 %v5546_v15 }
 0x4df   :  { %3301 = vmatpush.bf16.msra.mxu2 %v5538_v51  ;;  %3287 = vmatpush.bf16.msra.mxu1 %v5581_v55 }
 0x4e1   :  { %3343 = vmatpush.bf16.msrb.mxu0 %v5571_v19 }
 0x4e2   :  { %3322 = vmatpush.bf16.msra.mxu3 %v5564_v31 }
 0x4e3   :  { %3302 = vmatpush.bf16.msra.mxu2 %v5601_v42  ;;  %3364 = vmatpush.bf16.msrb.mxu1 %v5583_v59 }
 0x4e5   :  { %3344 = vmatpush.bf16.msrb.mxu0 %v6192_v5 }
 0x4e6   :  { %3323 = vmatpush.bf16.msra.mxu3 %v6193_v63 }
 0x4e7   :  { %3303 = vmatpush.bf16.msra.mxu2 %v6194_v32  ;;  %3365 = vmatpush.bf16.msrb.mxu1 %v6195_v20 }
 0x4e9   :  { %3345 = vmatpush.bf16.msrb.mxu0 %v6196_v0  ;;  %v3133_v0 = vrot.slane %v5935_v28, 3 }
 0x4ea   :  { %3324 = vmatpush.bf16.msra.mxu3 %v6197_v17 }
 0x4eb   :  { %3304 = vmatpush.bf16.msra.mxu2 %v6198_v23  ;;  %3366 = vmatpush.bf16.msrb.mxu1 %v6199_v11 }
 0x4ed   :  { %3346 = vmatpush.bf16.msrb.mxu0 %v6200_v56 }
 0x4ee   :  { %3325 = vmatpush.bf16.msra.mxu3 %v6201_v25 }
 0x4ef   :  { %3305 = vmatpush.bf16.msra.mxu2 %v5723_v10  ;;  %3367 = vmatpush.bf16.msrb.mxu1 %v6202_v52 }
 0x4f1   :  { %3347 = vmatpush.bf16.msrb.mxu0 %v5735_v3 }
 0x4f2   :  { %3326 = vmatpush.bf16.msra.mxu3 %v5731_v26 }
 0x4f3   :  { %3306 = vmatpush.bf16.msra.mxu2 %v5751_v46  ;;  %3368 = vmatpush.bf16.msrb.mxu1 %v5747_v58 }
 0x4f5   :  { %3348 = vmatpush.bf16.msrb.mxu0 %v6203_v16 }
 0x4f6   :  { %3327 = vmatpush.bf16.msra.mxu3 %v6204_v45 }
 0x4f7   :  { %3307 = vmatpush.bf16.msra.mxu2 %v6205_v49  ;;  %3369 = vmatpush.bf16.msrb.mxu1 %v6206_v9 }
 0x4f9   :  { %3349 = vmatpush.bf16.msrb.mxu0 %v6207_v44 }
 0x4fa   :  { %3328 = vmatpush.bf16.msra.mxu3 %v6208_v12  ;;  %v3134_v12 = vrot.slane %v5935_v28, 4 }
 0x4fb   :  { %3308 = vmatpush.bf16.msra.mxu2 %v5833_v24  ;;  %3370 = vmatpush.bf16.msrb.mxu1 %v6209_v54 }
 0x4fd   :  { %3350 = vmatpush.bf16.msrb.mxu0 %v5839_v29 }
 0x4fe   :  { %3329 = vmatpush.bf16.msra.mxu3 %v5837_v14 }
 0x4ff   :  { %3371 = vmatpush.bf16.msrb.mxu1 %v5841_v1 }
 0x53d   :  { %v2678_v34 = vpop.f32.mrf.mxu0 }
 0x53e   :  { %v2758_v27 = vpop.f32.mrf.mxu1  ;;  %v3088_v43 = vsel %vm1288_vm1, %v2678_v34, -inf }
 0x53f   :  { %3089 = vmax.xlane.f32.xlu0 %v3088_v43  ;;  %v3091_v59 = vsel %vm1288_vm1, %v2758_v27, -inf }
 0x541   :  { %v2518_v61 = vpop.f32.mrf.mxu2 }
 0x542   :  { %v3082_v51 = vsel %vm1288_vm1, %v2518_v61, -inf }
 0x543   :  { %3083 = vmax.xlane.f32.xlu1 %v3082_v51  ;;  %v2598_v15 = vpop.f32.mrf.mxu3 }
 0x544   :  { %v3085_v47 = vsel %vm1288_vm1, %v2598_v15, -inf }
 0x545   :  { %v2680_v31 = vpop.f32.mrf.mxu0  ;;  %3086 = vmax.xlane.f32.xlu2 %v3085_v47 }
 0x546   :  { %v2760_v19 = vpop.f32.mrf.mxu1 }
 0x549   :  { %v2520_v55 = vpop.f32.mrf.mxu2 }
 0x54b   :  { %v2600_v42 = vpop.f32.mrf.mxu3  ;;  %3092 = vmax.xlane.f32.xlu1 %v3091_v59  ;;  %v3884_v59 = vld [vmem:[%s6054_s16] ss:$0 sm:$0xff] }
 0x54d   :  { %v2998_v46 = vpop.f32.mrf.mxu0 }
 0x54e   :  { %v5925_v10 = vpop.f32.mrf.mxu1  ;;  %v3100_v58 = vsel %vm1288_vm1, %v2998_v46, -inf }
 0x54f   :  { %v3103_v40 = vsel %vm1288_vm1, %v5925_v10, -inf }
 0x551   :  { %v2838_v26 = vpop.f32.mrf.mxu2 }
 0x552   :  { %v3094_v3 = vsel %vm1288_vm1, %v2838_v26, -inf }
 0x553   :  { %3095 = vmax.xlane.f32.xlu2 %v3094_v3  ;;  %v2918_v14 = vpop.f32.mrf.mxu3  ;;  %3101 = vmax.xlane.f32.xlu1 %v3100_v58 }
 0x554   :  { %v3097_v29 = vsel %vm1288_vm1, %v2918_v14, -inf }
 0x555   :  { %v3000_v24 = vpop.f32.mrf.mxu0  ;;  %3098 = vmax.xlane.f32.xlu0 %v3097_v29 }
 0x556   :  { %v3080_v57 = vpop.f32.mrf.mxu1 }
 0x557   :  { %v6210_v57 = vld [vmem:[#allocation3_spill] sm:$0xff] }
 0x559   :  { %v2840_v30 = vpop.f32.mrf.mxu2 }
 0x55a   :  { %v3420_v30 = vsel %vm608_vm0, %v6210_v57, 0.0 }
 0x55b   :  { %v2920_v38 = vpop.f32.mrf.mxu3  ;;  %3104 = vmax.xlane.f32.xlu2 %v3103_v40  ;;  %v3885_v40 = vld [vmem:[%s6051_s19] ss:$0 sm:$0xff] }
 0x55c   :  { %v6211_v38 = vld [vmem:[#allocation4_spill] sm:$0xff] }
 0x5b2   :  { %v3090_v6 = vpop.xlane.xlu0 %3089 }
 0x5b3   :  { %v3108_v1 = vsub.f32 %v2678_v34, %v3090_v6  ;;  %v3136_v34 = vrot.slane %v5935_v28, 6  ;;  %v3467_v6 = vmul.f32 %v3885_v40, %v6211_v38 }
 0x5b5   :  { %v3118_v48 = vmul.f32 1.442695, %v3108_v1  ;;  %v3468_v1 = vsel %vm608_vm0, %v3467_v6, 0.0 }
 0x5b6   :  { %v3084_v39 = vpop.xlane.xlu1 %3083 }
 0x5b7   :  { %3951 = vpow2.f32 %v3118_v48  ;;  %v3106_v36 = vsub.f32 %v2518_v61, %v3084_v39 }
 0x5b8   :  { %v3087_v22 = vpop.xlane.xlu2 %3086 }
 0x5b9   :  { %v3114_v2 = vmul.f32 1.442695, %v3106_v36  ;;  %v3107_v8 = vsub.f32 %v2598_v15, %v3087_v22 }
 0x5bb   :  { %3953 = vpow2.f32 %v3114_v2  ;;  %v3116_v53 = vmul.f32 1.442695, %v3107_v8 }
 0x5bd   :  { %v3952_v37 = vpop.eup %3951  ;;  %3955 = vpow2.f32 %v3116_v53 }
 0x5be   :  { %v3093_v13 = vpop.xlane.xlu1 %3092  ;;  %v5938_v33 = vmul.f32 %v3952_v37, %v3132_v18 }
 0x5bf   :  { %v3109_v50 = vsub.f32 %v2758_v27, %v3093_v13  ;;  %v3135_v27 = vrot.slane %v5935_v28, 5 }
 0x5c0   :  { %v3159_v7 = vsel %vm1288_vm1, %v5938_v33, 0.0 }
 0x5c1   :  { %v3954_v21 = vpop.eup %3953  ;;  %v3120_v35 = vmul.f32 1.442695, %v3109_v50  ;;  %3160 = vadd.xlane.f32.xlu2 %v3159_v7 }
 0x5c2   :  { %v5944_v60 = vmul.f32 %v3954_v21, %v5935_v28 }
 0x5c3   :  { %v3956_v62 = vpop.eup %3955  ;;  %3957 = vpow2.f32 %v3120_v35 }
 0x5c4   :  { %v3153_v4 = vsel %vm1288_vm1, %v5944_v60, 0.0  ;;  %v5948_v5 = vmul.f32 %v3956_v62, %v3131_v41 }
 0x5c5   :  { %3154 = vadd.xlane.f32.xlu0 %v3153_v4 }
 0x5c6   :  { %v3096_v63 = vpop.xlane.xlu2 %3095  ;;  %v3102_v32 = vpop.xlane.xlu1 %3101  ;;  %v3156_v20 = vsel %vm1288_vm1, %v5948_v5, 0.0 }
 0x5c7   :  { %v3110_v17 = vsub.f32 %v2838_v26, %v3096_v63  ;;  %v3112_v23 = vsub.f32 %v2998_v46, %v3102_v32  ;;  %3157 = vadd.xlane.f32.xlu1 %v3156_v20  ;;  %v3987_v26 = vld [vmem:[%s6159_s10] sm:$0xff] }
 0x5c8   :  { %v3099_v11 = vpop.xlane.xlu0 %3098  ;;  %v3381_v3 = vmul.f32 %v3987_v26, %v3884_v59 }
 0x5c9   :  { %v3958_v56 = vpop.eup %3957  ;;  %v3122_v25 = vmul.f32 1.442695, %v3110_v17  ;;  %v3126_v52 = vmul.f32 1.442695, %v3112_v23  ;;  %v3111_v16 = vsub.f32 %v2918_v14, %v3099_v11 }
 0x5ca   :  { %v5953_v45 = vmul.f32 %v3958_v56, %v3133_v0  ;;  %v3382_v24 = vsel %vm1672_vm2, %v3381_v3, 0.0  ;;  %vm6213_vm2 = vcmask 1047559  }
 0x5cb   :  { %3959 = vpow2.f32 %v3122_v25  ;;  %v3124_v49 = vmul.f32 1.442695, %v3111_v16 }
 0x5cc   :  { %3961 = vpow2.f32 %v3126_v52  ;;  %v3162_v9 = vsel %vm1288_vm1, %v5953_v45, 0.0 }
 0x5cd   :  { %3963 = vpow2.f32 %v3124_v49  ;;  %3163 = vadd.xlane.f32.xlu0 %v3162_v9 }
 0x5ce   :  { %v3105_v44 = vpop.xlane.xlu2 %3104 }
 0x5cf   :  { %v3113_v54 = vsub.f32 %v5925_v10, %v3105_v44  ;;  %v3137_v10 = vrot.slane %v5935_v28, 7 }
 0x5d1   :  { %v3960_v43 = vpop.eup %3959  ;;  %v3128_v61 = vmul.f32 1.442695, %v3113_v54 }
 0x5d2   :  { %v3962_v51 = vpop.eup %3961  ;;  %v5961_v15 = vmul.f32 %v3960_v43, %v3134_v12 }
 0x5d3   :  { %v3964_v47 = vpop.eup %3963  ;;  %3965 = vpow2.f32 %v3128_v61  ;;  %v5963_v31 = vmul.f32 %v3962_v51, %v3136_v34 }
 0x5d4   :  { %v3165_v19 = vsel %vm1288_vm1, %v5961_v15, 0.0  ;;  %v5967_v55 = vmul.f32 %v3964_v47, %v3135_v27 }
 0x5d5   :  { %3166 = vadd.xlane.f32.xlu1 %v3165_v19  ;;  %v3171_v42 = vsel %vm1288_vm1, %v5963_v31, 0.0 }
 0x5d6   :  { %3172 = vadd.xlane.f32.xlu0 %v3171_v42  ;;  %v3168_v46 = vsel %vm1288_vm1, %v5967_v55, 0.0 }
 0x5d7   :  { %3169 = vadd.xlane.f32.xlu2 %v3168_v46 }
 0x5d9   :  { %v3966_v58 = vpop.eup %3965 }
 0x5da   :  { %v5980_v14 = vmul.f32 %v3966_v58, %v3137_v10 }
 0x5dc   :  { %v3174_v29 = vsel %vm1288_vm1, %v5980_v14, 0.0  ;;  %vm6212_vm1 = vcmask 1046534  }
 0x5dd   :  { %3175 = vadd.xlane.f32.xlu1 %v3174_v29 }
 0x5de   :  { %3421 = vadd.xlane.f32.xlu0 %v3420_v30 }
 0x5df   :  { %3383 = vadd.xlane.f32.xlu2 %v3382_v24 }
 0x5e7   :  { %3469 = vadd.xlane.f32.xlu2 %v3468_v1 }
 0x634   :  { %v3161_v48 = vpop.xlane.xlu2 %3160 }
 0x635   :  { %v3179_v39 = vadd.f32 1e-13, %v3161_v48 }
 0x637   :  { %3967 = vrcp.f32 %v3179_v39 }
 0x638   :  { %v3155_v36 = vpop.xlane.xlu0 %3154 }
 0x639   :  { %v3177_v28 = vadd.f32 1e-13, %v3155_v36 }
 0x63a   :  { %v3158_v22 = vpop.xlane.xlu1 %3157 }
 0x63b   :  { %3969 = vrcp.f32 %v3177_v28  ;;  %v3178_v2 = vadd.f32 1e-13, %v3158_v22 }
 0x63d   :  { %v3968_v8 = vpop.eup %3967  ;;  %3971 = vrcp.f32 %v3178_v2 }
 0x63e   :  { %v3195_v18 = vmul.f32 %v3968_v8, %v5938_v33 }
 0x640   :  { %v3203_v53 = vpack.c.bf16 %v3195_v18, %v3195_v18  ;;  %v3164_v37 = vpop.xlane.xlu0 %3163 }
 0x641   :  { %v3970_v13 = vpop.eup %3969  ;;  %v3180_v50 = vadd.f32 1e-13, %v3164_v37 }
 0x642   :  { %v3193_v7 = vmul.f32 %v3970_v13, %v5944_v60  ;;  %3267 = vmatmul.bf16.vlgmr.msra.gmra.mxu0 %v3203_v53 }
 0x643   :  { %v3972_v41 = vpop.eup %3971  ;;  %3973 = vrcp.f32 %v3180_v50 }
 0x644   :  { %v3194_v21 = vmul.f32 %v3972_v41, %v5948_v5  ;;  %v3201_v35 = vpack.c.bf16 %v3193_v7, %v3193_v7 }
 0x646   :  { %3225 = vmatmul.bf16.vlgmr.msrb.gmra.mxu2 %v3201_v35  ;;  %v3202_v62 = vpack.c.bf16 %v3194_v21, %v3194_v21  ;;  %v3505_v11 = vrot.slane %v3194_v21, 7 }
 0x648   :  { %3246 = vmatmul.bf16.vlgmr.msrb.gmra.mxu3 %v3202_v62  ;;  %v3167_v4 = vpop.xlane.xlu1 %3166  ;;  %v3506_v16 = vsel %vm1617_vm3, %v3505_v11, %v3193_v7 }
 0x649   :  { %v3974_v63 = vpop.eup %3973  ;;  %v3173_v32 = vpop.xlane.xlu0 %3172  ;;  %v3181_v20 = vadd.f32 1e-13, %v3167_v4 }
 0x64a   :  { %v3196_v33 = vmul.f32 %v3974_v63, %v5953_v45  ;;  %v3183_v0 = vadd.f32 1e-13, %v3173_v32  ;;  %v3170_v17 = vpop.xlane.xlu2 %3169  ;;  %v3507_v45 = vrot.slane %v3195_v18, 6 }
 0x64b   :  { %3975 = vrcp.f32 %v3181_v20  ;;  %v3182_v23 = vadd.f32 1e-13, %v3170_v17 }
 0x64c   :  { %v3204_v60 = vpack.c.bf16 %v3196_v33, %v3196_v33  ;;  %3977 = vrcp.f32 %v3183_v0  ;;  %v3509_v49 = vrot.slane %v3196_v33, 5  ;;  %v3508_v43 = vsel %vm1620_vm4, %v3507_v45, %v3506_v16 }
 0x64d   :  { %3979 = vrcp.f32 %v3182_v23 }
 0x64e   :  { %3288 = vmatmul.bf16.vlgmr.msra.gmra.mxu1 %v3204_v60  ;;  %v3510_v51 = vsel %vm1623_vm5, %v3509_v49, %v3508_v43 }
 0x650   :  { %v3176_v5 = vpop.xlane.xlu1 %3175 }
 0x651   :  { %v3976_v56 = vpop.eup %3975  ;;  %v3184_v25 = vadd.f32 1e-13, %v3176_v5 }
 0x652   :  { %v3978_v52 = vpop.eup %3977  ;;  %v3197_v9 = vmul.f32 %v3976_v56, %v5961_v15 }
 0x653   :  { %v3980_v44 = vpop.eup %3979  ;;  %v3199_v12 = vmul.f32 %v3978_v52, %v5963_v31  ;;  %3981 = vrcp.f32 %v3184_v25 }
 0x654   :  { %v3205_v54 = vpack.c.bf16 %v3197_v9, %v3197_v9  ;;  %v3511_v34 = vrot.slane %v3197_v9, 4  ;;  %v3198_v27 = vmul.f32 %v3980_v44, %v5967_v55 }
 0x655   :  { %v3207_v61 = vpack.c.bf16 %v3199_v12, %v3199_v12  ;;  %v3515_v46 = vrot.slane %v3199_v12, 2 }
 0x656   :  { %v3206_v47 = vpack.c.bf16 %v3198_v27, %v3198_v27  ;;  %v3513_v19 = vrot.slane %v3198_v27, 3  ;;  %3309 = vmatmul.bf16.vlgmr.msra.gmra.mxu2 %v3205_v54  ;;  %v3512_v59 = vsel %vm1626_vm6, %v3511_v34, %v3510_v51 }
 0x657   :  { %3351 = vmatmul.bf16.vlgmr.msrb.gmra.mxu0 %v3207_v61 }
 0x658   :  { %3330 = vmatmul.bf16.vlgmr.msra.gmra.mxu3 %v3206_v47  ;;  %v3514_v31 = vsel %vm1629_vm7, %v3513_v19, %v3512_v59  ;;  %v3384_v19 = vpop.xlane.xlu2 %3383  ;;  %v3422_v59 = vpop.xlane.xlu0 %3421 }
 0x659   :  { %v3982_v15 = vpop.eup %3981  ;;  %v3516_v26 = vsel %vm6212_vm1, %v3515_v46, %v3514_v31 }
 0x65a   :  { %v3200_v42 = vmul.f32 %v3982_v15, %v5980_v14  ;;  %v3886_v14 = vld [vmem:[%s6056_s18] ss:$0 sm:$0xff]  ;;  %v3423_v15 = vadd.f32 %v3422_v59, %v3384_v19 }
 0x65c   :  { %v3208_v10 = vpack.c.bf16 %v3200_v42, %v3200_v42  ;;  %v3517_v55 = vrot.slane %v3200_v42, 1 }
 0x65e   :  { %v3518_v3 = vsel %vm6213_vm2, %v3517_v55, %v3516_v26  ;;  %3372 = vmatmul.bf16.vlgmr.msrb.gmra.mxu1 %v3208_v10 }
 0x65f   :  { %3520 = vst [vmem:[%s6057_s22] sm:$0xff] %v3518_v3 }
 0x660   :  { %v3470_v46 = vpop.xlane.xlu2 %3469 }
 0x6bf   :  { %v3268_v58 = vpop.f32.mrf.mxu0 }
 0x6c0   :  { %v3430_v36 = vmul.f32 %v3886_v14, %v3268_v58  ;;  %v3531_v8 = vrot.slane %v3268_v58, 6 }
 0x6c2   :  { %v3446_v37 = vrot.slane %v3430_v36, 6 }
 0x6c7   :  { %v3270_v29 = vpop.f32.mrf.mxu0 }
 0x6c9   :  { %v3226_v24 = vpop.f32.mrf.mxu2 }
 0x6ca   :  { %v3428_v22 = vmul.f32 %v3886_v14, %v3226_v24 }
 0x6cb   :  { %v3247_v57 = vpop.f32.mrf.mxu3  ;;  %v3289_v30 = vpop.f32.mrf.mxu1 }
 0x6cc   :  { %v3429_v40 = vmul.f32 %v3886_v14, %v3247_v57  ;;  %v3529_v38 = vrot.slane %v3247_v57, 7  ;;  %v3431_v53 = vmul.f32 %v3886_v14, %v3289_v30  ;;  %v3533_v50 = vrot.slane %v3289_v30, 5 }
 0x6ce   :  { %v3444_v1 = vrot.slane %v3429_v40, 7  ;;  %v3530_v2 = vsel %vm1617_vm3, %v3529_v38, %v3226_v24  ;;  %v3448_v62 = vrot.slane %v3431_v53, 5 }
 0x6cf   :  { %v3532_v13 = vsel %vm1620_vm4, %v3531_v8, %v3530_v2 }
 0x6d0   :  { %v3445_v18 = vsel %vm1617_vm3, %v3444_v1, %v3428_v22  ;;  %v3534_v4 = vsel %vm1623_vm5, %v3533_v50, %v3532_v13  ;;  %vm6214_vm3 = vmmov %vm6212_vm1 }
 0x6d1   :  { %v3228_v6 = vpop.f32.mrf.mxu2  ;;  %v3447_v41 = vsel %vm1620_vm4, %v3446_v37, %v3445_v18  ;;  %vm6215_vm4 = vmmov %vm6213_vm2 }
 0x6d2   :  { %v3449_v11 = vsel %vm1623_vm5, %v3448_v62, %v3447_v41  ;;  %vm6216_vm5 = vmmov %vm6212_vm1 }
 0x6d3   :  { %v3249_v48 = vpop.f32.mrf.mxu3  ;;  %v3291_v39 = vpop.f32.mrf.mxu1 }
 0x6d4   :  { %v3352_v28 = vpop.f32.mrf.mxu0 }
 0x6d5   :  { %v3434_v63 = vmul.f32 %v3886_v14, %v3352_v28  ;;  %v3539_v5 = vrot.slane %v3352_v28, 2 }
 0x6d7   :  { %v3454_v9 = vrot.slane %v3434_v63, 2 }
 0x6d9   :  { %v3310_v7 = vpop.f32.mrf.mxu2 }
 0x6da   :  { %v3432_v21 = vmul.f32 %v3886_v14, %v3310_v7  ;;  %v3535_v35 = vrot.slane %v3310_v7, 4 }
 0x6db   :  { %v3331_v32 = vpop.f32.mrf.mxu3  ;;  %v3373_v20 = vpop.f32.mrf.mxu1 }
 0x6dc   :  { %v3450_v33 = vrot.slane %v3432_v21, 4  ;;  %v3536_v0 = vsel %vm1626_vm6, %v3535_v35, %v3534_v4  ;;  %v3433_v17 = vmul.f32 %v3886_v14, %v3331_v32  ;;  %v3537_v23 = vrot.slane %v3331_v32, 3  ;;  %v3354_v60 = vpop.f32.mrf.mxu0 }
 0x6dd   :  { %v3435_v56 = vmul.f32 %v3886_v14, %v3373_v20  ;;  %v3541_v49 = vrot.slane %v3373_v20, 1 }
 0x6de   :  { %v3451_v25 = vsel %vm1626_vm6, %v3450_v33, %v3449_v11  ;;  %v3452_v52 = vrot.slane %v3433_v17, 3  ;;  %v3538_v16 = vsel %vm1629_vm7, %v3537_v23, %v3536_v0  ;;  %vm6217_vm6 = vmmov %vm6213_vm2 }
 0x6df   :  { %v3540_v44 = vsel %vm6214_vm3, %v3539_v5, %v3538_v16  ;;  %v3456_v45 = vrot.slane %v3435_v56, 1 }
 0x6e0   :  { %v3542_v12 = vsel %vm6215_vm4, %v3541_v49, %v3540_v44  ;;  %v3453_v54 = vsel %vm1629_vm7, %v3452_v52, %v3451_v25 }
 0x6e1   :  { %3544 = vst.msk [vmem:[%s6058_s23] sm:$0xff] %vm608_vm0, %v3542_v12  ;;  %v3312_v34 = vpop.f32.mrf.mxu2  ;;  %v3455_v27 = vsel %vm6216_vm5, %v3454_v9, %v3453_v54 }
 0x6e2   :  { %v3457_v43 = vsel %vm6217_vm6, %v3456_v45, %v3455_v27 }
 0x6e3   :  { %v3333_v61 = vpop.f32.mrf.mxu3  ;;  %v3375_v51 = vpop.f32.mrf.mxu1  ;;  %v3459_v47 = vsel %vm608_vm0, %v3457_v43, 0.0 }
 0x6e4   :  { %3460 = vadd.xlane.f32.xlu1 %v3459_v47 }
 0x757   :  { %v3461_v31 = vpop.xlane.xlu1 %3460 }
 0x758   :  { %v3462_v42 = vadd.f32 %v3461_v31, %v3423_v15 }
 0x75a   :  { %v3471_v10 = vadd.f32 %v3470_v46, %v3462_v42 }
 0x75c   :  { %v3832_v55 = vmul.f32 -1.442695, %v3471_v10 }
 0x75e   :  { %3983 = vpow2.f32 %v3832_v55 }
 0x764   :  { %v3984_v26 = vpop.eup %3983 }
 0x765   :  { %v3475_v3 = vadd.f32 1.0, %v3984_v26 }
 0x767   :  { %3985 = vrcp.f32 %v3475_v3  ;;  %v3487_v57 = vand.u32 2147483648, %v3475_v3  ;;  %v3485_v14 = vand.u32 2147483647, %v3475_v3  ;;  %vm3481_vm0 = vweird.f32 %v3475_v3 }
 0x769   :  { %v3488_v38 = vor.u32 1.1754944e-38, %v3487_v57  ;;  %vm3486_vm8 = vcmp.eq.f32.partialorder %v3485_v14, 8.507059e+37 }
 0x76d   :  { %v3986_v58 = vpop.eup %3985 }
 0x76e   :  { %v3477_v29 = vmul.f32 %v3986_v58, %v3475_v3  ;;  %vm3482_vm7 = vweird.f32 %v3986_v58 }
 0x76f   :  { %vm3483_vm10 = vmor %vm3481_vm0, %vm3482_vm7 }
 0x770   :  { %v3478_v24 = vsub.f32 1.0, %v3477_v29 }
 0x772   :  { %v3479_v30 = vmul.f32 %v3986_v58, %v3478_v24 }
 0x774   :  { %v3480_v40 = vadd.f32 %v3986_v58, %v3479_v30 }
 0x776   :  { %v3484_v6 = vsel %vm3483_vm10, %v3986_v58, %v3480_v40 }
 0x777   :  { %v3489_v1 = vsel %vm3486_vm8, %v3488_v38, %v3484_v6 }
 0x778   :  { %3545 = vst [vmem:[%s6059_s24] sm:$0xff] %v3489_v1 }

</bundles_post_ra>
